<compile_context>
chip_gen: v7x
topology: tpu7x:2x2x1
jax: 0.10.0
libtpu: 0.0.40
codegen_flags: <defaults>
</compile_context>

<pallas_src>
import functools

import jax
import jax.numpy as jnp
import numpy as np
from jax import lax
from jax.experimental import pallas as pl
from jax.experimental.pallas import tpu as pltpu


def _round_up(x, m):
    return (x + m - 1) // m * m


# ----------------------------------------------------------------------------
# Fused kernel: embed_compose_{l,r} (Linear+Tanh) + hoisted x@W_ih gate
# projections + bidirectional LSTMCell recurrence writing directly into out.
# ----------------------------------------------------------------------------
def _char_encoder_kernel(xl_ref, xr_ref,
                         wcl_ref, bcl_ref, wcr_ref, bcr_ref,
                         wih_l_ref, wih_r_ref, whh_ref,
                         b_l_ref, b_r_ref,
                         out_ref,
                         gxl_ref, gxr_ref,
                         *, S, Bp, Hp):
    f32 = jnp.float32

    # ---- Stage 1: all-timestep matmuls on the MXU (hoisted out of the loop).
    #   emb = tanh(x @ W_comp + b_comp)            (S*Bp, E)
    #   gx  = emb @ W_ih + (b_ih + b_hh)           (S*Bp, 4Hp)
    emb_l = jnp.tanh(
        jnp.dot(xl_ref[...], wcl_ref[...], preferred_element_type=f32)
        + bcl_ref[...])
    emb_r = jnp.tanh(
        jnp.dot(xr_ref[...], wcr_ref[...], preferred_element_type=f32)
        + bcr_ref[...])
    gxl_ref[...] = jnp.dot(emb_l, wih_l_ref[...],
                           preferred_element_type=f32) + b_l_ref[...]
    gxr_ref[...] = jnp.dot(emb_r, wih_r_ref[...],
                           preferred_element_type=f32) + b_r_ref[...]

    whh = whh_ref[...]   # (Hp, 8*Hp) = [W_hh_l | W_hh_r], hoisted out of loop.

    def gates(g, c):
        # One lane-dense sigmoid over the whole (Bp, 4Hp) gate vector; slice
        # i/f/o out of it.  One tanh on the cell-gate slice, one on c_new.
        sig = jax.nn.sigmoid(g)
        i = sig[:, 0 * Hp:1 * Hp]
        f = sig[:, 1 * Hp:2 * Hp]
        o = sig[:, 3 * Hp:4 * Hp]
        gg = jnp.tanh(g[:, 2 * Hp:3 * Hp])
        c_new = f * c + i * gg
        h_new = o * jnp.tanh(c_new)
        return h_new, c_new

    # ---- Stage 2: sequential recurrence over VMEM-resident state.
    def step(t, carry):
        h_l, c_l, h_r, c_r = carry
        rt = S - 1 - t                                       # backward position
        off_f = pl.multiple_of(t * Bp, Bp)
        off_b = pl.multiple_of(rt * Bp, Bp)
        gxl_t = gxl_ref[pl.ds(off_f, Bp), :]                 # (Bp, 4Hp)
        gxr_t = gxr_ref[pl.ds(off_b, Bp), :]                 # (Bp, 4Hp)

        # Single fused MXU issue for both directions.
        h_both = jnp.concatenate([h_l, h_r], axis=0)             # (2Bp, Hp)
        g_both = jnp.dot(h_both, whh, preferred_element_type=f32)  # (2Bp, 8Hp)
        g_l = gxl_t + g_both[0:Bp, 0:4 * Hp]
        g_r = gxr_t + g_both[Bp:2 * Bp, 4 * Hp:8 * Hp]

        h_l, c_l = gates(g_l, c_l)
        h_r, c_r = gates(g_r, c_r)

        # Direct, lane-aligned writes into the output (no hl/hr scratch).
        out_ref[pl.ds(off_f, Bp), pl.ds(0, Hp)] = h_l        # forward hidden @ t
        out_ref[pl.ds(off_b, Bp), pl.ds(Hp, Hp)] = h_r       # backward hidden @ rt
        return (h_l, c_l, h_r, c_r)

    z = jnp.zeros((Bp, Hp), f32)
    lax.fori_loop(0, S, step, (z, z, z, z), unroll=min(int(S), 8))


def char_encoder_fused(xl2d, xr2d, pp, S, Bp, Hp):
    """xl2d/xr2d: (S*Bp, Din) f32. Returns (S*Bp, 2*Hp) f32."""
    Din = xl2d.shape[1]
    E = pp["w_comp_l"].shape[1]
    fb = 4  # bytes per f32
    footprint = (2 * S * Bp * Din * fb                 # xl, xr inputs
                 + 2 * Din * E * fb + 2 * E * fb       # compose weights/bias
                 + 2 * E * 4 * Hp * fb                 # W_ih (both dirs)
                 + Hp * 8 * Hp * fb                    # fused W_hh
                 + 2 * 4 * Hp * fb                     # gate biases
                 + 2 * S * Bp * 4 * Hp * fb            # gx scratch
                 + S * Bp * 2 * Hp * fb)               # output
    vmem_limit = int(min(64 * 1024 * 1024, 2 * footprint + (1 << 20)))

    kernel = functools.partial(_char_encoder_kernel, S=S, Bp=Bp, Hp=Hp)
    return pl.pallas_call(
        kernel,
        out_shape=jax.ShapeDtypeStruct((S * Bp, 2 * Hp), jnp.float32),
        scratch_shapes=[
            pltpu.VMEM((S * Bp, 4 * Hp), jnp.float32),   # gx forward
            pltpu.VMEM((S * Bp, 4 * Hp), jnp.float32),   # gx backward
        ],
        compiler_params=pltpu.CompilerParams(vmem_limit_bytes=vmem_limit),
    )(xl2d, xr2d,
      pp["w_comp_l"], pp["b_comp_l"], pp["w_comp_r"], pp["b_comp_r"],
      pp["wih_l"], pp["wih_r"], pp["whh_both"],
      pp["b_l"], pp["b_r"])


# ----------------------------------------------------------------------------
# Weight padding: place each gate block at a 128-lane boundary (k*Hp) and pad
# the hidden contraction dim to Hp.  Padded columns/rows are exact zeros, so
# padded hidden/cell state stays identically zero and real values are exact.
# ----------------------------------------------------------------------------
def _pad_gate_cols(w, H, Hp):
    parts = jnp.split(w, 4, axis=-1)
    pad_cfg = [(0, 0)] * (w.ndim - 1) + [(0, Hp - H)]
    return jnp.concatenate([jnp.pad(p, pad_cfg) for p in parts], axis=-1)


def pad_params_for_kernel(params, H, Hp):
    pp = {
        "w_comp_l": params["w_comp_l"], "b_comp_l": params["b_comp_l"],
        "w_comp_r": params["w_comp_r"], "b_comp_r": params["b_comp_r"],
        "wih_l": _pad_gate_cols(params["wih_l"], H, Hp),
        "wih_r": _pad_gate_cols(params["wih_r"], H, Hp),
        "b_l": _pad_gate_cols(params["b_l"], H, Hp),
        "b_r": _pad_gate_cols(params["b_r"], H, Hp),
    }
    whh_l = _pad_gate_cols(jnp.pad(params["whh_l"], ((0, Hp - H), (0, 0))), H, Hp)
    whh_r = _pad_gate_cols(jnp.pad(params["whh_r"], ((0, Hp - H), (0, 0))), H, Hp)
    pp["whh_both"] = jnp.concatenate([whh_l, whh_r], axis=1)   # (Hp, 8*Hp)
    return pp


# ----------------------------------------------------------------------------
# Parameter construction (deterministic, synthetic — shapes from __init__)
# ----------------------------------------------------------------------------
def xavier_uniform(key, shape):
    fan_in, fan_out = shape[0], shape[1]
    bound = float(np.sqrt(6.0 / (fan_in + fan_out)))
    return jax.random.uniform(key, shape, jnp.float32, -bound, bound)


def make_params(key, cfg):
    ks = jax.random.split(key, 16)
    Dc, Dcn = cfg["char_embed_dim"], cfg["char_embed_dim_no_static"]
    Db, Dbn = cfg["bichar_embed_dim"], cfg["bichar_embed_dim_no_static"]
    E, H = cfg["encoder_embed_dim"], cfg["encoder_lstm_hid_size"]
    Din = Dc + Dcn + Db + Dbn

    p = {}
    # embedding tables ("pretrained" static + xavier no_static)
    p["char_static"] = 0.1 * jax.random.normal(ks[0], (cfg["char_embed_num"], Dc), jnp.float32)
    p["char_ns"] = xavier_uniform(ks[1], (cfg["char_embed_num"], Dcn))
    p["bichar_static"] = 0.1 * jax.random.normal(ks[2], (cfg["bichar_embed_num"], Db), jnp.float32)
    p["bichar_ns"] = xavier_uniform(ks[3], (cfg["bichar_embed_num"], Dbn))

    # embed_compose_{l,r}: Linear(Din -> E) + Tanh   (stored as (Din, E))
    p["w_comp_l"] = xavier_uniform(ks[4], (E, Din)).T
    p["b_comp_l"] = jax.random.uniform(ks[5], (1, E), jnp.float32, 0.0, 1.0)
    p["w_comp_r"] = xavier_uniform(ks[6], (E, Din)).T
    p["b_comp_r"] = jax.random.uniform(ks[7], (1, E), jnp.float32, 0.0, 1.0)

    # LSTMCells: weight_ih (4H, E), weight_hh (4H, H) — stored transposed.
    # bias = bias_ih + bias_hh (both uniform(0,1)), pre-summed.
    p["wih_l"] = xavier_uniform(ks[8], (4 * H, E)).T
    p["whh_l"] = xavier_uniform(ks[9], (4 * H, H)).T
    p["b_l"] = (jax.random.uniform(ks[10], (1, 4 * H), jnp.float32, 0.0, 1.0)
                + jax.random.uniform(ks[11], (1, 4 * H), jnp.float32, 0.0, 1.0))
    p["wih_r"] = xavier_uniform(ks[12], (4 * H, E)).T
    p["whh_r"] = xavier_uniform(ks[13], (4 * H, H)).T
    p["b_r"] = (jax.random.uniform(ks[14], (1, 4 * H), jnp.float32, 0.0, 1.0)
                + jax.random.uniform(ks[15], (1, 4 * H), jnp.float32, 0.0, 1.0))
    return p


# ----------------------------------------------------------------------------
# Full forward (embedding-lookup glue in plain JAX, hot path in one Pallas call)
# ----------------------------------------------------------------------------
def char_encoder_forward(params, insts_char, insts_bichar_l, insts_bichar_r):
    B, S = insts_char.shape
    H = params["whh_l"].shape[0]
    Bp = _round_up(B, 8)       # sublane-aligned batch slabs
    Hp = _round_up(H, 128)     # lane-aligned gate / hidden blocks

    # TODO(synk): fuse the embedding gather/concat into the kernel via
    # PrefetchScalarGridSpec scalar-prefetch + DMA gather; currently XLA.
    def emb(table, ids):
        return jnp.take(table, ids, axis=0).transpose(1, 0, 2).astype(jnp.float32)

    char_emb = jnp.concatenate(
        [emb(params["char_static"], insts_char), emb(params["char_ns"], insts_char)], axis=2)
    bichar_l_emb = jnp.concatenate(
        [emb(params["bichar_static"], insts_bichar_l), emb(params["bichar_ns"], insts_bichar_l)], axis=2)
    bichar_r_emb = jnp.concatenate(
        [emb(params["bichar_static"], insts_bichar_r), emb(params["bichar_ns"], insts_bichar_r)], axis=2)

    xl = jnp.concatenate([char_emb, bichar_l_emb], axis=2)   # (S, B, Din)
    xr = jnp.concatenate([char_emb, bichar_r_emb], axis=2)   # (S, B, Din)
    Din = xl.shape[-1]

    # Pad batch so every per-timestep slab is whole sublane tiles.
    xl_p = jnp.pad(xl, ((0, 0), (0, Bp - B), (0, 0)))
    xr_p = jnp.pad(xr, ((0, 0), (0, Bp - B), (0, 0)))

    pp = pad_params_for_kernel(params, H, Hp)
    out2d = char_encoder_fused(xl_p.reshape(S * Bp, Din),
                               xr_p.reshape(S * Bp, Din), pp, S, Bp, Hp)

    out = out2d.reshape(S, Bp, 2 * Hp)[:, :B, :]
    # Strip the lane padding: forward hidden lives in [0:H], backward in [Hp:Hp+H].
    return jnp.concatenate([out[..., 0:H], out[..., Hp:Hp + H]], axis=-1)


# ----------------------------------------------------------------------------
# Pure-JAX reference for correctness checking
# ----------------------------------------------------------------------------
def reference_forward(params, insts_char, insts_bichar_l, insts_bichar_r):
    B, S = insts_char.shape

    def emb(table, ids):
        return jnp.take(table, ids, axis=0).transpose(1, 0, 2).astype(jnp.float32)

    char_emb = jnp.concatenate(
        [emb(params["char_static"], insts_char), emb(params["char_ns"], insts_char)], axis=2)
    bl = jnp.concatenate(
        [emb(params["bichar_static"], insts_bichar_l), emb(params["bichar_ns"], insts_bichar_l)], axis=2)
    br = jnp.concatenate(
        [emb(params["bichar_static"], insts_bichar_r), emb(params["bichar_ns"], insts_bichar_r)], axis=2)

    emb_l = jnp.tanh(jnp.concatenate([char_emb, bl], 2) @ params["w_comp_l"] + params["b_comp_l"])
    emb_r = jnp.tanh(jnp.concatenate([char_emb, br], 2) @ params["w_comp_r"] + params["b_comp_r"])

    H = params["whh_l"].shape[0]

    def cell(x, h, c, wih, whh, b):
        g = x @ wih + h @ whh + b
        i, f, gg, o = jnp.split(g, 4, axis=-1)
        c_new = jax.nn.sigmoid(f) * c + jax.nn.sigmoid(i) * jnp.tanh(gg)
        h_new = jax.nn.sigmoid(o) * jnp.tanh(c_new)
        return h_new, c_new

    def scan_dir(embs, wih, whh, b):
        def step(carry, x):
            h, c = carry
            h, c = cell(x, h, c, wih, whh, b)
            return (h, c), h
        init = (jnp.zeros((B, H), jnp.float32), jnp.zeros((B, H), jnp.float32))
        _, hs = lax.scan(step, init, embs)
        return hs

    hs_l = scan_dir(emb_l, params["wih_l"], params["whh_l"], params["b_l"])          # (S,B,H)
    hs_r_rev = scan_dir(emb_r[::-1], params["wih_r"], params["whh_r"], params["b_r"])
    hs_r = hs_r_rev[::-1]                                                            # backward hidden at pos i
    return jnp.concatenate([hs_l, hs_r], axis=2)


# ----------------------------------------------------------------------------
if __name__ == "__main__":
    cfg = dict(
        char_embed_num=20, char_embed_dim=16, char_embed_dim_no_static=8,
        bichar_embed_num=30, bichar_embed_dim=16, bichar_embed_dim_no_static=8,
        encoder_embed_dim=32, encoder_lstm_hid_size=32,
    )
    B, S = 2, 8

    key = jax.random.PRNGKey(0)
    kp, k1, k2, k3 = jax.random.split(key, 4)
    params = make_params(kp, cfg)

    insts_char = jax.random.randint(k1, (B, S), 0, cfg["char_embed_num"], jnp.int32)
    insts_bichar_l = jax.random.randint(k2, (B, S), 0, cfg["bichar_embed_num"], jnp.int32)
    insts_bichar_r = jax.random.randint(k3, (B, S), 0, cfg["bichar_embed_num"], jnp.int32)

    out = char_encoder_forward(params, insts_char, insts_bichar_l, insts_bichar_r)
    out = jax.block_until_ready(out)

    ref = reference_forward(params, insts_char, insts_bichar_l, insts_bichar_r)
    ref = jax.block_until_ready(ref)

    assert out.shape == (S, B, 2 * cfg["encoder_lstm_hid_size"]), out.shape
    np.testing.assert_allclose(np.asarray(out), np.asarray(ref), rtol=1e-5, atol=1e-5)

    print("KERNEL_OK")
</pallas_src>

<mosaic_0001>
module attributes {stable_mosaic.version = 11 : i64} {
  func.func @_char_encoder_kernel(%arg0: memref<64x48xf32, #tpu.memory_space<vmem>>, %arg1: memref<64x48xf32, #tpu.memory_space<vmem>>, %arg2: memref<48x32xf32, #tpu.memory_space<vmem>>, %arg3: memref<1x32xf32, #tpu.memory_space<vmem>>, %arg4: memref<48x32xf32, #tpu.memory_space<vmem>>, %arg5: memref<1x32xf32, #tpu.memory_space<vmem>>, %arg6: memref<32x512xf32, #tpu.memory_space<vmem>>, %arg7: memref<32x512xf32, #tpu.memory_space<vmem>>, %arg8: memref<128x1024xf32, #tpu.memory_space<vmem>>, %arg9: memref<1x512xf32, #tpu.memory_space<vmem>>, %arg10: memref<1x512xf32, #tpu.memory_space<vmem>>, %arg11: memref<64x256xf32, #tpu.memory_space<vmem>>, %arg12: memref<64x512xf32, #tpu.memory_space<vmem>>, %arg13: memref<64x512xf32, #tpu.memory_space<vmem>>) attributes {dimension_semantics = [], scalar_prefetch = 0 : i64, scratch_operands = 2 : i64, tpu.core_type = #tpu.core_type<tc>} {
    %c0 = arith.constant 0 : index
    %c0_0 = arith.constant 0 : index
    %0 = vector.load %arg0[%c0, %c0_0] : memref<64x48xf32, #tpu.memory_space<vmem>>, vector<64x48xf32>
    %c0_1 = arith.constant 0 : index
    %c0_2 = arith.constant 0 : index
    %1 = vector.load %arg2[%c0_1, %c0_2] : memref<48x32xf32, #tpu.memory_space<vmem>>, vector<48x32xf32>
    %cst = arith.constant dense<0.000000e+00> : vector<64x32xf32>
    %2 = tpu.matmul %0, %1, %cst {dimension_numbers = #tpu.dot_dimension_numbers<[1], [0], [0], [1], [0, 0, 1, 1], [], []>} : vector<64x48xf32>, vector<48x32xf32>, vector<64x32xf32> -> vector<64x32xf32>
    %c0_3 = arith.constant 0 : index
    %c0_4 = arith.constant 0 : index
    %3 = vector.load %arg3[%c0_3, %c0_4] : memref<1x32xf32, #tpu.memory_space<vmem>>, vector<1x32xf32>
    %4 = vector.broadcast %3 : vector<1x32xf32> to vector<64x32xf32>
    %5 = arith.addf %2, %4 : vector<64x32xf32>
    %6 = math.tanh %5 : vector<64x32xf32>
    %c0_5 = arith.constant 0 : index
    %c0_6 = arith.constant 0 : index
    %7 = vector.load %arg1[%c0_5, %c0_6] : memref<64x48xf32, #tpu.memory_space<vmem>>, vector<64x48xf32>
    %c0_7 = arith.constant 0 : index
    %c0_8 = arith.constant 0 : index
    %8 = vector.load %arg4[%c0_7, %c0_8] : memref<48x32xf32, #tpu.memory_space<vmem>>, vector<48x32xf32>
    %cst_9 = arith.constant dense<0.000000e+00> : vector<64x32xf32>
    %9 = tpu.matmul %7, %8, %cst_9 {dimension_numbers = #tpu.dot_dimension_numbers<[1], [0], [0], [1], [0, 0, 1, 1], [], []>} : vector<64x48xf32>, vector<48x32xf32>, vector<64x32xf32> -> vector<64x32xf32>
    %c0_10 = arith.constant 0 : index
    %c0_11 = arith.constant 0 : index
    %10 = vector.load %arg5[%c0_10, %c0_11] : memref<1x32xf32, #tpu.memory_space<vmem>>, vector<1x32xf32>
    %11 = vector.broadcast %10 : vector<1x32xf32> to vector<64x32xf32>
    %12 = arith.addf %9, %11 : vector<64x32xf32>
    %13 = math.tanh %12 : vector<64x32xf32>
    %c0_12 = arith.constant 0 : index
    %c0_13 = arith.constant 0 : index
    %14 = vector.load %arg6[%c0_12, %c0_13] : memref<32x512xf32, #tpu.memory_space<vmem>>, vector<32x512xf32>
    %cst_14 = arith.constant dense<0.000000e+00> : vector<64x512xf32>
    %15 = tpu.matmul %6, %14, %cst_14 {dimension_numbers = #tpu.dot_dimension_numbers<[1], [0], [0], [1], [0, 0, 1, 1], [], []>} : vector<64x32xf32>, vector<32x512xf32>, vector<64x512xf32> -> vector<64x512xf32>
    %c0_15 = arith.constant 0 : index
    %c0_16 = arith.constant 0 : index
    %16 = vector.load %arg9[%c0_15, %c0_16] : memref<1x512xf32, #tpu.memory_space<vmem>>, vector<1x512xf32>
    %17 = vector.broadcast %16 : vector<1x512xf32> to vector<64x512xf32>
    %18 = arith.addf %15, %17 : vector<64x512xf32>
    %c0_17 = arith.constant 0 : index
    %c0_18 = arith.constant 0 : index
    %19 = vector.load %arg12[%c0_17, %c0_18] : memref<64x512xf32, #tpu.memory_space<vmem>>, vector<64x512xf32>
    tpu.vector_store %arg12[%c0_17, %c0_18], %18 {strides = array<i32>} : memref<64x512xf32, #tpu.memory_space<vmem>>, vector<64x512xf32>,
    %c0_19 = arith.constant 0 : index
    %c0_20 = arith.constant 0 : index
    %20 = vector.load %arg7[%c0_19, %c0_20] : memref<32x512xf32, #tpu.memory_space<vmem>>, vector<32x512xf32>
    %cst_21 = arith.constant dense<0.000000e+00> : vector<64x512xf32>
    %21 = tpu.matmul %13, %20, %cst_21 {dimension_numbers = #tpu.dot_dimension_numbers<[1], [0], [0], [1], [0, 0, 1, 1], [], []>} : vector<64x32xf32>, vector<32x512xf32>, vector<64x512xf32> -> vector<64x512xf32>
    %c0_22 = arith.constant 0 : index
    %c0_23 = arith.constant 0 : index
    %22 = vector.load %arg10[%c0_22, %c0_23] : memref<1x512xf32, #tpu.memory_space<vmem>>, vector<1x512xf32>
    %23 = vector.broadcast %22 : vector<1x512xf32> to vector<64x512xf32>
    %24 = arith.addf %21, %23 : vector<64x512xf32>
    %c0_24 = arith.constant 0 : index
    %c0_25 = arith.constant 0 : index
    %25 = vector.load %arg13[%c0_24, %c0_25] : memref<64x512xf32, #tpu.memory_space<vmem>>, vector<64x512xf32>
    tpu.vector_store %arg13[%c0_24, %c0_25], %24 {strides = array<i32>} : memref<64x512xf32, #tpu.memory_space<vmem>>, vector<64x512xf32>,
    %c0_26 = arith.constant 0 : index
    %c0_27 = arith.constant 0 : index
    %26 = vector.load %arg8[%c0_26, %c0_27] : memref<128x1024xf32, #tpu.memory_space<vmem>>, vector<128x1024xf32>
    %cst_28 = arith.constant 0.000000e+00 : f32
    %27 = vector.broadcast %cst_28 : f32 to vector<8x128xf32>
    %c0_i32 = arith.constant 0 : i32
    %c7_i32 = arith.constant 7 : i32
    %28 = arith.subi %c7_i32, %c0_i32 : i32
    %c8_i32 = arith.constant 8 : i32
    %29 = arith.muli %c0_i32, %c8_i32 : i32
    %30 = tpu.assume_multiple %29, 8 : i32
    %c8_i32_29 = arith.constant 8 : i32
    %31 = arith.muli %28, %c8_i32_29 : i32
    %32 = tpu.assume_multiple %31, 8 : i32
    %33 = arith.index_cast %30 : i32 to index
    %c0_30 = arith.constant 0 : index
    %34 = vector.load %arg12[%33, %c0_30] : memref<64x512xf32, #tpu.memory_space<vmem>>, vector<8x512xf32>
    %35 = arith.index_cast %32 : i32 to index
    %c0_31 = arith.constant 0 : index
    %36 = vector.load %arg13[%35, %c0_31] : memref<64x512xf32, #tpu.memory_space<vmem>>, vector<8x512xf32>
    %37 = tpu.concatenate %27, %27 in 0 : vector<8x128xf32>, vector<8x128xf32> -> vector<16x128xf32>
    %cst_32 = arith.constant dense<0.000000e+00> : vector<16x1024xf32>
    %38 = tpu.matmul %37, %26, %cst_32 {dimension_numbers = #tpu.dot_dimension_numbers<[1], [0], [0], [1], [0, 0, 1, 1], [], []>} : vector<16x128xf32>, vector<128x1024xf32>, vector<16x1024xf32> -> vector<16x1024xf32>
    %39 = vector.extract_strided_slice %38 {offsets = [0, 0], sizes = [8, 512], strides = [1, 1]} : vector<16x1024xf32> to vector<8x512xf32>
    %40 = arith.addf %34, %39 : vector<8x512xf32>
    %41 = vector.extract_strided_slice %38 {offsets = [8, 512], sizes = [8, 512], strides = [1, 1]} : vector<16x1024xf32> to vector<8x512xf32>
    %42 = arith.addf %36, %41 : vector<8x512xf32>
    %43 = arith.negf %40 : vector<8x512xf32>
    %44 = math.exp %43 : vector<8x512xf32>
    %cst_33 = arith.constant 1.000000e+00 : f32
    %45 = vector.broadcast %cst_33 : f32 to vector<8x512xf32>
    %46 = arith.addf %45, %44 : vector<8x512xf32>
    %47 = arith.divf %45, %46 : vector<8x512xf32>
    %48 = vector.extract_strided_slice %47 {offsets = [0, 0], sizes = [8, 128], strides = [1, 1]} : vector<8x512xf32> to vector<8x128xf32>
    %49 = vector.extract_strided_slice %47 {offsets = [0, 128], sizes = [8, 128], strides = [1, 1]} : vector<8x512xf32> to vector<8x128xf32>
    %50 = vector.extract_strided_slice %47 {offsets = [0, 384], sizes = [8, 128], strides = [1, 1]} : vector<8x512xf32> to vector<8x128xf32>
    %51 = vector.extract_strided_slice %40 {offsets = [0, 256], sizes = [8, 128], strides = [1, 1]} : vector<8x512xf32> to vector<8x128xf32>
    %52 = math.tanh %51 : vector<8x128xf32>
    %53 = arith.mulf %49, %27 : vector<8x128xf32>
    %54 = arith.mulf %48, %52 : vector<8x128xf32>
    %55 = arith.addf %53, %54 : vector<8x128xf32>
    %56 = math.tanh %55 : vector<8x128xf32>
    %57 = arith.mulf %50, %56 : vector<8x128xf32>
    %58 = arith.negf %42 : vector<8x512xf32>
    %59 = math.exp %58 : vector<8x512xf32>
    %cst_34 = arith.constant 1.000000e+00 : f32
    %60 = vector.broadcast %cst_34 : f32 to vector<8x512xf32>
    %61 = arith.addf %60, %59 : vector<8x512xf32>
    %62 = arith.divf %60, %61 : vector<8x512xf32>
    %63 = vector.extract_strided_slice %62 {offsets = [0, 0], sizes = [8, 128], strides = [1, 1]} : vector<8x512xf32> to vector<8x128xf32>
    %64 = vector.extract_strided_slice %62 {offsets = [0, 128], sizes = [8, 128], strides = [1, 1]} : vector<8x512xf32> to vector<8x128xf32>
    %65 = vector.extract_strided_slice %62 {offsets = [0, 384], sizes = [8, 128], strides = [1, 1]} : vector<8x512xf32> to vector<8x128xf32>
    %66 = vector.extract_strided_slice %42 {offsets = [0, 256], sizes = [8, 128], strides = [1, 1]} : vector<8x512xf32> to vector<8x128xf32>
    %67 = math.tanh %66 : vector<8x128xf32>
    %68 = arith.mulf %64, %27 : vector<8x128xf32>
    %69 = arith.mulf %63, %67 : vector<8x128xf32>
    %70 = arith.addf %68, %69 : vector<8x128xf32>
    %71 = math.tanh %70 : vector<8x128xf32>
    %72 = arith.mulf %65, %71 : vector<8x128xf32>
    %73 = arith.index_cast %30 : i32 to index
    %c0_35 = arith.constant 0 : index
    %74 = vector.load %arg11[%73, %c0_35] : memref<64x256xf32, #tpu.memory_space<vmem>>, vector<8x128xf32>
    tpu.vector_store %arg11[%73, %c0_35], %57 {strides = array<i32>} : memref<64x256xf32, #tpu.memory_space<vmem>>, vector<8x128xf32>,
    %75 = arith.index_cast %32 : i32 to index
    %c128 = arith.constant 128 : index
    %76 = vector.load %arg11[%75, %c128] : memref<64x256xf32, #tpu.memory_space<vmem>>, vector<8x128xf32>
    tpu.vector_store %arg11[%75, %c128], %72 {strides = array<i32>} : memref<64x256xf32, #tpu.memory_space<vmem>>, vector<8x128xf32>,
    %c1_i32 = arith.constant 1 : i32
    %c7_i32_36 = arith.constant 7 : i32
    %77 = arith.subi %c7_i32_36, %c1_i32 : i32
    %c8_i32_37 = arith.constant 8 : i32
    %78 = arith.muli %c1_i32, %c8_i32_37 : i32
    %79 = tpu.assume_multiple %78, 8 : i32
    %c8_i32_38 = arith.constant 8 : i32
    %80 = arith.muli %77, %c8_i32_38 : i32
    %81 = tpu.assume_multiple %80, 8 : i32
    %82 = arith.index_cast %79 : i32 to index
    %c0_39 = arith.constant 0 : index
    %83 = vector.load %arg12[%82, %c0_39] : memref<64x512xf32, #tpu.memory_space<vmem>>, vector<8x512xf32>
    %84 = arith.index_cast %81 : i32 to index
    %c0_40 = arith.constant 0 : index
    %85 = vector.load %arg13[%84, %c0_40] : memref<64x512xf32, #tpu.memory_space<vmem>>, vector<8x512xf32>
    %86 = tpu.concatenate %57, %72 in 0 : vector<8x128xf32>, vector<8x128xf32> -> vector<16x128xf32>
    %cst_41 = arith.constant dense<0.000000e+00> : vector<16x1024xf32>
    %87 = tpu.matmul %86, %26, %cst_41 {dimension_numbers = #tpu.dot_dimension_numbers<[1], [0], [0], [1], [0, 0, 1, 1], [], []>} : vector<16x128xf32>, vector<128x1024xf32>, vector<16x1024xf32> -> vector<16x1024xf32>
    %88 = vector.extract_strided_slice %87 {offsets = [0, 0], sizes = [8, 512], strides = [1, 1]} : vector<16x1024xf32> to vector<8x512xf32>
    %89 = arith.addf %83, %88 : vector<8x512xf32>
    %90 = vector.extract_strided_slice %87 {offsets = [8, 512], sizes = [8, 512], strides = [1, 1]} : vector<16x1024xf32> to vector<8x512xf32>
    %91 = arith.addf %85, %90 : vector<8x512xf32>
    %92 = arith.negf %89 : vector<8x512xf32>
    %93 = math.exp %92 : vector<8x512xf32>
    %cst_42 = arith.constant 1.000000e+00 : f32
    %94 = vector.broadcast %cst_42 : f32 to vector<8x512xf32>
    %95 = arith.addf %94, %93 : vector<8x512xf32>
    %96 = arith.divf %94, %95 : vector<8x512xf32>
    %97 = vector.extract_strided_slice %96 {offsets = [0, 0], sizes = [8, 128], strides = [1, 1]} : vector<8x512xf32> to vector<8x128xf32>
    %98 = vector.extract_strided_slice %96 {offsets = [0, 128], sizes = [8, 128], strides = [1, 1]} : vector<8x512xf32> to vector<8x128xf32>
    %99 = vector.extract_strided_slice %96 {offsets = [0, 384], sizes = [8, 128], strides = [1, 1]} : vector<8x512xf32> to vector<8x128xf32>
    %100 = vector.extract_strided_slice %89 {offsets = [0, 256], sizes = [8, 128], strides = [1, 1]} : vector<8x512xf32> to vector<8x128xf32>
    %101 = math.tanh %100 : vector<8x128xf32>
    %102 = arith.mulf %98, %55 : vector<8x128xf32>
    %103 = arith.mulf %97, %101 : vector<8x128xf32>
    %104 = arith.addf %102, %103 : vector<8x128xf32>
    %105 = math.tanh %104 : vector<8x128xf32>
    %106 = arith.mulf %99, %105 : vector<8x128xf32>
    %107 = arith.negf %91 : vector<8x512xf32>
    %108 = math.exp %107 : vector<8x512xf32>
    %cst_43 = arith.constant 1.000000e+00 : f32
    %109 = vector.broadcast %cst_43 : f32 to vector<8x512xf32>
    %110 = arith.addf %109, %108 : vector<8x512xf32>
    %111 = arith.divf %109, %110 : vector<8x512xf32>
    %112 = vector.extract_strided_slice %111 {offsets = [0, 0], sizes = [8, 128], strides = [1, 1]} : vector<8x512xf32> to vector<8x128xf32>
    %113 = vector.extract_strided_slice %111 {offsets = [0, 128], sizes = [8, 128], strides = [1, 1]} : vector<8x512xf32> to vector<8x128xf32>
    %114 = vector.extract_strided_slice %111 {offsets = [0, 384], sizes = [8, 128], strides = [1, 1]} : vector<8x512xf32> to vector<8x128xf32>
    %115 = vector.extract_strided_slice %91 {offsets = [0, 256], sizes = [8, 128], strides = [1, 1]} : vector<8x512xf32> to vector<8x128xf32>
    %116 = math.tanh %115 : vector<8x128xf32>
    %117 = arith.mulf %113, %70 : vector<8x128xf32>
    %118 = arith.mulf %112, %116 : vector<8x128xf32>
    %119 = arith.addf %117, %118 : vector<8x128xf32>
    %120 = math.tanh %119 : vector<8x128xf32>
    %121 = arith.mulf %114, %120 : vector<8x128xf32>
    %122 = arith.index_cast %79 : i32 to index
    %c0_44 = arith.constant 0 : index
    %123 = vector.load %arg11[%122, %c0_44] : memref<64x256xf32, #tpu.memory_space<vmem>>, vector<8x128xf32>
    tpu.vector_store %arg11[%122, %c0_44], %106 {strides = array<i32>} : memref<64x256xf32, #tpu.memory_space<vmem>>, vector<8x128xf32>,
    %124 = arith.index_cast %81 : i32 to index
    %c128_45 = arith.constant 128 : index
    %125 = vector.load %arg11[%124, %c128_45] : memref<64x256xf32, #tpu.memory_space<vmem>>, vector<8x128xf32>
    tpu.vector_store %arg11[%124, %c128_45], %121 {strides = array<i32>} : memref<64x256xf32, #tpu.memory_space<vmem>>, vector<8x128xf32>,
    %c2_i32 = arith.constant 2 : i32
    %c7_i32_46 = arith.constant 7 : i32
    %126 = arith.subi %c7_i32_46, %c2_i32 : i32
    %c8_i32_47 = arith.constant 8 : i32
    %127 = arith.muli %c2_i32, %c8_i32_47 : i32
    %128 = tpu.assume_multiple %127, 8 : i32
    %c8_i32_48 = arith.constant 8 : i32
    %129 = arith.muli %126, %c8_i32_48 : i32
    %130 = tpu.assume_multiple %129, 8 : i32
    %131 = arith.index_cast %128 : i32 to index
    %c0_49 = arith.constant 0 : index
    %132 = vector.load %arg12[%131, %c0_49] : memref<64x512xf32, #tpu.memory_space<vmem>>, vector<8x512xf32>
    %133 = arith.index_cast %130 : i32 to index
    %c0_50 = arith.constant 0 : index
    %134 = vector.load %arg13[%133, %c0_50] : memref<64x512xf32, #tpu.memory_space<vmem>>, vector<8x512xf32>
    %135 = tpu.concatenate %106, %121 in 0 : vector<8x128xf32>, vector<8x128xf32> -> vector<16x128xf32>
    %cst_51 = arith.constant dense<0.000000e+00> : vector<16x1024xf32>
    %136 = tpu.matmul %135, %26, %cst_51 {dimension_numbers = #tpu.dot_dimension_numbers<[1], [0], [0], [1], [0, 0, 1, 1], [], []>} : vector<16x128xf32>, vector<128x1024xf32>, vector<16x1024xf32> -> vector<16x1024xf32>
    %137 = vector.extract_strided_slice %136 {offsets = [0, 0], sizes = [8, 512], strides = [1, 1]} : vector<16x1024xf32> to vector<8x512xf32>
    %138 = arith.addf %132, %137 : vector<8x512xf32>
    %139 = vector.extract_strided_slice %136 {offsets = [8, 512], sizes = [8, 512], strides = [1, 1]} : vector<16x1024xf32> to vector<8x512xf32>
    %140 = arith.addf %134, %139 : vector<8x512xf32>
    %141 = arith.negf %138 : vector<8x512xf32>
    %142 = math.exp %141 : vector<8x512xf32>
    %cst_52 = arith.constant 1.000000e+00 : f32
    %143 = vector.broadcast %cst_52 : f32 to vector<8x512xf32>
    %144 = arith.addf %143, %142 : vector<8x512xf32>
    %145 = arith.divf %143, %144 : vector<8x512xf32>
    %146 = vector.extract_strided_slice %145 {offsets = [0, 0], sizes = [8, 128], strides = [1, 1]} : vector<8x512xf32> to vector<8x128xf32>
    %147 = vector.extract_strided_slice %145 {offsets = [0, 128], sizes = [8, 128], strides = [1, 1]} : vector<8x512xf32> to vector<8x128xf32>
    %148 = vector.extract_strided_slice %145 {offsets = [0, 384], sizes = [8, 128], strides = [1, 1]} : vector<8x512xf32> to vector<8x128xf32>
    %149 = vector.extract_strided_slice %138 {offsets = [0, 256], sizes = [8, 128], strides = [1, 1]} : vector<8x512xf32> to vector<8x128xf32>
    %150 = math.tanh %149 : vector<8x128xf32>
    %151 = arith.mulf %147, %104 : vector<8x128xf32>
    %152 = arith.mulf %146, %150 : vector<8x128xf32>
    %153 = arith.addf %151, %152 : vector<8x128xf32>
    %154 = math.tanh %153 : vector<8x128xf32>
    %155 = arith.mulf %148, %154 : vector<8x128xf32>
    %156 = arith.negf %140 : vector<8x512xf32>
    %157 = math.exp %156 : vector<8x512xf32>
    %cst_53 = arith.constant 1.000000e+00 : f32
    %158 = vector.broadcast %cst_53 : f32 to vector<8x512xf32>
    %159 = arith.addf %158, %157 : vector<8x512xf32>
    %160 = arith.divf %158, %159 : vector<8x512xf32>
    %161 = vector.extract_strided_slice %160 {offsets = [0, 0], sizes = [8, 128], strides = [1, 1]} : vector<8x512xf32> to vector<8x128xf32>
    %162 = vector.extract_strided_slice %160 {offsets = [0, 128], sizes = [8, 128], strides = [1, 1]} : vector<8x512xf32> to vector<8x128xf32>
    %163 = vector.extract_strided_slice %160 {offsets = [0, 384], sizes = [8, 128], strides = [1, 1]} : vector<8x512xf32> to vector<8x128xf32>
    %164 = vector.extract_strided_slice %140 {offsets = [0, 256], sizes = [8, 128], strides = [1, 1]} : vector<8x512xf32> to vector<8x128xf32>
    %165 = math.tanh %164 : vector<8x128xf32>
    %166 = arith.mulf %162, %119 : vector<8x128xf32>
    %167 = arith.mulf %161, %165 : vector<8x128xf32>
    %168 = arith.addf %166, %167 : vector<8x128xf32>
    %169 = math.tanh %168 : vector<8x128xf32>
    %170 = arith.mulf %163, %169 : vector<8x128xf32>
    %171 = arith.index_cast %128 : i32 to index
    %c0_54 = arith.constant 0 : index
    %172 = vector.load %arg11[%171, %c0_54] : memref<64x256xf32, #tpu.memory_space<vmem>>, vector<8x128xf32>
    tpu.vector_store %arg11[%171, %c0_54], %155 {strides = array<i32>} : memref<64x256xf32, #tpu.memory_space<vmem>>, vector<8x128xf32>,
    %173 = arith.index_cast %130 : i32 to index
    %c128_55 = arith.constant 128 : index
    %174 = vector.load %arg11[%173, %c128_55] : memref<64x256xf32, #tpu.memory_space<vmem>>, vector<8x128xf32>
    tpu.vector_store %arg11[%173, %c128_55], %170 {strides = array<i32>} : memref<64x256xf32, #tpu.memory_space<vmem>>, vector<8x128xf32>,
    %c3_i32 = arith.constant 3 : i32
    %c7_i32_56 = arith.constant 7 : i32
    %175 = arith.subi %c7_i32_56, %c3_i32 : i32
    %c8_i32_57 = arith.constant 8 : i32
    %176 = arith.muli %c3_i32, %c8_i32_57 : i32
    %177 = tpu.assume_multiple %176, 8 : i32
    %c8_i32_58 = arith.constant 8 : i32
    %178 = arith.muli %175, %c8_i32_58 : i32
    %179 = tpu.assume_multiple %178, 8 : i32
    %180 = arith.index_cast %177 : i32 to index
    %c0_59 = arith.constant 0 : index
    %181 = vector.load %arg12[%180, %c0_59] : memref<64x512xf32, #tpu.memory_space<vmem>>, vector<8x512xf32>
    %182 = arith.index_cast %179 : i32 to index
    %c0_60 = arith.constant 0 : index
    %183 = vector.load %arg13[%182, %c0_60] : memref<64x512xf32, #tpu.memory_space<vmem>>, vector<8x512xf32>
    %184 = tpu.concatenate %155, %170 in 0 : vector<8x128xf32>, vector<8x128xf32> -> vector<16x128xf32>
    %cst_61 = arith.constant dense<0.000000e+00> : vector<16x1024xf32>
    %185 = tpu.matmul %184, %26, %cst_61 {dimension_numbers = #tpu.dot_dimension_numbers<[1], [0], [0], [1], [0, 0, 1, 1], [], []>} : vector<16x128xf32>, vector<128x1024xf32>, vector<16x1024xf32> -> vector<16x1024xf32>
    %186 = vector.extract_strided_slice %185 {offsets = [0, 0], sizes = [8, 512], strides = [1, 1]} : vector<16x1024xf32> to vector<8x512xf32>
    %187 = arith.addf %181, %186 : vector<8x512xf32>
    %188 = vector.extract_strided_slice %185 {offsets = [8, 512], sizes = [8, 512], strides = [1, 1]} : vector<16x1024xf32> to vector<8x512xf32>
    %189 = arith.addf %183, %188 : vector<8x512xf32>
    %190 = arith.negf %187 : vector<8x512xf32>
    %191 = math.exp %190 : vector<8x512xf32>
    %cst_62 = arith.constant 1.000000e+00 : f32
    %192 = vector.broadcast %cst_62 : f32 to vector<8x512xf32>
    %193 = arith.addf %192, %191 : vector<8x512xf32>
    %194 = arith.divf %192, %193 : vector<8x512xf32>
    %195 = vector.extract_strided_slice %194 {offsets = [0, 0], sizes = [8, 128], strides = [1, 1]} : vector<8x512xf32> to vector<8x128xf32>
    %196 = vector.extract_strided_slice %194 {offsets = [0, 128], sizes = [8, 128], strides = [1, 1]} : vector<8x512xf32> to vector<8x128xf32>
    %197 = vector.extract_strided_slice %194 {offsets = [0, 384], sizes = [8, 128], strides = [1, 1]} : vector<8x512xf32> to vector<8x128xf32>
    %198 = vector.extract_strided_slice %187 {offsets = [0, 256], sizes = [8, 128], strides = [1, 1]} : vector<8x512xf32> to vector<8x128xf32>
    %199 = math.tanh %198 : vector<8x128xf32>
    %200 = arith.mulf %196, %153 : vector<8x128xf32>
    %201 = arith.mulf %195, %199 : vector<8x128xf32>
    %202 = arith.addf %200, %201 : vector<8x128xf32>
    %203 = math.tanh %202 : vector<8x128xf32>
    %204 = arith.mulf %197, %203 : vector<8x128xf32>
    %205 = arith.negf %189 : vector<8x512xf32>
    %206 = math.exp %205 : vector<8x512xf32>
    %cst_63 = arith.constant 1.000000e+00 : f32
    %207 = vector.broadcast %cst_63 : f32 to vector<8x512xf32>
    %208 = arith.addf %207, %206 : vector<8x512xf32>
    %209 = arith.divf %207, %208 : vector<8x512xf32>
    %210 = vector.extract_strided_slice %209 {offsets = [0, 0], sizes = [8, 128], strides = [1, 1]} : vector<8x512xf32> to vector<8x128xf32>
    %211 = vector.extract_strided_slice %209 {offsets = [0, 128], sizes = [8, 128], strides = [1, 1]} : vector<8x512xf32> to vector<8x128xf32>
    %212 = vector.extract_strided_slice %209 {offsets = [0, 384], sizes = [8, 128], strides = [1, 1]} : vector<8x512xf32> to vector<8x128xf32>
    %213 = vector.extract_strided_slice %189 {offsets = [0, 256], sizes = [8, 128], strides = [1, 1]} : vector<8x512xf32> to vector<8x128xf32>
    %214 = math.tanh %213 : vector<8x128xf32>
    %215 = arith.mulf %211, %168 : vector<8x128xf32>
    %216 = arith.mulf %210, %214 : vector<8x128xf32>
    %217 = arith.addf %215, %216 : vector<8x128xf32>
    %218 = math.tanh %217 : vector<8x128xf32>
    %219 = arith.mulf %212, %218 : vector<8x128xf32>
    %220 = arith.index_cast %177 : i32 to index
    %c0_64 = arith.constant 0 : index
    %221 = vector.load %arg11[%220, %c0_64] : memref<64x256xf32, #tpu.memory_space<vmem>>, vector<8x128xf32>
    tpu.vector_store %arg11[%220, %c0_64], %204 {strides = array<i32>} : memref<64x256xf32, #tpu.memory_space<vmem>>, vector<8x128xf32>,
    %222 = arith.index_cast %179 : i32 to index
    %c128_65 = arith.constant 128 : index
    %223 = vector.load %arg11[%222, %c128_65] : memref<64x256xf32, #tpu.memory_space<vmem>>, vector<8x128xf32>
    tpu.vector_store %arg11[%222, %c128_65], %219 {strides = array<i32>} : memref<64x256xf32, #tpu.memory_space<vmem>>, vector<8x128xf32>,
    %c4_i32 = arith.constant 4 : i32
    %c7_i32_66 = arith.constant 7 : i32
    %224 = arith.subi %c7_i32_66, %c4_i32 : i32
    %c8_i32_67 = arith.constant 8 : i32
    %225 = arith.muli %c4_i32, %c8_i32_67 : i32
    %226 = tpu.assume_multiple %225, 8 : i32
    %c8_i32_68 = arith.constant 8 : i32
    %227 = arith.muli %224, %c8_i32_68 : i32
    %228 = tpu.assume_multiple %227, 8 : i32
    %229 = arith.index_cast %226 : i32 to index
    %c0_69 = arith.constant 0 : index
    %230 = vector.load %arg12[%229, %c0_69] : memref<64x512xf32, #tpu.memory_space<vmem>>, vector<8x512xf32>
    %231 = arith.index_cast %228 : i32 to index
    %c0_70 = arith.constant 0 : index
    %232 = vector.load %arg13[%231, %c0_70] : memref<64x512xf32, #tpu.memory_space<vmem>>, vector<8x512xf32>
    %233 = tpu.concatenate %204, %219 in 0 : vector<8x128xf32>, vector<8x128xf32> -> vector<16x128xf32>
    %cst_71 = arith.constant dense<0.000000e+00> : vector<16x1024xf32>
    %234 = tpu.matmul %233, %26, %cst_71 {dimension_numbers = #tpu.dot_dimension_numbers<[1], [0], [0], [1], [0, 0, 1, 1], [], []>} : vector<16x128xf32>, vector<128x1024xf32>, vector<16x1024xf32> -> vector<16x1024xf32>
    %235 = vector.extract_strided_slice %234 {offsets = [0, 0], sizes = [8, 512], strides = [1, 1]} : vector<16x1024xf32> to vector<8x512xf32>
    %236 = arith.addf %230, %235 : vector<8x512xf32>
    %237 = vector.extract_strided_slice %234 {offsets = [8, 512], sizes = [8, 512], strides = [1, 1]} : vector<16x1024xf32> to vector<8x512xf32>
    %238 = arith.addf %232, %237 : vector<8x512xf32>
    %239 = arith.negf %236 : vector<8x512xf32>
    %240 = math.exp %239 : vector<8x512xf32>
    %cst_72 = arith.constant 1.000000e+00 : f32
    %241 = vector.broadcast %cst_72 : f32 to vector<8x512xf32>
    %242 = arith.addf %241, %240 : vector<8x512xf32>
    %243 = arith.divf %241, %242 : vector<8x512xf32>
    %244 = vector.extract_strided_slice %243 {offsets = [0, 0], sizes = [8, 128], strides = [1, 1]} : vector<8x512xf32> to vector<8x128xf32>
    %245 = vector.extract_strided_slice %243 {offsets = [0, 128], sizes = [8, 128], strides = [1, 1]} : vector<8x512xf32> to vector<8x128xf32>
    %246 = vector.extract_strided_slice %243 {offsets = [0, 384], sizes = [8, 128], strides = [1, 1]} : vector<8x512xf32> to vector<8x128xf32>
    %247 = vector.extract_strided_slice %236 {offsets = [0, 256], sizes = [8, 128], strides = [1, 1]} : vector<8x512xf32> to vector<8x128xf32>
    %248 = math.tanh %247 : vector<8x128xf32>
    %249 = arith.mulf %245, %202 : vector<8x128xf32>
    %250 = arith.mulf %244, %248 : vector<8x128xf32>
    %251 = arith.addf %249, %250 : vector<8x128xf32>
    %252 = math.tanh %251 : vector<8x128xf32>
    %253 = arith.mulf %246, %252 : vector<8x128xf32>
    %254 = arith.negf %238 : vector<8x512xf32>
    %255 = math.exp %254 : vector<8x512xf32>
    %cst_73 = arith.constant 1.000000e+00 : f32
    %256 = vector.broadcast %cst_73 : f32 to vector<8x512xf32>
    %257 = arith.addf %256, %255 : vector<8x512xf32>
    %258 = arith.divf %256, %257 : vector<8x512xf32>
    %259 = vector.extract_strided_slice %258 {offsets = [0, 0], sizes = [8, 128], strides = [1, 1]} : vector<8x512xf32> to vector<8x128xf32>
    %260 = vector.extract_strided_slice %258 {offsets = [0, 128], sizes = [8, 128], strides = [1, 1]} : vector<8x512xf32> to vector<8x128xf32>
    %261 = vector.extract_strided_slice %258 {offsets = [0, 384], sizes = [8, 128], strides = [1, 1]} : vector<8x512xf32> to vector<8x128xf32>
    %262 = vector.extract_strided_slice %238 {offsets = [0, 256], sizes = [8, 128], strides = [1, 1]} : vector<8x512xf32> to vector<8x128xf32>
    %263 = math.tanh %262 : vector<8x128xf32>
    %264 = arith.mulf %260, %217 : vector<8x128xf32>
    %265 = arith.mulf %259, %263 : vector<8x128xf32>
    %266 = arith.addf %264, %265 : vector<8x128xf32>
    %267 = math.tanh %266 : vector<8x128xf32>
    %268 = arith.mulf %261, %267 : vector<8x128xf32>
    %269 = arith.index_cast %226 : i32 to index
    %c0_74 = arith.constant 0 : index
    %270 = vector.load %arg11[%269, %c0_74] : memref<64x256xf32, #tpu.memory_space<vmem>>, vector<8x128xf32>
    tpu.vector_store %arg11[%269, %c0_74], %253 {strides = array<i32>} : memref<64x256xf32, #tpu.memory_space<vmem>>, vector<8x128xf32>,
    %271 = arith.index_cast %228 : i32 to index
    %c128_75 = arith.constant 128 : index
    %272 = vector.load %arg11[%271, %c128_75] : memref<64x256xf32, #tpu.memory_space<vmem>>, vector<8x128xf32>
    tpu.vector_store %arg11[%271, %c128_75], %268 {strides = array<i32>} : memref<64x256xf32, #tpu.memory_space<vmem>>, vector<8x128xf32>,
    %c5_i32 = arith.constant 5 : i32
    %c7_i32_76 = arith.constant 7 : i32
    %273 = arith.subi %c7_i32_76, %c5_i32 : i32
    %c8_i32_77 = arith.constant 8 : i32
    %274 = arith.muli %c5_i32, %c8_i32_77 : i32
    %275 = tpu.assume_multiple %274, 8 : i32
    %c8_i32_78 = arith.constant 8 : i32
    %276 = arith.muli %273, %c8_i32_78 : i32
    %277 = tpu.assume_multiple %276, 8 : i32
    %278 = arith.index_cast %275 : i32 to index
    %c0_79 = arith.constant 0 : index
    %279 = vector.load %arg12[%278, %c0_79] : memref<64x512xf32, #tpu.memory_space<vmem>>, vector<8x512xf32>
    %280 = arith.index_cast %277 : i32 to index
    %c0_80 = arith.constant 0 : index
    %281 = vector.load %arg13[%280, %c0_80] : memref<64x512xf32, #tpu.memory_space<vmem>>, vector<8x512xf32>
    %282 = tpu.concatenate %253, %268 in 0 : vector<8x128xf32>, vector<8x128xf32> -> vector<16x128xf32>
    %cst_81 = arith.constant dense<0.000000e+00> : vector<16x1024xf32>
    %283 = tpu.matmul %282, %26, %cst_81 {dimension_numbers = #tpu.dot_dimension_numbers<[1], [0], [0], [1], [0, 0, 1, 1], [], []>} : vector<16x128xf32>, vector<128x1024xf32>, vector<16x1024xf32> -> vector<16x1024xf32>
    %284 = vector.extract_strided_slice %283 {offsets = [0, 0], sizes = [8, 512], strides = [1, 1]} : vector<16x1024xf32> to vector<8x512xf32>
    %285 = arith.addf %279, %284 : vector<8x512xf32>
    %286 = vector.extract_strided_slice %283 {offsets = [8, 512], sizes = [8, 512], strides = [1, 1]} : vector<16x1024xf32> to vector<8x512xf32>
    %287 = arith.addf %281, %286 : vector<8x512xf32>
    %288 = arith.negf %285 : vector<8x512xf32>
    %289 = math.exp %288 : vector<8x512xf32>
    %cst_82 = arith.constant 1.000000e+00 : f32
    %290 = vector.broadcast %cst_82 : f32 to vector<8x512xf32>
    %291 = arith.addf %290, %289 : vector<8x512xf32>
    %292 = arith.divf %290, %291 : vector<8x512xf32>
    %293 = vector.extract_strided_slice %292 {offsets = [0, 0], sizes = [8, 128], strides = [1, 1]} : vector<8x512xf32> to vector<8x128xf32>
    %294 = vector.extract_strided_slice %292 {offsets = [0, 128], sizes = [8, 128], strides = [1, 1]} : vector<8x512xf32> to vector<8x128xf32>
    %295 = vector.extract_strided_slice %292 {offsets = [0, 384], sizes = [8, 128], strides = [1, 1]} : vector<8x512xf32> to vector<8x128xf32>
    %296 = vector.extract_strided_slice %285 {offsets = [0, 256], sizes = [8, 128], strides = [1, 1]} : vector<8x512xf32> to vector<8x128xf32>
    %297 = math.tanh %296 : vector<8x128xf32>
    %298 = arith.mulf %294, %251 : vector<8x128xf32>
    %299 = arith.mulf %293, %297 : vector<8x128xf32>
    %300 = arith.addf %298, %299 : vector<8x128xf32>
    %301 = math.tanh %300 : vector<8x128xf32>
    %302 = arith.mulf %295, %301 : vector<8x128xf32>
    %303 = arith.negf %287 : vector<8x512xf32>
    %304 = math.exp %303 : vector<8x512xf32>
    %cst_83 = arith.constant 1.000000e+00 : f32
    %305 = vector.broadcast %cst_83 : f32 to vector<8x512xf32>
    %306 = arith.addf %305, %304 : vector<8x512xf32>
    %307 = arith.divf %305, %306 : vector<8x512xf32>
    %308 = vector.extract_strided_slice %307 {offsets = [0, 0], sizes = [8, 128], strides = [1, 1]} : vector<8x512xf32> to vector<8x128xf32>
    %309 = vector.extract_strided_slice %307 {offsets = [0, 128], sizes = [8, 128], strides = [1, 1]} : vector<8x512xf32> to vector<8x128xf32>
    %310 = vector.extract_strided_slice %307 {offsets = [0, 384], sizes = [8, 128], strides = [1, 1]} : vector<8x512xf32> to vector<8x128xf32>
    %311 = vector.extract_strided_slice %287 {offsets = [0, 256], sizes = [8, 128], strides = [1, 1]} : vector<8x512xf32> to vector<8x128xf32>
    %312 = math.tanh %311 : vector<8x128xf32>
    %313 = arith.mulf %309, %266 : vector<8x128xf32>
    %314 = arith.mulf %308, %312 : vector<8x128xf32>
    %315 = arith.addf %313, %314 : vector<8x128xf32>
    %316 = math.tanh %315 : vector<8x128xf32>
    %317 = arith.mulf %310, %316 : vector<8x128xf32>
    %318 = arith.index_cast %275 : i32 to index
    %c0_84 = arith.constant 0 : index
    %319 = vector.load %arg11[%318, %c0_84] : memref<64x256xf32, #tpu.memory_space<vmem>>, vector<8x128xf32>
    tpu.vector_store %arg11[%318, %c0_84], %302 {strides = array<i32>} : memref<64x256xf32, #tpu.memory_space<vmem>>, vector<8x128xf32>,
    %320 = arith.index_cast %277 : i32 to index
    %c128_85 = arith.constant 128 : index
    %321 = vector.load %arg11[%320, %c128_85] : memref<64x256xf32, #tpu.memory_space<vmem>>, vector<8x128xf32>
    tpu.vector_store %arg11[%320, %c128_85], %317 {strides = array<i32>} : memref<64x256xf32, #tpu.memory_space<vmem>>, vector<8x128xf32>,
    %c6_i32 = arith.constant 6 : i32
    %c7_i32_86 = arith.constant 7 : i32
    %322 = arith.subi %c7_i32_86, %c6_i32 : i32
    %c8_i32_87 = arith.constant 8 : i32
    %323 = arith.muli %c6_i32, %c8_i32_87 : i32
    %324 = tpu.assume_multiple %323, 8 : i32
    %c8_i32_88 = arith.constant 8 : i32
    %325 = arith.muli %322, %c8_i32_88 : i32
    %326 = tpu.assume_multiple %325, 8 : i32
    %327 = arith.index_cast %324 : i32 to index
    %c0_89 = arith.constant 0 : index
    %328 = vector.load %arg12[%327, %c0_89] : memref<64x512xf32, #tpu.memory_space<vmem>>, vector<8x512xf32>
    %329 = arith.index_cast %326 : i32 to index
    %c0_90 = arith.constant 0 : index
    %330 = vector.load %arg13[%329, %c0_90] : memref<64x512xf32, #tpu.memory_space<vmem>>, vector<8x512xf32>
    %331 = tpu.concatenate %302, %317 in 0 : vector<8x128xf32>, vector<8x128xf32> -> vector<16x128xf32>
    %cst_91 = arith.constant dense<0.000000e+00> : vector<16x1024xf32>
    %332 = tpu.matmul %331, %26, %cst_91 {dimension_numbers = #tpu.dot_dimension_numbers<[1], [0], [0], [1], [0, 0, 1, 1], [], []>} : vector<16x128xf32>, vector<128x1024xf32>, vector<16x1024xf32> -> vector<16x1024xf32>
    %333 = vector.extract_strided_slice %332 {offsets = [0, 0], sizes = [8, 512], strides = [1, 1]} : vector<16x1024xf32> to vector<8x512xf32>
    %334 = arith.addf %328, %333 : vector<8x512xf32>
    %335 = vector.extract_strided_slice %332 {offsets = [8, 512], sizes = [8, 512], strides = [1, 1]} : vector<16x1024xf32> to vector<8x512xf32>
    %336 = arith.addf %330, %335 : vector<8x512xf32>
    %337 = arith.negf %334 : vector<8x512xf32>
    %338 = math.exp %337 : vector<8x512xf32>
    %cst_92 = arith.constant 1.000000e+00 : f32
    %339 = vector.broadcast %cst_92 : f32 to vector<8x512xf32>
    %340 = arith.addf %339, %338 : vector<8x512xf32>
    %341 = arith.divf %339, %340 : vector<8x512xf32>
    %342 = vector.extract_strided_slice %341 {offsets = [0, 0], sizes = [8, 128], strides = [1, 1]} : vector<8x512xf32> to vector<8x128xf32>
    %343 = vector.extract_strided_slice %341 {offsets = [0, 128], sizes = [8, 128], strides = [1, 1]} : vector<8x512xf32> to vector<8x128xf32>
    %344 = vector.extract_strided_slice %341 {offsets = [0, 384], sizes = [8, 128], strides = [1, 1]} : vector<8x512xf32> to vector<8x128xf32>
    %345 = vector.extract_strided_slice %334 {offsets = [0, 256], sizes = [8, 128], strides = [1, 1]} : vector<8x512xf32> to vector<8x128xf32>
    %346 = math.tanh %345 : vector<8x128xf32>
    %347 = arith.mulf %343, %300 : vector<8x128xf32>
    %348 = arith.mulf %342, %346 : vector<8x128xf32>
    %349 = arith.addf %347, %348 : vector<8x128xf32>
    %350 = math.tanh %349 : vector<8x128xf32>
    %351 = arith.mulf %344, %350 : vector<8x128xf32>
    %352 = arith.negf %336 : vector<8x512xf32>
    %353 = math.exp %352 : vector<8x512xf32>
    %cst_93 = arith.constant 1.000000e+00 : f32
    %354 = vector.broadcast %cst_93 : f32 to vector<8x512xf32>
    %355 = arith.addf %354, %353 : vector<8x512xf32>
    %356 = arith.divf %354, %355 : vector<8x512xf32>
    %357 = vector.extract_strided_slice %356 {offsets = [0, 0], sizes = [8, 128], strides = [1, 1]} : vector<8x512xf32> to vector<8x128xf32>
    %358 = vector.extract_strided_slice %356 {offsets = [0, 128], sizes = [8, 128], strides = [1, 1]} : vector<8x512xf32> to vector<8x128xf32>
    %359 = vector.extract_strided_slice %356 {offsets = [0, 384], sizes = [8, 128], strides = [1, 1]} : vector<8x512xf32> to vector<8x128xf32>
    %360 = vector.extract_strided_slice %336 {offsets = [0, 256], sizes = [8, 128], strides = [1, 1]} : vector<8x512xf32> to vector<8x128xf32>
    %361 = math.tanh %360 : vector<8x128xf32>
    %362 = arith.mulf %358, %315 : vector<8x128xf32>
    %363 = arith.mulf %357, %361 : vector<8x128xf32>
    %364 = arith.addf %362, %363 : vector<8x128xf32>
    %365 = math.tanh %364 : vector<8x128xf32>
    %366 = arith.mulf %359, %365 : vector<8x128xf32>
    %367 = arith.index_cast %324 : i32 to index
    %c0_94 = arith.constant 0 : index
    %368 = vector.load %arg11[%367, %c0_94] : memref<64x256xf32, #tpu.memory_space<vmem>>, vector<8x128xf32>
    tpu.vector_store %arg11[%367, %c0_94], %351 {strides = array<i32>} : memref<64x256xf32, #tpu.memory_space<vmem>>, vector<8x128xf32>,
    %369 = arith.index_cast %326 : i32 to index
    %c128_95 = arith.constant 128 : index
    %370 = vector.load %arg11[%369, %c128_95] : memref<64x256xf32, #tpu.memory_space<vmem>>, vector<8x128xf32>
    tpu.vector_store %arg11[%369, %c128_95], %366 {strides = array<i32>} : memref<64x256xf32, #tpu.memory_space<vmem>>, vector<8x128xf32>,
    %c7_i32_96 = arith.constant 7 : i32
    %c7_i32_97 = arith.constant 7 : i32
    %371 = arith.subi %c7_i32_97, %c7_i32_96 : i32
    %c8_i32_98 = arith.constant 8 : i32
    %372 = arith.muli %c7_i32_96, %c8_i32_98 : i32
    %373 = tpu.assume_multiple %372, 8 : i32
    %c8_i32_99 = arith.constant 8 : i32
    %374 = arith.muli %371, %c8_i32_99 : i32
    %375 = tpu.assume_multiple %374, 8 : i32
    %376 = arith.index_cast %373 : i32 to index
    %c0_100 = arith.constant 0 : index
    %377 = vector.load %arg12[%376, %c0_100] : memref<64x512xf32, #tpu.memory_space<vmem>>, vector<8x512xf32>
    %378 = arith.index_cast %375 : i32 to index
    %c0_101 = arith.constant 0 : index
    %379 = vector.load %arg13[%378, %c0_101] : memref<64x512xf32, #tpu.memory_space<vmem>>, vector<8x512xf32>
    %380 = tpu.concatenate %351, %366 in 0 : vector<8x128xf32>, vector<8x128xf32> -> vector<16x128xf32>
    %cst_102 = arith.constant dense<0.000000e+00> : vector<16x1024xf32>
    %381 = tpu.matmul %380, %26, %cst_102 {dimension_numbers = #tpu.dot_dimension_numbers<[1], [0], [0], [1], [0, 0, 1, 1], [], []>} : vector<16x128xf32>, vector<128x1024xf32>, vector<16x1024xf32> -> vector<16x1024xf32>
    %382 = vector.extract_strided_slice %381 {offsets = [0, 0], sizes = [8, 512], strides = [1, 1]} : vector<16x1024xf32> to vector<8x512xf32>
    %383 = arith.addf %377, %382 : vector<8x512xf32>
    %384 = vector.extract_strided_slice %381 {offsets = [8, 512], sizes = [8, 512], strides = [1, 1]} : vector<16x1024xf32> to vector<8x512xf32>
    %385 = arith.addf %379, %384 : vector<8x512xf32>
    %386 = arith.negf %383 : vector<8x512xf32>
    %387 = math.exp %386 : vector<8x512xf32>
    %cst_103 = arith.constant 1.000000e+00 : f32
    %388 = vector.broadcast %cst_103 : f32 to vector<8x512xf32>
    %389 = arith.addf %388, %387 : vector<8x512xf32>
    %390 = arith.divf %388, %389 : vector<8x512xf32>
    %391 = vector.extract_strided_slice %390 {offsets = [0, 0], sizes = [8, 128], strides = [1, 1]} : vector<8x512xf32> to vector<8x128xf32>
    %392 = vector.extract_strided_slice %390 {offsets = [0, 128], sizes = [8, 128], strides = [1, 1]} : vector<8x512xf32> to vector<8x128xf32>
    %393 = vector.extract_strided_slice %390 {offsets = [0, 384], sizes = [8, 128], strides = [1, 1]} : vector<8x512xf32> to vector<8x128xf32>
    %394 = vector.extract_strided_slice %383 {offsets = [0, 256], sizes = [8, 128], strides = [1, 1]} : vector<8x512xf32> to vector<8x128xf32>
    %395 = math.tanh %394 : vector<8x128xf32>
    %396 = arith.mulf %392, %349 : vector<8x128xf32>
    %397 = arith.mulf %391, %395 : vector<8x128xf32>
    %398 = arith.addf %396, %397 : vector<8x128xf32>
    %399 = math.tanh %398 : vector<8x128xf32>
    %400 = arith.mulf %393, %399 : vector<8x128xf32>
    %401 = arith.negf %385 : vector<8x512xf32>
    %402 = math.exp %401 : vector<8x512xf32>
    %cst_104 = arith.constant 1.000000e+00 : f32
    %403 = vector.broadcast %cst_104 : f32 to vector<8x512xf32>
    %404 = arith.addf %403, %402 : vector<8x512xf32>
    %405 = arith.divf %403, %404 : vector<8x512xf32>
    %406 = vector.extract_strided_slice %405 {offsets = [0, 0], sizes = [8, 128], strides = [1, 1]} : vector<8x512xf32> to vector<8x128xf32>
    %407 = vector.extract_strided_slice %405 {offsets = [0, 128], sizes = [8, 128], strides = [1, 1]} : vector<8x512xf32> to vector<8x128xf32>
    %408 = vector.extract_strided_slice %405 {offsets = [0, 384], sizes = [8, 128], strides = [1, 1]} : vector<8x512xf32> to vector<8x128xf32>
    %409 = vector.extract_strided_slice %385 {offsets = [0, 256], sizes = [8, 128], strides = [1, 1]} : vector<8x512xf32> to vector<8x128xf32>
    %410 = math.tanh %409 : vector<8x128xf32>
    %411 = arith.mulf %407, %364 : vector<8x128xf32>
    %412 = arith.mulf %406, %410 : vector<8x128xf32>
    %413 = arith.addf %411, %412 : vector<8x128xf32>
    %414 = math.tanh %413 : vector<8x128xf32>
    %415 = arith.mulf %408, %414 : vector<8x128xf32>
    %416 = arith.index_cast %373 : i32 to index
    %c0_105 = arith.constant 0 : index
    %417 = vector.load %arg11[%416, %c0_105] : memref<64x256xf32, #tpu.memory_space<vmem>>, vector<8x128xf32>
    tpu.vector_store %arg11[%416, %c0_105], %400 {strides = array<i32>} : memref<64x256xf32, #tpu.memory_space<vmem>>, vector<8x128xf32>,
    %418 = arith.index_cast %375 : i32 to index
    %c128_106 = arith.constant 128 : index
    %419 = vector.load %arg11[%418, %c128_106] : memref<64x256xf32, #tpu.memory_space<vmem>>, vector<8x128xf32>
    tpu.vector_store %arg11[%418, %c128_106], %415 {strides = array<i32>} : memref<64x256xf32, #tpu.memory_space<vmem>>, vector<8x128xf32>,
    %c8_i32_107 = arith.constant 8 : i32
    return
  }
}

</mosaic_0001>

<bundles_post_ra>
// kernel: tpu_custom_call.1
= control target key start
LH: loop header
LB: loop body
LE: loop exit
PB: predicated region body
PF: predicated region fallthrough
CT: control target
= control target key end

     0   :  { %16 = vsyncpa [#allocation5], 0  ;;  %s7204_s0 = inlined_call_operand.vmem [shape: f32[64,48], index: 0, kind: input, shape index: {}]   ;;  %s7205_s1 = inlined_call_operand.vmem [shape: f32[64,48], index: 1, kind: input, shape index: {}]   ;;  %s7206_s2 = inlined_call_operand.vmem [shape: f32[48,32], index: 2, kind: input, shape index: {}]   ;;  %s7207_s3 = inlined_call_operand.vmem [shape: f32[1,32], index: 3, kind: input, shape index: {}]   ;;  %s7208_s4 = inlined_call_operand.vmem [shape: f32[48,32], index: 4, kind: input, shape index: {}]   ;;  %s7209_s5 = inlined_call_operand.vmem [shape: f32[1,32], index: 5, kind: input, shape index: {}]   ;;  %s7210_s6 = inlined_call_operand.vmem [shape: f32[32,512], index: 6, kind: input, shape index: {}]   ;;  %s7211_s7 = inlined_call_operand.vmem [shape: f32[32,512], index: 7, kind: input, shape index: {}]   ;;  %s7212_s8 = inlined_call_operand.hbm [shape: f32[128,1024], index: 8, kind: input, shape index: {}]   ;;  %s7213_s9 = inlined_call_operand.vmem [shape: f32[1,512], index: 9, kind: input, shape index: {}]   ;;  %s7214_s10 = inlined_call_operand.vmem [shape: f32[1,512], index: 10, kind: input, shape index: {}]   ;;  %s7215_s11 = inlined_call_operand.hbm [shape: f32[64,256], index: 11, kind: output, shape index: {}]  }
   0x1   :  { %17 = vsyncpa [#allocation6], 0  ;;  %s5894_s17 = smov [#allocation4]   ;;  %s5846_s21 = scalar_lea.hbm %s7212_s8, 16384 }
   0x2   :  { %s39_s18 = sshll.u32 %s5894_s17, 4  ;;  %p5847_p0 = scmp.ne.s32.totalorder %s7212_s8, %s5846_s21  ;;  %s40_s18 = int_to_ptr.vmem [resolvable:$true] %s39_s18 }
   0x3   :  { %p5850_p1 = scmp.lt.u32.totalorder %s5846_s21, %s7212_s8 }
   0x5   :  { %p5852_p2 = pnand %p5850_p1, %p5847_p0 }
   0x7   :  { %5855 = shalt.err (!%p5852_p2)
}
   0x8   :  { %s5856_s26 = scalar_lea.vmem %s40_s18, 16384  ;;  %p5861_p4 = scmp.lt.s32.totalorder %s40_s18, %s40_s18 }
   0x9   :  { %p5857_p3 = scmp.ne.s32.totalorder %s40_s18, %s5856_s26  ;;  %p5862_p5 = scmp.lt.s32.totalorder %s5856_s26, %s5856_s26 }
   0xb   :  { %p5863_p6 = por %p5862_p5, %p5861_p4 }
   0xd   :  { %p5864_p7 = pnand %p5863_p6, %p5857_p3 }
   0xf   :  { %5867 = shalt.err (!%p5864_p7)
}
  0x10   :  { %s5895_s27 = smov 1024   ;;  %s5896_s28 = smov 64  }
  0x11   :  { %45 = dma.hbm_to_vmem [thread:$0]  %s7212_s8, 16384, %s40_s18, [#allocation5], %s5895_s27, %s5895_s27, %s5896_s28  }
  0x12   :  { %5890 = dma.done.wait [#allocation5], 16384  }
  0x13   :  { %5891 = vsyncadd [#allocation5], 4294950912  ;;  %v61_v0 = vld [vmem:[%s7206_s2] sm:$0xff]  ;;  %v62_v1 = vld [vmem:[%s7206_s2 + $0x8] sm:$0xff]  ;;  %vm74_vm0 = vcmask 392192   ;;  %v7216_v57 = vmov 0.0  }
  0x14   :  { %v63_v2 = vld [vmem:[%s7206_s2 + $0x10] sm:$0xff]  ;;  %v4343_v3 = vpack.c.bf16 %v62_v1, %v61_v0  ;;  %v64_v4 = vld [vmem:[%s7206_s2 + $0x18] sm:$0xff]  ;;  %v65_v6 = vld [vmem:[%s7206_s2 + $0x20] sm:$0xff]  ;;  %vm408_vm1 = vcmask 261120  }
  0x15   :  { %v4347_v5 = vpack.c.bf16 %v64_v4, %v63_v2  ;;  %v66_v7 = vld [vmem:[%s7206_s2 + $0x28] sm:$0xff]  ;;  %v53_v8 = vld [vmem:[%s7204_s0] sm:$0xff]  ;;  %v222_v13 = vld [vmem:[%s7208_s4 + $0x10] sm:$0xff] }
  0x16   :  { %4344 = vmatprep.subr.bf16.mxu0 %v4343_v3  ;;  %4307 = vmatprep.mubr.msk.f32.mxu0 %vm74_vm0, %v53_v8  ;;  %v220_v9 = vld [vmem:[%s7208_s4] sm:$0xff]  ;;  %v221_v10 = vld [vmem:[%s7208_s4 + $0x8] sm:$0xff]  ;;  %v4351_v11 = vpack.c.bf16 %v66_v7, %v65_v6  ;;  %v223_v14 = vld [vmem:[%s7208_s4 + $0x18] sm:$0xff] }
  0x17   :  { %4346 = vmatpush3.bf16.msra.mxu0 %v4343_v3  ;;  %v4355_v12 = vpack.c.bf16 %v221_v10, %v220_v9  ;;  %v4359_v15 = vpack.c.bf16 %v223_v14, %v222_v13  ;;  %v224_v16 = vld [vmem:[%s7208_s4 + $0x20] sm:$0xff]  ;;  %v225_v17 = vld [vmem:[%s7208_s4 + $0x28] sm:$0xff]  ;;  %v55_v26 = vld [vmem:[%s7204_s0 + $0x10] sm:$0xff] }
  0x18   :  { %4348 = vmatprep.subr.bf16.mxu0 %v4347_v5  ;;  %v212_v18 = vld [vmem:[%s7205_s1] sm:$0xff]  ;;  %v4363_v19 = vpack.c.bf16 %v225_v17, %v224_v16  ;;  %v371_v20 = vld [vmem:[%s7210_s6 + $0x8] sm:$0xff]  ;;  %v56_v28 = vld [vmem:[%s7204_s0 + $0x18] sm:$0xff] }
  0x19   :  { %4356 = vmatprep.subr.bf16.mxu1 %v4355_v12  ;;  %4331 = vmatprep.mubr.msk.f32.mxu1 %vm74_vm0, %v212_v18  ;;  %v375_v21 = vld [vmem:[%s7210_s6 + $0x28] sm:$0xff]  ;;  %v370_v23 = vld [vmem:[%s7210_s6] sm:$0xff]  ;;  %v214_v31 = vld [vmem:[%s7205_s1 + $0x10] sm:$0xff] }
  0x1a   :  { %4358 = vmatpush3.bf16.msra.mxu1 %v4355_v12  ;;  %v4367_v22 = vpack.c.bf16 %v375_v21, %v371_v20  ;;  %v374_v24 = vld [vmem:[%s7210_s6 + $0x20] sm:$0xff]  ;;  %v54_v25 = vld [vmem:[%s7204_s0 + $0x8] sm:$0xff]  ;;  %v215_v33 = vld [vmem:[%s7205_s1 + $0x18] sm:$0xff] }
  0x1b   :  { %4350 = vmatpush3.bf16.msra.mxu0 %v4347_v5  ;;  %4360 = vmatprep.subr.bf16.mxu1 %v4359_v15  ;;  %v4369_v27 = vpack.c.bf16 %v374_v24, %v370_v23  ;;  %v213_v29 = vld [vmem:[%s7205_s1 + $0x8] sm:$0xff]  ;;  %v57_v30 = vld [vmem:[%s7204_s0 + $0x20] sm:$0xff]  ;;  %v59_v34 = vld [vmem:[%s7204_s0 + $0x30] sm:$0xff] }
  0x1c   :  { %4352 = vmatprep.subr.bf16.mxu0 %v4351_v11  ;;  %v58_v32 = vld [vmem:[%s7204_s0 + $0x28] sm:$0xff]  ;;  %v216_v35 = vld [vmem:[%s7205_s1 + $0x20] sm:$0xff]  ;;  %v60_v36 = vld [vmem:[%s7204_s0 + $0x38] sm:$0xff] }
  0x1d   :  { %v217_v37 = vld [vmem:[%s7205_s1 + $0x28] sm:$0xff]  ;;  %v218_v38 = vld [vmem:[%s7205_s1 + $0x30] sm:$0xff]  ;;  %v219_v39 = vld [vmem:[%s7205_s1 + $0x38] sm:$0xff] }
  0x1e   :  { %4362 = vmatpush3.bf16.msra.mxu1 %v4359_v15  ;;  %v379_v40 = vld [vmem:[%s7210_s6 + $0x48] sm:$0xff]  ;;  %v373_v42 = vld [vmem:[%s7210_s6 + $0x18] sm:$0xff]  ;;  %v372_v45 = vld [vmem:[%s7210_s6 + $0x10] sm:$0xff] }
  0x1f   :  { %4354 = vmatpush3.bf16.msra.mxu0 %v4351_v11  ;;  %4364 = vmatprep.subr.bf16.mxu1 %v4363_v19  ;;  %v383_v41 = vld [vmem:[%s7210_s6 + $0x68] sm:$0xff]  ;;  %v377_v44 = vld [vmem:[%s7210_s6 + $0x38] sm:$0xff]  ;;  %v376_v46 = vld [vmem:[%s7210_s6 + $0x30] sm:$0xff] }
  0x20   :  { %4368 = vmatprep.subr.bf16.mxu0 %v4367_v22  ;;  %v4371_v43 = vpack.c.bf16 %v383_v41, %v379_v40  ;;  %v4375_v47 = vpack.c.bf16 %v377_v44, %v373_v42  ;;  %v4377_v48 = vpack.c.bf16 %v376_v46, %v372_v45  ;;  %v378_v49 = vld [vmem:[%s7210_s6 + $0x40] sm:$0xff]  ;;  %v381_v52 = vld [vmem:[%s7210_s6 + $0x58] sm:$0xff]  ;;  %v380_v54 = vld [vmem:[%s7210_s6 + $0x50] sm:$0xff] }
  0x21   :  { %v382_v50 = vld [vmem:[%s7210_s6 + $0x60] sm:$0xff]  ;;  %v385_v53 = vld [vmem:[%s7210_s6 + $0x78] sm:$0xff]  ;;  %v384_v56 = vld [vmem:[%s7210_s6 + $0x70] sm:$0xff] }
  0x22   :  { %4308 = vmatmul.mubr.msk.f32.vlgmr.msra.gmra.mrb[0].mxu0 %vm74_vm0, %v54_v25  ;;  %4366 = vmatpush3.bf16.msra.mxu1 %v4363_v19  ;;  %v4373_v51 = vpack.c.bf16 %v382_v50, %v378_v49  ;;  %v4379_v55 = vpack.c.bf16 %v385_v53, %v381_v52  ;;  %v692_v58 = vld [vmem:[%s7211_s7 + $0x8] sm:$0xff]  ;;  %v4381_v60 = vpack.c.bf16 %v384_v56, %v380_v54  ;;  %v694_v62 = vld [vmem:[%s7211_s7 + $0x18] sm:$0xff]  ;;  %v6138_v1 = vld [vmem:[%s7207_s3] ss:$0 sm:$0xff] }
  0x23   :  { %4310 = vmatprep.mubr.msk.f32.mxu0 %vm74_vm0, %v55_v26  ;;  %4370 = vmatpush1.bf16.msra.mxu0 %v4369_v27  ;;  %v696_v59 = vld [vmem:[%s7211_s7 + $0x28] sm:$0xff]  ;;  %v698_v63 = vld [vmem:[%s7211_s7 + $0x38] sm:$0xff]  ;;  %v691_v13 = vld [vmem:[%s7211_s7] sm:$0xff] }
  0x24   :  { %4372 = vmatprep.subr.bf16.mxu0 %v4371_v43  ;;  %4376 = vmatprep.subr.bf16.mxu1 %v4375_v47  ;;  %v4383_v61 = vpack.c.bf16 %v696_v59, %v692_v58  ;;  %v4391_v0 = vpack.c.bf16 %v698_v63, %v694_v62  ;;  %v695_v14 = vld [vmem:[%s7211_s7 + $0x20] sm:$0xff]  ;;  %v700_v17 = vld [vmem:[%s7211_s7 + $0x48] sm:$0xff]  ;;  %v693_v19 = vld [vmem:[%s7211_s7 + $0x10] sm:$0xff] }
  0x25   :  { %4332 = vmatmul.mubr.msk.f32.vlgmr.msra.gmra.mrb[0].mxu1 %vm74_vm0, %v213_v29  ;;  %v704_v18 = vld [vmem:[%s7211_s7 + $0x68] sm:$0xff]  ;;  %v697_v20 = vld [vmem:[%s7211_s7 + $0x30] sm:$0xff]  ;;  %v4385_v22 = vpack.c.bf16 %v695_v14, %v691_v13  ;;  %v699_v27 = vld [vmem:[%s7211_s7 + $0x40] sm:$0xff] }
  0x26   :  { %4311 = vmatmul.mubr.msk.f32.gmra.mrb[2].mxu0 %vm74_vm0, %v56_v28  ;;  %4334 = vmatprep.mubr.msk.f32.mxu1 %vm74_vm0, %v214_v31  ;;  %v4387_v26 = vpack.c.bf16 %v704_v18, %v700_v17  ;;  %v703_v28 = vld [vmem:[%s7211_s7 + $0x60] sm:$0xff]  ;;  %v1014_v46 = vld [vmem:[#allocation4 + $0x18] sm:$0xff]  ;;  %v1029_v14 = vld [vmem:[#allocation4 + $0x90] sm:$0xff] }
  0x27   :  { %4313 = vmatprep.mubr.msk.f32.mxu0 %vm74_vm0, %v57_v30  ;;  %4378 = vmatpush1.bf16.msra.mxu1 %v4377_v48  ;;  %v4389_v40 = vpack.c.bf16 %v703_v28, %v699_v27  ;;  %v1022_v47 = vld [vmem:[#allocation4 + $0x58] sm:$0xff]  ;;  %v6222_v53 = vld [vmem:[%s7209_s5] ss:$0 sm:$0xff]  ;;  %v1045_v27 = vld [vmem:[#allocation4 + $0x110] sm:$0xff] }
  0x28   :  { %4374 = vmatpush1.bf16.msra.mxu0 %v4373_v51  ;;  %4380 = vmatprep.subr.bf16.mxu1 %v4379_v55  ;;  %v6208_v50 = vpack.c.bf16 %v1022_v47, %v1014_v46  ;;  %v1011_v62 = vld [vmem:[#allocation4] sm:$0xff]  ;;  %v1053_v28 = vld [vmem:[#allocation4 + $0x150] sm:$0xff] }
  0x29   :  { %4335 = vmatmul.mubr.msk.f32.gmra.mrb[2].mxu1 %vm74_vm0, %v215_v33  ;;  %4384 = vmatprep.subr.bf16.mxu0 %v4383_v61  ;;  %v702_v33 = vld [vmem:[%s7211_s7 + $0x58] sm:$0xff]  ;;  %v1019_v63 = vld [vmem:[#allocation4 + $0x40] sm:$0xff]  ;;  %v1069_v46 = vld [vmem:[#allocation4 + $0x1d0] sm:$0xff] }
  0x2a   :  { %4314 = vmatmul.mubr.msk.f32.gmra.mrb[4].mxu0 %vm74_vm0, %v58_v32  ;;  %4337 = vmatprep.mubr.msk.f32.mxu1 %vm74_vm0, %v216_v35  ;;  %v4393_v32 = vpack.c.bf16 %v697_v20, %v693_v19  ;;  %v701_v35 = vld [vmem:[%s7211_s7 + $0x50] sm:$0xff]  ;;  %v1035_v13 = vld [vmem:[#allocation4 + $0xc0] sm:$0xff]  ;;  %v1052_v19 = vld [vmem:[#allocation4 + $0x148] sm:$0xff] }
  0x2b   :  { %4316 = vmatprep.mubr.msk.f32.mxu0 %vm74_vm0, %v59_v34  ;;  %4382 = vmatpush1.bf16.msra.mxu1 %v4381_v60  ;;  %v706_v34 = vld [vmem:[%s7211_s7 + $0x78] sm:$0xff] }
  0x2c   :  { %4392 = vmatprep.subr.bf16.mxu1 %v4391_v0  ;;  %v4395_v41 = vpack.c.bf16 %v706_v34, %v702_v33  ;;  %v1013_v0 = vld [vmem:[#allocation4 + $0x10] sm:$0xff]  ;;  %v1046_v20 = vld [vmem:[#allocation4 + $0x118] sm:$0xff]  ;;  %v1068_v33 = vld [vmem:[#allocation4 + $0x1c8] sm:$0xff] }
  0x2d   :  { %4338 = vmatmul.mubr.msk.f32.gmra.mrb[4].mxu1 %vm74_vm0, %v217_v37  ;;  %v1012_v37 = vld [vmem:[#allocation4 + $0x8] sm:$0xff]  ;;  %v1062_v34 = vld [vmem:[#allocation4 + $0x198] sm:$0xff] }
  0x2e   :  { %4317 = vmatmul.mubr.msk.f32.gmra.mrb[6].mxu0 %vm74_vm0, %v60_v36  ;;  %4340 = vmatprep.mubr.msk.f32.mxu1 %vm74_vm0, %v218_v38  ;;  %v705_v36 = vld [vmem:[%s7211_s7 + $0x70] sm:$0xff]  ;;  %v1020_v38 = vld [vmem:[#allocation4 + $0x48] sm:$0xff] }
  0x2f   :  { %497 = vmatprep.mubr.f32.mxu0 %v7216_v57  ;;  %v4397_v44 = vpack.c.bf16 %v705_v36, %v701_v35  ;;  %v6201_v45 = vpack.c.bf16 %v1020_v38, %v1012_v37  ;;  %v1070_v35 = vld [vmem:[#allocation4 + $0x1d8] sm:$0xff] }
  0x31   :  { %4341 = vmatmul.mubr.msk.f32.gmra.mrb[6].mxu1 %vm74_vm0, %v219_v39 }
  0x32   :  { %610 = vmatprep.mubr.f32.mxu1 %v7216_v57 }
  0xf5   :  { %v4309_v2 = vpop.f32.mrb[0].mxu0 }
  0xf6   :  { %v165_v3 = vpop.f32.mrb[1].mxu0  ;;  %v171_v5 = vadd.f32 %v4309_v2, %v6138_v1 }
  0xf7   :  { %v166_v4 = vadd.f32 %v6138_v1, %v165_v3  ;;  %v1028_v3 = vld [vmem:[#allocation4 + $0x88] sm:$0xff] }
  0xf8   :  { %v6142_v7 = vpop.f32.mrb[0].mxu1 }
  0xf9   :  { %5558 = vtanh.f32 %v166_v4  ;;  %v4312_v6 = vpop.f32.mrb[2].mxu0  ;;  %v6144_v9 = vpop.f32.mrb[1].mxu1  ;;  %v329_v60 = vadd.f32 %v6142_v7, %v6222_v53  ;;  %v1036_v4 = vld [vmem:[#allocation4 + $0xc8] sm:$0xff] }
  0xfa   :  { %v175_v8 = vpop.f32.mrb[3].mxu0  ;;  %5560 = vtanh.f32 %v171_v5  ;;  %v181_v21 = vadd.f32 %v4312_v6, %v6138_v1  ;;  %v324_v56 = vadd.f32 %v6222_v53, %v6144_v9  ;;  %v1030_v5 = vld [vmem:[#allocation4 + $0x98] sm:$0xff]  ;;  %v6251_v9 = vpack.c.bf16 %v1019_v63, %v1011_v62 }
  0xfb   :  { %v176_v10 = vadd.f32 %v6138_v1, %v175_v8  ;;  %v1038_v6 = vld [vmem:[#allocation4 + $0xd8] sm:$0xff]  ;;  %v6257_v17 = vpack.c.bf16 %v1036_v4, %v1028_v3 }
  0xfc   :  { %v6147_v12 = vpop.f32.mrb[2].mxu1  ;;  %v6259_v18 = vpack.c.bf16 %v1038_v6, %v1030_v5  ;;  %v1102_v3 = vld [vmem:[#allocation4 + $0x2d8] sm:$0xff] }
  0xfd   :  { %v4315_v11 = vpop.f32.mrb[4].mxu0  ;;  %v6155_v16 = vpop.f32.mrb[3].mxu1  ;;  %5562 = vtanh.f32 %v176_v10  ;;  %v339_v8 = vadd.f32 %v6147_v12, %v6222_v53  ;;  %v1044_v12 = vld [vmem:[#allocation4 + $0x108] sm:$0xff] }
  0xfe   :  { %v185_v15 = vpop.f32.mrb[5].mxu0  ;;  %5564 = vtanh.f32 %v181_v21  ;;  %v191_v49 = vadd.f32 %v4315_v11, %v6138_v1  ;;  %v334_v61 = vadd.f32 %v6222_v53, %v6155_v16  ;;  %v1027_v11 = vld [vmem:[#allocation4 + $0x80] sm:$0xff]  ;;  %v1054_v21 = vld [vmem:[#allocation4 + $0x158] sm:$0xff] }
  0xff   :  { %v186_v31 = vadd.f32 %v6138_v1, %v185_v15  ;;  %v1037_v15 = vld [vmem:[#allocation4 + $0xd0] sm:$0xff] }
 0x100   :  { %v6170_v24 = vpop.f32.mrb[4].mxu1 }
 0x101   :  { %v4318_v23 = vpop.f32.mrb[6].mxu0  ;;  %v6178_v29 = vpop.f32.mrb[5].mxu1  ;;  %5566 = vtanh.f32 %v186_v31  ;;  %v6275_v31 = vpack.c.bf16 %v1054_v21, %v1046_v20  ;;  %v349_v37 = vadd.f32 %v6170_v24, %v6222_v53 }
 0x102   :  { %v195_v25 = vpop.f32.mrb[7].mxu0  ;;  %5568 = vtanh.f32 %v191_v49  ;;  %v201_v55 = vadd.f32 %v4318_v23, %v6138_v1  ;;  %v344_v16 = vadd.f32 %v6222_v53, %v6178_v29  ;;  %v6267_v23 = vpack.c.bf16 %v1037_v15, %v1029_v14  ;;  %v1076_v49 = vld [vmem:[#allocation4 + $0x208] sm:$0xff]  ;;  %v1101_v14 = vld [vmem:[#allocation4 + $0x2d0] sm:$0xff] }
 0x103   :  { %v5559_v30 = vpop.eup %5558  ;;  %v196_v51 = vadd.f32 %v6138_v1, %v195_v25  ;;  %v1021_v1 = vld [vmem:[#allocation4 + $0x50] sm:$0xff]  ;;  %v1043_v25 = vld [vmem:[#allocation4 + $0x100] sm:$0xff]  ;;  %7303 = vst [vmem:[#allocation11_spill] sm:$0xff] %v6275_v31  ;;  %v1108_v15 = vld [vmem:[#allocation4 + $0x308] sm:$0xff] }
 0x104   :  { %4187 = vmatmul.mubr.msk.f32.vlgmr.msra.gmra.mrb[8].mxu0 %vm408_vm1, %v5559_v30  ;;  %4195 = vmatmul.mubr.msk.f32.vlgmr.msra.gmra.mrb[8].mxu1 %vm408_vm1, %v5559_v30  ;;  %v6196_v39 = vpop.f32.mrb[6].mxu1  ;;  %v5561_v43 = vpop.eup %5560  ;;  %v6253_v10 = vpack.c.bf16 %v1021_v1, %v1013_v0  ;;  %v6273_v30 = vpack.c.bf16 %v1052_v19, %v1044_v12  ;;  %v1092_v0 = vld [vmem:[#allocation4 + $0x288] sm:$0xff]  ;;  %v1110_v12 = vld [vmem:[#allocation4 + $0x318] sm:$0xff] }
 0x105   :  { %4386 = vmatpush1.bf16.msra.mxu0 %v4385_v22  ;;  %503 = vmatprep.mubr.f32.mxu0 %v7216_v57  ;;  %v6199_v42 = vpop.f32.mrb[7].mxu1  ;;  %5570 = vtanh.f32 %v196_v51  ;;  %v6265_v22 = vpack.c.bf16 %v1035_v13, %v1027_v11  ;;  %v1084_v51 = vld [vmem:[#allocation4 + $0x248] sm:$0xff]  ;;  %v359_v5 = vadd.f32 %v6196_v39, %v6222_v53  ;;  %v1099_v11 = vld [vmem:[#allocation4 + $0x2c0] sm:$0xff]  ;;  %v1093_v13 = vld [vmem:[#allocation4 + $0x290] sm:$0xff] }
 0x106   :  { %616 = vmatprep.mubr.f32.mxu1 %v7216_v57  ;;  %4388 = vmatprep.subr.bf16.mxu0 %v4387_v26  ;;  %5572 = vtanh.f32 %v201_v55  ;;  %v1051_v26 = vld [vmem:[#allocation4 + $0x140] sm:$0xff]  ;;  %7302 = vst [vmem:[#allocation10_spill] sm:$0xff] %v6273_v30  ;;  %v354_v24 = vadd.f32 %v6222_v53, %v6199_v42  ;;  %v6309_v62 = vpack.c.bf16 %v1084_v51, %v1076_v49  ;;  %v1100_v1 = vld [vmem:[#allocation4 + $0x2c8] sm:$0xff]  ;;  %v1118_v19 = vld [vmem:[#allocation4 + $0x358] sm:$0xff] }
 0x107   :  { %4394 = vmatpush1.bf16.msra.mxu1 %v4393_v32  ;;  %v5563_v48 = vpop.eup %5562  ;;  %5574 = vtanh.f32 %v324_v56  ;;  %v1060_v32 = vld [vmem:[#allocation4 + $0x188] sm:$0xff]  ;;  %v6283_v38 = vpack.c.bf16 %v1051_v26, %v1043_v25  ;;  %v1075_v56 = vld [vmem:[#allocation4 + $0x200] sm:$0xff]  ;;  %v6327_v39 = vpack.c.bf16 %v1100_v1, %v1092_v0  ;;  %v6337_v21 = vpack.c.bf16 %v1101_v14, %v1093_v13  ;;  %v1125_v49 = vld [vmem:[#allocation4 + $0x390] sm:$0xff] }
 0x108   :  { %4188 = vmatmul.mubr.msk.f32.gmra.mrb[10].mxu0 %vm408_vm1, %v5561_v43  ;;  %4196 = vmatmul.mubr.msk.f32.gmra.mrb[10].mxu1 %vm408_vm1, %v5561_v43  ;;  %v5565_v52 = vpop.eup %5564  ;;  %5576 = vtanh.f32 %v329_v60  ;;  %v1067_v43 = vld [vmem:[#allocation4 + $0x1c0] sm:$0xff]  ;;  %v6293_v47 = vpack.c.bf16 %v1068_v33, %v1060_v32  ;;  %v1085_v60 = vld [vmem:[#allocation4 + $0x250] sm:$0xff]  ;;  %7310 = vst [vmem:[#allocation18_spill] sm:$0xff] %v6309_v62  ;;  %v6345_v33 = vpack.c.bf16 %v1118_v19, %v1110_v12  ;;  %v1040_v14 = vld [vmem:[#allocation4 + $0xe8] sm:$0xff] }
 0x109   :  { %509 = vmatprep.mubr.f32.mxu0 %v7216_v57  ;;  %622 = vmatprep.mubr.f32.mxu1 %v7216_v57  ;;  %5578 = vtanh.f32 %v334_v61  ;;  %7304 = vst [vmem:[#allocation12_spill] sm:$0xff] %v6283_v38  ;;  %7314 = vst [vmem:[#allocation22_spill] sm:$0xff] %v6327_v39  ;;  %v1107_v25 = vld [vmem:[#allocation4 + $0x300] sm:$0xff]  ;;  %v1133_v51 = vld [vmem:[#allocation4 + $0x3d0] sm:$0xff] }
 0x10a   :  { %4390 = vmatpush1.bf16.msra.mxu0 %v4389_v40  ;;  %4396 = vmatprep.subr.bf16.mxu1 %v4395_v41  ;;  %5580 = vtanh.f32 %v339_v8  ;;  %v6285_v40 = vpack.c.bf16 %v1053_v28, %v1045_v27  ;;  %v1059_v41 = vld [vmem:[#allocation4 + $0x180] sm:$0xff]  ;;  %7306 = vst [vmem:[#allocation14_spill] sm:$0xff] %v6293_v47  ;;  %7317 = vst [vmem:[#allocation25_spill] sm:$0xff] %v6337_v21  ;;  %v1109_v27 = vld [vmem:[#allocation4 + $0x310] sm:$0xff]  ;;  %v6369_v0 = vpack.c.bf16 %v1133_v51, %v1125_v49 }
 0x10b   :  { %4398 = vmatpush1.bf16.msra.mxu1 %v4397_v44  ;;  %4400 = vmatprep.subr.bf16.mxu0 %v6201_v45  ;;  %v5567_v54 = vpop.eup %5566  ;;  %5582 = vtanh.f32 %v344_v16  ;;  %v1061_v44 = vld [vmem:[#allocation4 + $0x190] sm:$0xff]  ;;  %v6301_v55 = vpack.c.bf16 %v1067_v43, %v1059_v41  ;;  %v1091_v8 = vld [vmem:[#allocation4 + $0x280] sm:$0xff]  ;;  %v1116_v16 = vld [vmem:[#allocation4 + $0x348] sm:$0xff]  ;;  %7319 = vst [vmem:[#allocation27_spill] sm:$0xff] %v6345_v33 }
 0x10c   :  { %4189 = vmatmul.mubr.msk.f32.gmra.mrb[12].mxu0 %vm408_vm1, %v5563_v48  ;;  %4197 = vmatmul.mubr.msk.f32.gmra.mrb[12].mxu1 %vm408_vm1, %v5563_v48  ;;  %v5569_v58 = vpop.eup %5568  ;;  %7305 = vst [vmem:[#allocation13_spill] sm:$0xff] %v6285_v40  ;;  %v6295_v48 = vpack.c.bf16 %v1070_v35, %v1062_v34  ;;  %5584 = vtanh.f32 %v349_v37  ;;  %v6303_v42 = vpack.c.bf16 %v1069_v46, %v1061_v44  ;;  %v1115_v26 = vld [vmem:[#allocation4 + $0x340] sm:$0xff]  ;;  %v1117_v28 = vld [vmem:[#allocation4 + $0x350] sm:$0xff]  ;;  %v1124_v34 = vld [vmem:[#allocation4 + $0x388] sm:$0xff] }
 0x10d   :  { %515 = vmatprep.mubr.f32.mxu0 %v7216_v57  ;;  %628 = vmatprep.mubr.f32.mxu1 %v7216_v57  ;;  %7308 = vst [vmem:[#allocation16_spill] sm:$0xff] %v6301_v55  ;;  %5586 = vtanh.f32 %v354_v24  ;;  %v6335_v20 = vpack.c.bf16 %v1099_v11, %v1091_v8  ;;  %v6343_v32 = vpack.c.bf16 %v1116_v16, %v1108_v15  ;;  %v1132_v35 = vld [vmem:[#allocation4 + $0x3c8] sm:$0xff]  ;;  %v1134_v37 = vld [vmem:[#allocation4 + $0x3d8] sm:$0xff]  ;;  %v1123_v46 = vld [vmem:[#allocation4 + $0x380] sm:$0xff] }
 0x10e   :  { %4432 = vmatprep.subr.bf16.mxu1 %v6208_v50  ;;  %7307 = vst [vmem:[#allocation15_spill] sm:$0xff] %v6295_v48  ;;  %7309 = vst [vmem:[#allocation17_spill] sm:$0xff] %v6303_v42  ;;  %5588 = vtanh.f32 %v359_v5  ;;  %v6351_v43 = vpack.c.bf16 %v1115_v26, %v1107_v25  ;;  %v6353_v44 = vpack.c.bf16 %v1117_v28, %v1109_v27  ;;  %v1131_v24 = vld [vmem:[#allocation4 + $0x3c0] sm:$0xff]  ;;  %v1032_v5 = vld [vmem:[#allocation4 + $0xa8] sm:$0xff] }
 0x10f   :  { %v5571_v59 = vpop.eup %5570  ;;  %7316 = vst [vmem:[#allocation24_spill] sm:$0xff] %v6335_v20  ;;  %7318 = vst [vmem:[#allocation26_spill] sm:$0xff] %v6343_v32  ;;  %v1015_v1 = vld [vmem:[#allocation4 + $0x20] sm:$0xff]  ;;  %v1034_v15 = vld [vmem:[#allocation4 + $0xb8] sm:$0xff]  ;;  %v6389_v27 = vpack.c.bf16 %v1040_v14, %v1032_v5 }
 0x110   :  { %4190 = vmatmul.mubr.msk.f32.gmra.mrb[14].mxu0 %vm408_vm1, %v5565_v52  ;;  %4198 = vmatmul.mubr.msk.f32.gmra.mrb[14].mxu1 %vm408_vm1, %v5565_v52  ;;  %v5573_v2 = vpop.eup %5572  ;;  %v1078_v52 = vld [vmem:[#allocation4 + $0x218] sm:$0xff]  ;;  %7320 = vst [vmem:[#allocation28_spill] sm:$0xff] %v6351_v43  ;;  %7321 = vst [vmem:[#allocation29_spill] sm:$0xff] %v6353_v44  ;;  %v1031_v25 = vld [vmem:[#allocation4 + $0xa0] sm:$0xff] }
 0x111   :  { %521 = vmatprep.mubr.f32.mxu0 %v7216_v57  ;;  %634 = vmatprep.mubr.f32.mxu1 %v7216_v57  ;;  %v5575_v7 = vpop.eup %5574  ;;  %7325 = vst [vmem:[#allocation33_spill] sm:$0xff] %v6369_v0  ;;  %v1042_v16 = vld [vmem:[#allocation4 + $0xf8] sm:$0xff]  ;;  %v1039_v26 = vld [vmem:[#allocation4 + $0xe0] sm:$0xff] }
 0x112   :  { %v5577_v29 = vpop.eup %5576  ;;  %v6391_v28 = vpack.c.bf16 %v1042_v16, %v1034_v15  ;;  %v1047_v49 = vld [vmem:[#allocation4 + $0x120] sm:$0xff] }
 0x113   :  { %v5579_v36 = vpop.eup %5578  ;;  %v1055_v51 = vld [vmem:[#allocation4 + $0x160] sm:$0xff] }
 0x114   :  { %4191 = vmatmul.mubr.msk.f32.gmra.mrb[16].mxu0 %vm408_vm1, %v5567_v54  ;;  %4199 = vmatmul.mubr.msk.f32.gmra.mrb[16].mxu1 %vm408_vm1, %v5567_v54  ;;  %v1086_v54 = vld [vmem:[#allocation4 + $0x258] sm:$0xff]  ;;  %v5581_v61 = vpop.eup %5580  ;;  %v6415_v5 = vpack.c.bf16 %v1055_v51, %v1047_v49  ;;  %v1063_v14 = vld [vmem:[#allocation4 + $0x1a0] sm:$0xff] }
 0x115   :  { %527 = vmatprep.mubr.f32.mxu0 %v7216_v57  ;;  %640 = vmatprep.mubr.f32.mxu1 %v7216_v57  ;;  %v6311_v63 = vpack.c.bf16 %v1086_v54, %v1078_v52  ;;  %v5583_v4 = vpop.eup %5582  ;;  %v6359_v52 = vpack.c.bf16 %v1132_v35, %v1124_v34  ;;  %v1041_v34 = vld [vmem:[#allocation4 + $0xf0] sm:$0xff]  ;;  %v1048_v35 = vld [vmem:[#allocation4 + $0x128] sm:$0xff]  ;;  %v1071_v15 = vld [vmem:[#allocation4 + $0x1e0] sm:$0xff] }
 0x116   :  { %7328 = vst [vmem:[#allocation36_spill] sm:$0xff] %v6415_v5  ;;  %v1079_v51 = vld [vmem:[#allocation4 + $0x220] sm:$0xff] }
 0x117   :  { %7311 = vst [vmem:[#allocation19_spill] sm:$0xff] %v6311_v63  ;;  %7322 = vst [vmem:[#allocation30_spill] sm:$0xff] %v6359_v52 }
 0x118   :  { %4192 = vmatmul.mubr.msk.f32.gmra.mrb[18].mxu0 %vm408_vm1, %v5569_v58  ;;  %4200 = vmatmul.mubr.msk.f32.gmra.mrb[18].mxu1 %vm408_vm1, %v5569_v58  ;;  %v1083_v58 = vld [vmem:[#allocation4 + $0x240] sm:$0xff] }
 0x119   :  { %533 = vmatprep.mubr.f32.mxu0 %v7216_v57  ;;  %646 = vmatprep.mubr.f32.mxu1 %v7216_v57  ;;  %v6319_v6 = vpack.c.bf16 %v1083_v58, %v1075_v56  ;;  %v1016_v56 = vld [vmem:[#allocation4 + $0x28] sm:$0xff] }
 0x11a   :  { %v1024_v58 = vld [vmem:[#allocation4 + $0x68] sm:$0xff] }
 0x11b   :  { %7312 = vst [vmem:[#allocation20_spill] sm:$0xff] %v6319_v6  ;;  %v6375_v11 = vpack.c.bf16 %v1024_v58, %v1016_v56 }
 0x11c   :  { %4193 = vmatmul.mubr.msk.f32.gmra.mrb[20].mxu0 %vm408_vm1, %v5571_v59  ;;  %4201 = vmatmul.mubr.msk.f32.gmra.mrb[20].mxu1 %vm408_vm1, %v5571_v59  ;;  %v1077_v59 = vld [vmem:[#allocation4 + $0x210] sm:$0xff] }
 0x11d   :  { %539 = vmatprep.mubr.f32.mxu0 %v7216_v57  ;;  %652 = vmatprep.mubr.f32.mxu1 %v7216_v57  ;;  %7326 = vst [vmem:[#allocation34_spill] sm:$0xff] %v6375_v11 }
 0x120   :  { %4194 = vmatmul.mubr.msk.f32.gmra.mrb[22].mxu0 %vm408_vm1, %v5573_v2  ;;  %4202 = vmatmul.mubr.msk.f32.gmra.mrb[22].mxu1 %vm408_vm1, %v5573_v2  ;;  %v1094_v2 = vld [vmem:[#allocation4 + $0x298] sm:$0xff] }
 0x121   :  { %817 = vmatprep.mubr.f32.mxu0 %v7216_v57  ;;  %930 = vmatprep.mubr.f32.mxu1 %v7216_v57  ;;  %v6329_v53 = vpack.c.bf16 %v1102_v3, %v1094_v2  ;;  %v1023_v2 = vld [vmem:[#allocation4 + $0x60] sm:$0xff]  ;;  %v1017_v3 = vld [vmem:[#allocation4 + $0x30] sm:$0xff] }
 0x122   :  { %v6383_v12 = vpack.c.bf16 %v1023_v2, %v1015_v1  ;;  %v1064_v1 = vld [vmem:[#allocation4 + $0x1a8] sm:$0xff] }
 0x123   :  { %7315 = vst [vmem:[#allocation23_spill] sm:$0xff] %v6329_v53  ;;  %v1072_v2 = vld [vmem:[#allocation4 + $0x1e8] sm:$0xff] }
 0x124   :  { %4203 = vmatmul.mubr.msk.f32.vlgmr.msra.gmra.mrb[24].mxu0 %vm408_vm1, %v5575_v7  ;;  %4211 = vmatmul.mubr.msk.f32.vlgmr.msra.gmra.mrb[24].mxu1 %vm408_vm1, %v5575_v7  ;;  %v6321_v7 = vpack.c.bf16 %v1085_v60, %v1077_v59  ;;  %v1018_v59 = vld [vmem:[#allocation4 + $0x38] sm:$0xff]  ;;  %v6421_v16 = vpack.c.bf16 %v1072_v2, %v1064_v1  ;;  %v1081_v2 = vld [vmem:[#allocation4 + $0x230] sm:$0xff] }
 0x125   :  { %4402 = vmatpush1.bf16.msra.mxu0 %v6251_v9  ;;  %4434 = vmatpush1.bf16.msra.mxu1 %v6253_v10  ;;  %v1026_v60 = vld [vmem:[#allocation4 + $0x78] sm:$0xff] }
 0x126   :  { %823 = vmatprep.mubr.f32.mxu0 %v7216_v57  ;;  %936 = vmatprep.mubr.f32.mxu1 %v7216_v57  ;;  %7313 = vst [vmem:[#allocation21_spill] sm:$0xff] %v6321_v7  ;;  %v6377_v13 = vpack.c.bf16 %v1026_v60, %v1018_v59  ;;  %v1049_v59 = vld [vmem:[#allocation4 + $0x130] sm:$0xff]  ;;  %7330 = vst [vmem:[#allocation38_spill] sm:$0xff] %v6421_v16 }
 0x127   :  { %4404 = vmatprep.subr.bf16.mxu0 %v6257_v17  ;;  %4436 = vmatprep.subr.bf16.mxu1 %v6259_v18  ;;  %v1057_v60 = vld [vmem:[#allocation4 + $0x170] sm:$0xff] }
 0x128   :  { %4204 = vmatmul.mubr.msk.f32.gmra.mrb[26].mxu0 %vm408_vm1, %v5577_v29  ;;  %4212 = vmatmul.mubr.msk.f32.gmra.mrb[26].mxu1 %vm408_vm1, %v5577_v29  ;;  %v5585_v29 = vpop.eup %5584  ;;  %7327 = vst [vmem:[#allocation35_spill] sm:$0xff] %v6377_v13 }
 0x129   :  { %4406 = vmatpush1.bf16.msra.mxu0 %v6265_v22  ;;  %4438 = vmatpush1.bf16.msra.mxu1 %v6267_v23  ;;  %v5587_v41 = vpop.eup %5586 }
 0x12a   :  { %829 = vmatprep.mubr.f32.mxu0 %v7216_v57  ;;  %942 = vmatprep.mubr.f32.mxu1 %v7216_v57  ;;  %v5589_v8 = vpop.eup %5588 }
 0x12b   :  { %4408 = vmatprep.subr.bf16.mxu0 %v6273_v30  ;;  %4440 = vmatprep.subr.bf16.mxu1 %v6275_v31 }
 0x12c   :  { %4205 = vmatmul.mubr.msk.f32.gmra.mrb[28].mxu0 %vm408_vm1, %v5579_v36  ;;  %4213 = vmatmul.mubr.msk.f32.gmra.mrb[28].mxu1 %vm408_vm1, %v5579_v36  ;;  %v1126_v36 = vld [vmem:[#allocation4 + $0x398] sm:$0xff] }
 0x12d   :  { %4410 = vmatpush1.bf16.msra.mxu0 %v6283_v38  ;;  %4442 = vmatpush1.bf16.msra.mxu1 %v6285_v40  ;;  %v6361_v54 = vpack.c.bf16 %v1134_v37, %v1126_v36  ;;  %v1056_v36 = vld [vmem:[#allocation4 + $0x168] sm:$0xff]  ;;  %v1050_v37 = vld [vmem:[#allocation4 + $0x138] sm:$0xff] }
 0x12e   :  { %835 = vmatprep.mubr.f32.mxu0 %v7216_v57  ;;  %948 = vmatprep.mubr.f32.mxu1 %v7216_v57  ;;  %v6405_v56 = vpack.c.bf16 %v1056_v36, %v1048_v35  ;;  %v1088_v35 = vld [vmem:[#allocation4 + $0x268] sm:$0xff]  ;;  %v1082_v36 = vld [vmem:[#allocation4 + $0x238] sm:$0xff] }
 0x12f   :  { %4412 = vmatprep.subr.bf16.mxu0 %v6293_v47  ;;  %4444 = vmatprep.subr.bf16.mxu1 %v6295_v48  ;;  %7323 = vst [vmem:[#allocation31_spill] sm:$0xff] %v6361_v54 }
 0x130   :  { %4206 = vmatmul.mubr.msk.f32.gmra.mrb[30].mxu0 %vm408_vm1, %v5581_v61  ;;  %4214 = vmatmul.mubr.msk.f32.gmra.mrb[30].mxu1 %vm408_vm1, %v5581_v61  ;;  %v6367_v61 = vpack.c.bf16 %v1131_v24, %v1123_v46  ;;  %v6399_v46 = vpack.c.bf16 %v1039_v26, %v1031_v25  ;;  %v1065_v26 = vld [vmem:[#allocation4 + $0x1b0] sm:$0xff] }
 0x131   :  { %4414 = vmatpush1.bf16.msra.mxu0 %v6301_v55  ;;  %4446 = vmatpush1.bf16.msra.mxu1 %v6303_v42 }
 0x132   :  { %841 = vmatprep.mubr.f32.mxu0 %v7216_v57  ;;  %954 = vmatprep.mubr.f32.mxu1 %v7216_v57  ;;  %7324 = vst [vmem:[#allocation32_spill] sm:$0xff] %v6367_v61 }
 0x133   :  { %4416 = vmatprep.subr.bf16.mxu0 %v6309_v62  ;;  %4448 = vmatprep.subr.bf16.mxu1 %v6311_v63 }
 0x134   :  { %4207 = vmatmul.mubr.msk.f32.gmra.mrb[32].mxu0 %vm408_vm1, %v5583_v4  ;;  %4215 = vmatmul.mubr.msk.f32.gmra.mrb[32].mxu1 %vm408_vm1, %v5583_v4  ;;  %v1025_v4 = vld [vmem:[#allocation4 + $0x70] sm:$0xff] }
 0x135   :  { %4418 = vmatpush1.bf16.msra.mxu0 %v6319_v6  ;;  %4450 = vmatpush1.bf16.msra.mxu1 %v6321_v7  ;;  %v6385_v19 = vpack.c.bf16 %v1025_v4, %v1017_v3  ;;  %v1066_v3 = vld [vmem:[#allocation4 + $0x1b8] sm:$0xff] }
 0x136   :  { %847 = vmatprep.mubr.f32.mxu0 %v7216_v57  ;;  %960 = vmatprep.mubr.f32.mxu1 %v7216_v57  ;;  %v1074_v4 = vld [vmem:[#allocation4 + $0x1f8] sm:$0xff] }
 0x137   :  { %4420 = vmatprep.subr.bf16.mxu0 %v6327_v39  ;;  %4452 = vmatprep.subr.bf16.mxu1 %v6329_v53  ;;  %v6423_v25 = vpack.c.bf16 %v1074_v4, %v1066_v3  ;;  %v1089_v3 = vld [vmem:[#allocation4 + $0x270] sm:$0xff]  ;;  %v1096_v4 = vld [vmem:[#allocation4 + $0x2a8] sm:$0xff] }
 0x138   :  { %4208 = vmatmul.mubr.msk.f32.gmra.mrb[34].mxu0 %vm408_vm1, %v5585_v29  ;;  %4216 = vmatmul.mubr.msk.f32.gmra.mrb[34].mxu1 %vm408_vm1, %v5585_v29  ;;  %v1033_v29 = vld [vmem:[#allocation4 + $0xb0] sm:$0xff] }
 0x139   :  { %4422 = vmatpush1.bf16.msra.mxu0 %v6335_v20  ;;  %4454 = vmatpush1.bf16.msra.mxu1 %v6337_v21  ;;  %v6401_v24 = vpack.c.bf16 %v1041_v34, %v1033_v29  ;;  %7331 = vst [vmem:[#allocation39_spill] sm:$0xff] %v6423_v25  ;;  %v1073_v29 = vld [vmem:[#allocation4 + $0x1f0] sm:$0xff]  ;;  %v1080_v34 = vld [vmem:[#allocation4 + $0x228] sm:$0xff] }
 0x13a   :  { %853 = vmatprep.mubr.f32.mxu0 %v7216_v57  ;;  %966 = vmatprep.mubr.f32.mxu1 %v7216_v57  ;;  %v6431_v49 = vpack.c.bf16 %v1073_v29, %v1065_v26  ;;  %v1095_v26 = vld [vmem:[#allocation4 + $0x2a0] sm:$0xff] }
 0x13b   :  { %4424 = vmatprep.subr.bf16.mxu0 %v6343_v32  ;;  %4456 = vmatprep.subr.bf16.mxu1 %v6345_v33  ;;  %v1103_v29 = vld [vmem:[#allocation4 + $0x2e0] sm:$0xff] }
 0x13c   :  { %4209 = vmatmul.mubr.msk.f32.gmra.mrb[36].mxu0 %vm408_vm1, %v5587_v41  ;;  %4217 = vmatmul.mubr.msk.f32.gmra.mrb[36].mxu1 %vm408_vm1, %v5587_v41  ;;  %v1058_v41 = vld [vmem:[#allocation4 + $0x178] sm:$0xff]  ;;  %7333 = vst [vmem:[#allocation41_spill] sm:$0xff] %v6431_v49 }
 0x13d   :  { %4426 = vmatpush1.bf16.msra.mxu0 %v6351_v43  ;;  %4458 = vmatpush1.bf16.msra.mxu1 %v6353_v44  ;;  %v6407_v58 = vpack.c.bf16 %v1058_v41, %v1050_v37  ;;  %v1090_v37 = vld [vmem:[#allocation4 + $0x278] sm:$0xff]  ;;  %v6429_v41 = vpack.c.bf16 %v1071_v15, %v1063_v14  ;;  %v6443_v15 = vpack.c.bf16 %v1089_v3, %v1081_v2  ;;  %v1111_v2 = vld [vmem:[#allocation4 + $0x320] sm:$0xff] }
 0x13e   :  { %859 = vmatprep.mubr.f32.mxu0 %v7216_v57  ;;  %972 = vmatprep.mubr.f32.mxu1 %v7216_v57  ;;  %v6437_v1 = vpack.c.bf16 %v1090_v37, %v1082_v36  ;;  %v1097_v36 = vld [vmem:[#allocation4 + $0x2b0] sm:$0xff]  ;;  %v1119_v3 = vld [vmem:[#allocation4 + $0x360] sm:$0xff] }
 0x13f   :  { %4428 = vmatprep.subr.bf16.mxu0 %v6359_v52  ;;  %4460 = vmatprep.subr.bf16.mxu1 %v6361_v54  ;;  %7332 = vst [vmem:[#allocation40_spill] sm:$0xff] %v6429_v41  ;;  %7337 = vst [vmem:[#allocation45_spill] sm:$0xff] %v6443_v15  ;;  %v1105_v37 = vld [vmem:[#allocation4 + $0x2f0] sm:$0xff] }
 0x140   :  { %4210 = vmatmul.mubr.msk.f32.gmra.mrb[38].mxu0 %vm408_vm1, %v5589_v8  ;;  %4218 = vmatmul.mubr.msk.f32.gmra.mrb[38].mxu1 %vm408_vm1, %v5589_v8  ;;  %v6417_v8 = vpack.c.bf16 %v1057_v60, %v1049_v59  ;;  %v1087_v59 = vld [vmem:[#allocation4 + $0x260] sm:$0xff]  ;;  %v6435_v60 = vpack.c.bf16 %v1088_v35, %v1080_v34  ;;  %7335 = vst [vmem:[#allocation43_spill] sm:$0xff] %v6437_v1 }
 0x141   :  { %4430 = vmatpush1.bf16.msra.mxu0 %v6367_v61  ;;  %4462 = vmatpush1.bf16.msra.mxu1 %v6369_v0  ;;  %v6441_v14 = vpack.c.bf16 %v1087_v59, %v1079_v51  ;;  %v6453_v51 = vpack.c.bf16 %v1103_v29, %v1095_v26  ;;  %v6455_v59 = vpack.c.bf16 %v1105_v37, %v1097_v36  ;;  %v1127_v36 = vld [vmem:[#allocation4 + $0x3a0] sm:$0xff]  ;;  %v1137_v37 = vld [vmem:[#allocation4 + $0x3f0] sm:$0xff] }
 0x142   :  { %1217 = vmatprep.mubr.f32.mxu0 %v7216_v57  ;;  %1292 = vmatprep.mubr.f32.mxu1 %v7216_v57  ;;  %7329 = vst [vmem:[#allocation37_spill] sm:$0xff] %v6417_v8  ;;  %7334 = vst [vmem:[#allocation42_spill] sm:$0xff] %v6435_v60  ;;  %v6465_v26 = vpack.c.bf16 %v1119_v3, %v1111_v2 }
 0x143   :  { %4464 = vmatprep.subr.bf16.mxu0 %v6375_v11  ;;  %4496 = vmatprep.subr.bf16.mxu1 %v6377_v13  ;;  %7336 = vst [vmem:[#allocation44_spill] sm:$0xff] %v6441_v14 }
 0x144   :  { %1218 = vmatmul.mubr.f32.vlgmr.msra.gmra.mrb[8].mxu0 %v7216_v57  ;;  %1293 = vmatmul.mubr.f32.vlgmr.msra.gmra.mrb[8].mxu1 %v7216_v57 }
 0x145   :  { %4466 = vmatpush1.bf16.msra.mxu0 %v6383_v12  ;;  %4498 = vmatpush1.bf16.msra.mxu1 %v6385_v19 }
 0x146   :  { %4468 = vmatprep.subr.bf16.mxu0 %v6389_v27  ;;  %4500 = vmatprep.subr.bf16.mxu1 %v6391_v28 }
 0x147   :  { %1223 = vmatprep.mubr.f32.mxu0 %v7216_v57  ;;  %1298 = vmatprep.mubr.f32.mxu1 %v7216_v57 }
 0x148   :  { %1224 = vmatmul.mubr.f32.gmra.mrb[40].mxu0 %v7216_v57  ;;  %1299 = vmatmul.mubr.f32.gmra.mrb[40].mxu1 %v7216_v57 }
 0x149   :  { %4470 = vmatpush1.bf16.msra.mxu0 %v6399_v46  ;;  %4502 = vmatpush1.bf16.msra.mxu1 %v6401_v24 }
 0x14a   :  { %4472 = vmatprep.subr.bf16.mxu0 %v6405_v56  ;;  %4504 = vmatprep.subr.bf16.mxu1 %v6407_v58 }
 0x14b   :  { %1367 = vmatprep.mubr.f32.mxu0 %v7216_v57  ;;  %1442 = vmatprep.mubr.f32.mxu1 %v7216_v57  ;;  %v1104_v57 = vld [vmem:[#allocation4 + $0x2e8] sm:$0xff] }
 0x14c   :  { %v6447_v34 = vpack.c.bf16 %v1104_v57, %v1096_v4  ;;  %v1121_v4 = vld [vmem:[#allocation4 + $0x370] sm:$0xff] }
 0x14d   :  { %4474 = vmatpush1.bf16.msra.mxu0 %v6415_v5  ;;  %4506 = vmatpush1.bf16.msra.mxu1 %v6417_v8  ;;  %v1098_v5 = vld [vmem:[#allocation4 + $0x2b8] sm:$0xff] }
 0x14e   :  { %4476 = vmatprep.subr.bf16.mxu0 %v6421_v16  ;;  %4508 = vmatprep.subr.bf16.mxu1 %v6423_v25  ;;  %v1106_v8 = vld [vmem:[#allocation4 + $0x2f8] sm:$0xff]  ;;  %v1112_v25 = vld [vmem:[#allocation4 + $0x328] sm:$0xff] }
 0x14f   :  { %v6449_v35 = vpack.c.bf16 %v1106_v8, %v1098_v5  ;;  %v1114_v16 = vld [vmem:[#allocation4 + $0x338] sm:$0xff]  ;;  %v1113_v8 = vld [vmem:[#allocation4 + $0x330] sm:$0xff] }
 0x150   :  { %v6467_v29 = vpack.c.bf16 %v1121_v4, %v1113_v8  ;;  %v386_v8 = vld [vmem:[%s7213_s9] sm:$0xf] }
 0x151   :  { %4478 = vmatpush1.bf16.msra.mxu0 %v6429_v41  ;;  %4510 = vmatpush1.bf16.msra.mxu1 %v6431_v49  ;;  %v1120_v41 = vld [vmem:[#allocation4 + $0x368] sm:$0xff]  ;;  %v1122_v49 = vld [vmem:[#allocation4 + $0x378] sm:$0xff] }
 0x152   :  { %4480 = vmatprep.subr.bf16.mxu0 %v6435_v60  ;;  %4512 = vmatprep.subr.bf16.mxu1 %v6437_v1  ;;  %v6459_v57 = vpack.c.bf16 %v1120_v41, %v1112_v25  ;;  %v6461_v5 = vpack.c.bf16 %v1122_v49, %v1114_v16  ;;  %v1128_v1 = vld [vmem:[#allocation4 + $0x3a8] sm:$0xff]  ;;  %v1130_v60 = vld [vmem:[#allocation4 + $0x3b8] sm:$0xff]  ;;  %v1135_v41 = vld [vmem:[#allocation4 + $0x3e0] sm:$0xff] }
 0x153   :  { %v1129_v49 = vld [vmem:[#allocation4 + $0x3b0] sm:$0xff]  ;;  %v6477_v2 = vpack.c.bf16 %v1135_v41, %v1127_v36 }
 0x154   :  { %v6479_v3 = vpack.c.bf16 %v1137_v37, %v1129_v49 }
 0x155   :  { %4482 = vmatpush1.bf16.msra.mxu0 %v6441_v14  ;;  %4514 = vmatpush1.bf16.msra.mxu1 %v6443_v15  ;;  %v1136_v14 = vld [vmem:[#allocation4 + $0x3e8] sm:$0xff]  ;;  %v1138_v15 = vld [vmem:[#allocation4 + $0x3f8] sm:$0xff] }
 0x156   :  { %4484 = vmatprep.subr.bf16.mxu0 %v6447_v34  ;;  %4516 = vmatprep.subr.bf16.mxu1 %v6449_v35  ;;  %v6471_v16 = vpack.c.bf16 %v1136_v14, %v1128_v1  ;;  %v6473_v25 = vpack.c.bf16 %v1138_v15, %v1130_v60  ;;  %v7338_v60 = vmov 0.0   ;;  %v388_v1 = vlaneseq }
 0x158   :  { %v6527_v14 = vshrl.u32 %v388_v1, 7 }
 0x159   :  { %4486 = vmatpush1.bf16.msra.mxu0 %v6453_v51  ;;  %4518 = vmatpush1.bf16.msra.mxu1 %v6455_v59 }
 0x15a   :  { %4488 = vmatprep.subr.bf16.mxu0 %v6459_v57  ;;  %4520 = vmatprep.subr.bf16.mxu1 %v6461_v5  ;;  %v390_v15 = vsub.s32 0, %v6527_v14  ;;  %v394_v4 = vsub.s32 1, %v6527_v14 }
 0x15c   :  { %v6534_v36 = vrot.slane %v386_v8, %v390_v15  ;;  %v6536_v41 = vrot.slane %v386_v8, %v394_v4 }
 0x15d   :  { %4490 = vmatpush1.bf16.msra.mxu0 %v6465_v26  ;;  %4522 = vmatpush1.bf16.msra.mxu1 %v6467_v29 }
 0x15e   :  { %4492 = vmatprep.subr.bf16.mxu0 %v6471_v16  ;;  %4524 = vmatprep.subr.bf16.mxu1 %v6473_v25  ;;  %7339 = vst [vmem:[#allocation46_spill] sm:$0xff] %v6534_v36  ;;  %7340 = vst [vmem:[#allocation47_spill] sm:$0xff] %v6536_v41 }
 0x161   :  { %4494 = vmatpush1.bf16.msra.mxu0 %v6477_v2  ;;  %4526 = vmatpush1.bf16.msra.mxu1 %v6479_v3 }
 0x162   :  { %4528 = vmatprep.subr.bf16.mxu0 %v6201_v45  ;;  %4560 = vmatprep.subr.bf16.mxu1 %v6208_v50 }
 0x164   :  { %1368 = vmatmul.mubr.f32.vlgmr.msra.gmra.mrb[42].mxu0 %v7338_v60  ;;  %1443 = vmatmul.mubr.f32.vlgmr.msra.gmra.mrb[42].mxu1 %v7338_v60 }
 0x165   :  { %1371 = vmatprep.mubr.f32.mxu0 %v7338_v60  ;;  %1446 = vmatprep.mubr.f32.mxu1 %v7338_v60 }
 0x166   :  { %4530 = vmatpush1.bf16.msra.mxu0 %v6251_v9  ;;  %4562 = vmatpush1.bf16.msra.mxu1 %v6253_v10 }
 0x167   :  { %4532 = vmatprep.subr.bf16.mxu0 %v6257_v17  ;;  %4564 = vmatprep.subr.bf16.mxu1 %v6259_v18 }
 0x168   :  { %1372 = vmatmul.mubr.f32.gmra.mrb[38].mxu0 %v7338_v60  ;;  %1447 = vmatmul.mubr.f32.gmra.mrb[38].mxu1 %v7338_v60 }
 0x169   :  { %1595 = vmatprep.mubr.f32.mxu0 %v7338_v60  ;;  %1670 = vmatprep.mubr.f32.mxu1 %v7338_v60 }
 0x16a   :  { %4534 = vmatpush1.bf16.msra.mxu0 %v6265_v22  ;;  %4566 = vmatpush1.bf16.msra.mxu1 %v6267_v23 }
 0x16b   :  { %4536 = vmatprep.subr.bf16.mxu0 %v6273_v30  ;;  %4568 = vmatprep.subr.bf16.mxu1 %v6275_v31 }
 0x16e   :  { %4538 = vmatpush1.bf16.msra.mxu0 %v6283_v38  ;;  %4570 = vmatpush1.bf16.msra.mxu1 %v6285_v40 }
 0x16f   :  { %4540 = vmatprep.subr.bf16.mxu0 %v6293_v47  ;;  %4572 = vmatprep.subr.bf16.mxu1 %v6295_v48 }
 0x172   :  { %4542 = vmatpush1.bf16.msra.mxu0 %v6301_v55  ;;  %4574 = vmatpush1.bf16.msra.mxu1 %v6303_v42 }
 0x173   :  { %4544 = vmatprep.subr.bf16.mxu0 %v6309_v62  ;;  %4576 = vmatprep.subr.bf16.mxu1 %v6311_v63 }
 0x176   :  { %4546 = vmatpush1.bf16.msra.mxu0 %v6319_v6  ;;  %4578 = vmatpush1.bf16.msra.mxu1 %v6321_v7 }
 0x177   :  { %4548 = vmatprep.subr.bf16.mxu0 %v6327_v39  ;;  %4580 = vmatprep.subr.bf16.mxu1 %v6329_v53 }
 0x17a   :  { %4550 = vmatpush1.bf16.msra.mxu0 %v6335_v20  ;;  %4582 = vmatpush1.bf16.msra.mxu1 %v6337_v21 }
 0x17b   :  { %4552 = vmatprep.subr.bf16.mxu0 %v6343_v32  ;;  %4584 = vmatprep.subr.bf16.mxu1 %v6345_v33  ;;  %v398_v32 = vsub.s32 2, %v6527_v14 }
 0x17d   :  { %v6545_v39 = vrot.slane %v386_v8, %v398_v32 }
 0x17e   :  { %4554 = vmatpush1.bf16.msra.mxu0 %v6351_v43  ;;  %4586 = vmatpush1.bf16.msra.mxu1 %v6353_v44 }
 0x17f   :  { %4556 = vmatprep.subr.bf16.mxu0 %v6359_v52  ;;  %4588 = vmatprep.subr.bf16.mxu1 %v6361_v54  ;;  %7342 = vst [vmem:[#allocation49_spill] sm:$0xff] %v6545_v39 }
 0x182   :  { %4558 = vmatpush1.bf16.msra.mxu0 %v6367_v61  ;;  %4590 = vmatpush1.bf16.msra.mxu1 %v6369_v0 }
 0x183   :  { %4592 = vmatprep.subr.bf16.mxu0 %v6375_v11  ;;  %4624 = vmatprep.subr.bf16.mxu1 %v6377_v13  ;;  %v402_v11 = vsub.s32 3, %v6527_v14 }
 0x185   :  { %v6541_v44 = vrot.slane %v386_v8, %v402_v11 }
 0x187   :  { %7341 = vst [vmem:[#allocation48_spill] sm:$0xff] %v6541_v44 }
 0x217   :  { %v1219_v49 = vpop.f32.mrb[8].mxu0  ;;  %v1294_v37 = vpop.f32.mrb[8].mxu1 }
 0x218   :  { %v5423_v13 = vadd.f32 %v1219_v49, %v6534_v36  ;;  %v1221_v1 = vpop.f32.mrb[9].mxu0  ;;  %v1296_v0 = vpop.f32.mrb[9].mxu1  ;;  %v5439_v36 = vadd.f32 %v1294_v37, %v6545_v39 }
 0x219   :  { %v5424_v61 = vadd.f32 %v1221_v1, %v6536_v41  ;;  %v5440_v53 = vadd.f32 %v1296_v0, %v6541_v44 }
 0x21a   :  { %v4219_v54 = vmul.f32 -1.442695, %v5423_v13 }
 0x21b   :  { %v4220_v52 = vmul.f32 -1.442695, %v5424_v61  ;;  %v1225_v43 = vpop.f32.mrb[40].mxu0  ;;  %v1300_v33 = vpop.f32.mrb[40].mxu1  ;;  %v4221_v49 = vmul.f32 -1.442695, %v5440_v53 }
 0x21c   :  { %5590 = vpow2.f32 %v4219_v54  ;;  %v1226_v21 = vpop.f32.mrb[41].mxu0  ;;  %v1301_v20 = vpop.f32.mrb[41].mxu1  ;;  %v707_v53 = vld [vmem:[%s7214_s10] sm:$0xf]  ;;  %s5898_s10 = smov [#allocation7]  }
 0x21d   :  { %5592 = vpow2.f32 %v4220_v52  ;;  %s4136_s19 = sshll.u32 %s5898_s10, 4  ;;  %s4137_s19 = int_to_ptr.vmem [resolvable:$true] %s4136_s19 }
 0x21e   :  { %5594 = vpow2.f32 %v4221_v49  ;;  %s5868_s20 = scalar_lea.vmem %s4137_s19, 2048  ;;  %p5873_p9 = scmp.lt.s32.totalorder %s4137_s19, %s4137_s19 }
 0x21f   :  { %5596 = vtanh.f32 %v5439_v36  ;;  %p5869_p8 = scmp.ne.s32.totalorder %s4137_s19, %s5868_s20  ;;  %p5874_p10 = scmp.lt.s32.totalorder %s5868_s20, %s5868_s20 }
 0x221   :  { %p5875_p11 = por %p5874_p10, %p5873_p9 }
 0x223   :  { %p5876_p12 = pnand %p5875_p11, %p5869_p8 }
 0x226   :  { %v5591_v1 = vpop.eup %5590 }
 0x227   :  { %v5593_v13 = vpop.eup %5592  ;;  %v1470_v61 = vadd.f32 1.0, %v5591_v1 }
 0x228   :  { %v1471_v43 = vadd.f32 1.0, %v5593_v13  ;;  %v5595_v33 = vpop.eup %5594  ;;  %v6553_v13 = vrot.slane %v707_v53, %v390_v15 }
 0x229   :  { %5598 = vrcp.f32 %v1470_v61  ;;  %v5597_v54 = vpop.eup %5596  ;;  %v1472_v14 = vadd.f32 1.0, %v5595_v33  ;;  %v6556_v61 = vrot.slane %v707_v53, %v394_v4  ;;  %v6563_v4 = vrot.slane %v707_v53, %v398_v32 }
 0x22a   :  { %5600 = vrcp.f32 %v1471_v43 }
 0x22b   :  { %5602 = vrcp.f32 %v1472_v14  ;;  %7344 = vst [vmem:[#allocation51_spill] sm:$0xff] %v6563_v4 }
 0x233   :  { %v5599_v21 = vpop.eup %5598 }
 0x234   :  { %v5601_v20 = vpop.eup %5600  ;;  %v1481_v52 = vmul.f32 %v5599_v21, %v5597_v54 }
 0x235   :  { %v1480_v0 = vmul.f32 0.0, %v5601_v20  ;;  %v5603_v15 = vpop.eup %5602 }
 0x237   :  { %v6551_v8 = vadd.f32 %v1481_v52, %v1480_v0  ;;  %v1369_v37 = vpop.f32.mrb[42].mxu0  ;;  %v1444_v1 = vpop.f32.mrb[42].mxu1 }
 0x238   :  { %v1370_v36 = vpop.f32.mrb[43].mxu0  ;;  %v1445_v49 = vpop.f32.mrb[43].mxu1  ;;  %v6560_v1 = vrot.slane %v707_v53, %v402_v11 }
 0x239   :  { %5604 = vtanh.f32 %v6551_v8 }
 0x23a   :  { %7343 = vst [vmem:[#allocation50_spill] sm:$0xff] %v6560_v1 }
 0x23b   :  { %v1373_v43 = vpop.f32.mrb[38].mxu0  ;;  %v1448_v33 = vpop.f32.mrb[38].mxu1 }
 0x23c   :  { %v5469_v54 = vadd.f32 %v1373_v43, %v6553_v13  ;;  %v1375_v21 = vpop.f32.mrb[39].mxu0  ;;  %v1450_v20 = vpop.f32.mrb[39].mxu1  ;;  %v5485_v11 = vadd.f32 %v1448_v33, %v6563_v4  ;;  %v7345_v33 = vld [vmem:[#allocation36_spill] sm:$0xff] }
 0x23d   :  { %v5470_v52 = vadd.f32 %v1375_v21, %v6556_v61  ;;  %v5486_v36 = vadd.f32 %v1450_v20, %v6560_v1  ;;  %v7346_v20 = vld [vmem:[#allocation37_spill] sm:$0xff] }
 0x23e   :  { %v4222_v0 = vmul.f32 -1.442695, %v5469_v54 }
 0x23f   :  { %v4223_v37 = vmul.f32 -1.442695, %v5470_v52  ;;  %v4224_v43 = vmul.f32 -1.442695, %v5486_v36  ;;  %v7347_v52 = vld [vmem:[#allocation38_spill] sm:$0xff]  ;;  %v7352_v36 = vld [vmem:[#allocation43_spill] sm:$0xff] }
 0x240   :  { %5606 = vpow2.f32 %v4222_v0  ;;  %v7348_v0 = vld [vmem:[#allocation39_spill] sm:$0xff] }
 0x241   :  { %5608 = vpow2.f32 %v4223_v37  ;;  %v7349_v37 = vld [vmem:[#allocation40_spill] sm:$0xff] }
 0x242   :  { %5610 = vpow2.f32 %v4224_v43 }
 0x243   :  { %v5605_v14 = vpop.eup %5604  ;;  %5612 = vtanh.f32 %v5485_v11 }
 0x244   :  { %v6565_v49 = vmul.f32 %v5605_v14, %v5603_v15  ;;  %v7350_v15 = vld [vmem:[#allocation41_spill] sm:$0xff]  ;;  %v7351_v14 = vld [vmem:[#allocation42_spill] sm:$0xff] }
 0x246   :  { %1512 = vst [vmem:[#allocation7] sm:$0xff] %v6565_v49  ;;  %1596 = vmatmul.mubr.f32.vlgmr.msra.gmra.mrb[10].mxu0 %v6565_v49  ;;  %1671 = vmatmul.mubr.f32.vlgmr.msra.gmra.mrb[10].mxu1 %v6565_v49 }
 0x247   :  { %4594 = vmatpush1.bf16.msra.mxu0 %v6383_v12  ;;  %4626 = vmatpush1.bf16.msra.mxu1 %v6385_v19 }
 0x248   :  { %4596 = vmatprep.subr.bf16.mxu0 %v6389_v27  ;;  %4628 = vmatprep.subr.bf16.mxu1 %v6391_v28 }
 0x249   :  { %1601 = vmatprep.mubr.f32.mxu0 %v7338_v60  ;;  %1676 = vmatprep.mubr.f32.mxu1 %v7338_v60 }
 0x24a   :  { %v5607_v32 = vpop.eup %5606 }
 0x24b   :  { %v5609_v53 = vpop.eup %5608  ;;  %v1494_v54 = vadd.f32 1.0, %v5607_v32  ;;  %4598 = vmatpush1.bf16.msra.mxu0 %v6399_v46  ;;  %4630 = vmatpush1.bf16.msra.mxu1 %v6401_v24 }
 0x24c   :  { %v1495_v21 = vadd.f32 1.0, %v5609_v53  ;;  %4600 = vmatprep.subr.bf16.mxu0 %v6405_v56  ;;  %4632 = vmatprep.subr.bf16.mxu1 %v6407_v58  ;;  %v5611_v43 = vpop.eup %5610  ;;  %v7353_v53 = vld [vmem:[#allocation44_spill] sm:$0xff] }
 0x24d   :  { %5614 = vrcp.f32 %v1494_v54  ;;  %v5613_v11 = vpop.eup %5612  ;;  %v7354_v54 = vld [vmem:[#allocation45_spill] sm:$0xff] }
 0x24e   :  { %5616 = vrcp.f32 %v1495_v21 }
 0x24f   :  { %4602 = vmatpush1.bf16.msra.mxu0 %v7345_v33  ;;  %4634 = vmatpush1.bf16.msra.mxu1 %v7346_v20 }
 0x250   :  { %4604 = vmatprep.subr.bf16.mxu0 %v7347_v52  ;;  %4636 = vmatprep.subr.bf16.mxu1 %v7348_v0  ;;  %v1496_v52 = vadd.f32 1.0, %v5611_v43  ;;  %v7356_v43 = vld [vmem:[#allocation23_spill] sm:$0xff] }
 0x252   :  { %5618 = vrcp.f32 %v1496_v52 }
 0x253   :  { %4606 = vmatpush1.bf16.msra.mxu0 %v7349_v37  ;;  %4638 = vmatpush1.bf16.msra.mxu1 %v7350_v15 }
 0x254   :  { %4608 = vmatprep.subr.bf16.mxu0 %v7351_v14  ;;  %4640 = vmatprep.subr.bf16.mxu1 %v7352_v36 }
 0x257   :  { %v5615_v32 = vpop.eup %5614  ;;  %4610 = vmatpush1.bf16.msra.mxu0 %v7353_v53  ;;  %4642 = vmatpush1.bf16.msra.mxu1 %v7354_v54 }
 0x258   :  { %v5617_v21 = vpop.eup %5616  ;;  %v1505_v4 = vmul.f32 %v5615_v32, %v5613_v11  ;;  %4612 = vmatprep.subr.bf16.mxu0 %v6447_v34  ;;  %4644 = vmatprep.subr.bf16.mxu1 %v6449_v35  ;;  %v7357_v11 = vld [vmem:[#allocation24_spill] sm:$0xff]  ;;  %v7358_v32 = vld [vmem:[#allocation25_spill] sm:$0xff] }
 0x259   :  { %v1504_v37 = vmul.f32 0.0, %v5617_v21  ;;  %v7359_v21 = vld [vmem:[#allocation26_spill] sm:$0xff] }
 0x25b   :  { %v6593_v15 = vadd.f32 %v1505_v4, %v1504_v37  ;;  %4614 = vmatpush1.bf16.msra.mxu0 %v6453_v51  ;;  %4646 = vmatpush1.bf16.msra.mxu1 %v6455_v59 }
 0x25c   :  { %4616 = vmatprep.subr.bf16.mxu0 %v6459_v57  ;;  %4648 = vmatprep.subr.bf16.mxu1 %v6461_v5  ;;  %v5619_v4 = vpop.eup %5618 }
 0x25d   :  { %5620 = vtanh.f32 %v6593_v15 }
 0x25f   :  { %4618 = vmatpush1.bf16.msra.mxu0 %v6465_v26  ;;  %4650 = vmatpush1.bf16.msra.mxu1 %v6467_v29 }
 0x260   :  { %4620 = vmatprep.subr.bf16.mxu0 %v6471_v16  ;;  %4652 = vmatprep.subr.bf16.mxu1 %v6473_v25 }
 0x263   :  { %4622 = vmatpush1.bf16.msra.mxu0 %v6477_v2  ;;  %4654 = vmatpush1.bf16.msra.mxu1 %v6479_v3 }
 0x264   :  { %4656 = vmatprep.subr.bf16.mxu0 %v6201_v45  ;;  %4688 = vmatprep.subr.bf16.mxu1 %v6208_v50 }
 0x267   :  { %v5621_v52 = vpop.eup %5620 }
 0x268   :  { %v1508_v37 = vmul.f32 %v5621_v52, %v5619_v4  ;;  %v7360_v4 = vld [vmem:[#allocation27_spill] sm:$0xff]  ;;  %v7361_v52 = vld [vmem:[#allocation28_spill] sm:$0xff] }
 0x26a   :  { %1516 = vst [vmem:[#allocation7 + $0x78] sm:$0xff] %v1508_v37  ;;  %1602 = vmatmul.mubr.f32.gmra.mrb[44].mxu0 %v1508_v37  ;;  %1677 = vmatmul.mubr.f32.gmra.mrb[44].mxu1 %v1508_v37 }
 0x26b   :  { %1745 = vmatprep.mubr.f32.mxu0 %v7338_v60  ;;  %1820 = vmatprep.mubr.f32.mxu1 %v7338_v60 }
 0x26e   :  { %1746 = vmatmul.mubr.f32.vlgmr.msra.gmra.mrb[46].mxu0 %v6565_v49  ;;  %1821 = vmatmul.mubr.f32.vlgmr.msra.gmra.mrb[46].mxu1 %v6565_v49  ;;  %v7355_v49 = vld [vmem:[#allocation22_spill] sm:$0xff] }
 0x26f   :  { %1749 = vmatprep.mubr.f32.mxu0 %v7338_v60  ;;  %1824 = vmatprep.mubr.f32.mxu1 %v7338_v60 }
 0x270   :  { %4658 = vmatpush1.bf16.msra.mxu0 %v6251_v9  ;;  %4690 = vmatpush1.bf16.msra.mxu1 %v6253_v10 }
 0x271   :  { %4660 = vmatprep.subr.bf16.mxu0 %v6257_v17  ;;  %4692 = vmatprep.subr.bf16.mxu1 %v6259_v18 }
 0x272   :  { %1750 = vmatmul.mubr.f32.gmra.mrb[36].mxu0 %v1508_v37  ;;  %1825 = vmatmul.mubr.f32.gmra.mrb[36].mxu1 %v1508_v37  ;;  %v7362_v37 = vld [vmem:[#allocation29_spill] sm:$0xff] }
 0x273   :  { %1973 = vmatprep.mubr.f32.mxu0 %v7338_v60  ;;  %2048 = vmatprep.mubr.f32.mxu1 %v7338_v60 }
 0x274   :  { %4662 = vmatpush1.bf16.msra.mxu0 %v6265_v22  ;;  %4694 = vmatpush1.bf16.msra.mxu1 %v6267_v23 }
 0x275   :  { %4664 = vmatprep.subr.bf16.mxu0 %v6273_v30  ;;  %4696 = vmatprep.subr.bf16.mxu1 %v6275_v31 }
 0x278   :  { %4666 = vmatpush1.bf16.msra.mxu0 %v6283_v38  ;;  %4698 = vmatpush1.bf16.msra.mxu1 %v6285_v40 }
 0x279   :  { %4668 = vmatprep.subr.bf16.mxu0 %v6293_v47  ;;  %4700 = vmatprep.subr.bf16.mxu1 %v6295_v48 }
 0x27c   :  { %4670 = vmatpush1.bf16.msra.mxu0 %v6301_v55  ;;  %4702 = vmatpush1.bf16.msra.mxu1 %v6303_v42 }
 0x27d   :  { %4672 = vmatprep.subr.bf16.mxu0 %v6309_v62  ;;  %4704 = vmatprep.subr.bf16.mxu1 %v6311_v63  ;;  %v7363_v63 = vld [vmem:[#allocation30_spill] sm:$0xff] }
 0x27e   :  { %v7369_v62 = vld [vmem:[#allocation46_spill] sm:$0xff] }
 0x280   :  { %4674 = vmatpush1.bf16.msra.mxu0 %v6319_v6  ;;  %4706 = vmatpush1.bf16.msra.mxu1 %v6321_v7  ;;  %v7364_v6 = vld [vmem:[#allocation31_spill] sm:$0xff]  ;;  %v7365_v7 = vld [vmem:[#allocation32_spill] sm:$0xff] }
 0x281   :  { %4676 = vmatprep.subr.bf16.mxu0 %v7355_v49  ;;  %4708 = vmatprep.subr.bf16.mxu1 %v7356_v43  ;;  %v7366_v49 = vld [vmem:[#allocation33_spill] sm:$0xff]  ;;  %v7367_v43 = vld [vmem:[#allocation34_spill] sm:$0xff] }
 0x284   :  { %4678 = vmatpush1.bf16.msra.mxu0 %v7357_v11  ;;  %4710 = vmatpush1.bf16.msra.mxu1 %v7358_v32  ;;  %v7368_v11 = vld [vmem:[#allocation35_spill] sm:$0xff] }
 0x285   :  { %4680 = vmatprep.subr.bf16.mxu0 %v7359_v21  ;;  %4712 = vmatprep.subr.bf16.mxu1 %v7360_v4 }
 0x288   :  { %4682 = vmatpush1.bf16.msra.mxu0 %v7361_v52  ;;  %4714 = vmatpush1.bf16.msra.mxu1 %v7362_v37 }
 0x289   :  { %4684 = vmatprep.subr.bf16.mxu0 %v7363_v63  ;;  %4716 = vmatprep.subr.bf16.mxu1 %v7364_v6 }
 0x28c   :  { %4686 = vmatpush1.bf16.msra.mxu0 %v7365_v7  ;;  %4718 = vmatpush1.bf16.msra.mxu1 %v7366_v49 }
 0x28d   :  { %4720 = vmatprep.subr.bf16.mxu0 %v7367_v43  ;;  %4752 = vmatprep.subr.bf16.mxu1 %v7368_v11 }
 0x319   :  { %v1597_v32 = vpop.f32.mrb[10].mxu0  ;;  %v1672_v21 = vpop.f32.mrb[10].mxu1 }
 0x31a   :  { %v5425_v4 = vadd.f32 %v1597_v32, %v7369_v62  ;;  %v1599_v42 = vpop.f32.mrb[11].mxu0  ;;  %v1674_v52 = vpop.f32.mrb[11].mxu1  ;;  %v5441_v49 = vadd.f32 %v1672_v21, %v6545_v39 }
 0x31b   :  { %v5426_v37 = vadd.f32 %v1599_v42, %v6536_v41  ;;  %v5442_v7 = vadd.f32 %v1674_v52, %v6541_v44 }
 0x31c   :  { %v4225_v55 = vmul.f32 -1.442695, %v5425_v4 }
 0x31d   :  { %v4226_v63 = vmul.f32 -1.442695, %v5426_v37  ;;  %v4227_v6 = vmul.f32 -1.442695, %v5442_v7 }
 0x31e   :  { %5622 = vpow2.f32 %v4225_v55 }
 0x31f   :  { %5624 = vpow2.f32 %v4226_v63 }
 0x320   :  { %5626 = vpow2.f32 %v4227_v6 }
 0x321   :  { %5628 = vtanh.f32 %v5441_v49 }
 0x328   :  { %v5623_v43 = vpop.eup %5622 }
 0x329   :  { %v5625_v48 = vpop.eup %5624  ;;  %v1848_v11 = vadd.f32 1.0, %v5623_v43 }
 0x32a   :  { %v1849_v47 = vadd.f32 1.0, %v5625_v48  ;;  %v5627_v32 = vpop.eup %5626 }
 0x32b   :  { %5630 = vrcp.f32 %v1848_v11  ;;  %v5629_v62 = vpop.eup %5628  ;;  %v1850_v55 = vadd.f32 1.0, %v5627_v32 }
 0x32c   :  { %5632 = vrcp.f32 %v1849_v47 }
 0x32d   :  { %5634 = vrcp.f32 %v1850_v55 }
 0x335   :  { %v5631_v42 = vpop.eup %5630 }
 0x336   :  { %v5633_v4 = vpop.eup %5632  ;;  %v1859_v37 = vmul.f32 %v5631_v42, %v5629_v62 }
 0x337   :  { %v1858_v63 = vmul.f32 %v5633_v4, %v6551_v8  ;;  %v5635_v39 = vpop.eup %5634 }
 0x339   :  { %v6653_v52 = vadd.f32 %v1859_v37, %v1858_v63 }
 0x33b   :  { %5636 = vtanh.f32 %v6653_v52 }
 0x33d   :  { %v1603_v7 = vpop.f32.mrb[44].mxu0  ;;  %v1678_v43 = vpop.f32.mrb[44].mxu1 }
 0x33e   :  { %v1604_v6 = vpop.f32.mrb[45].mxu0  ;;  %v1679_v49 = vpop.f32.mrb[45].mxu1  ;;  %v7371_v43 = vld [vmem:[#allocation38_spill] sm:$0xff] }
 0x341   :  { %v1747_v48 = vpop.f32.mrb[46].mxu0  ;;  %v1822_v11 = vpop.f32.mrb[46].mxu1 }
 0x342   :  { %v1748_v47 = vpop.f32.mrb[47].mxu0  ;;  %v1823_v21 = vpop.f32.mrb[47].mxu1  ;;  %v7372_v11 = vld [vmem:[#allocation40_spill] sm:$0xff] }
 0x343   :  { %v7373_v47 = vld [vmem:[#allocation41_spill] sm:$0xff] }
 0x345   :  { %v5637_v44 = vpop.eup %5636  ;;  %v1751_v41 = vpop.f32.mrb[36].mxu0 }
 0x346   :  { %v1826_v62 = vpop.f32.mrb[36].mxu1  ;;  %v5467_v32 = vadd.f32 %v1751_v41, %v6553_v13  ;;  %v1753_v8 = vpop.f32.mrb[37].mxu0  ;;  %v6657_v4 = vmul.f32 %v5637_v44, %v5635_v39  ;;  %v7370_v41 = vld [vmem:[#allocation51_spill] sm:$0xff] }
 0x347   :  { %v1828_v42 = vpop.f32.mrb[37].mxu1  ;;  %v5468_v37 = vadd.f32 %v1753_v8, %v6556_v61  ;;  %v5483_v7 = vadd.f32 %v1826_v62, %v7370_v41 }
 0x348   :  { %v4228_v55 = vmul.f32 -1.442695, %v5467_v32  ;;  %1890 = vst [vmem:[#allocation7 + $0x10] sm:$0xff] %v6657_v4  ;;  %1974 = vmatmul.mubr.f32.vlgmr.msra.gmra.mrb[12].mxu0 %v6657_v4  ;;  %2049 = vmatmul.mubr.f32.vlgmr.msra.gmra.mrb[12].mxu1 %v6657_v4  ;;  %v5484_v39 = vadd.f32 %v1828_v42, %v6560_v1 }
 0x349   :  { %v4229_v63 = vmul.f32 -1.442695, %v5468_v37  ;;  %4722 = vmatpush1.bf16.msra.mxu0 %v6383_v12  ;;  %4754 = vmatpush1.bf16.msra.mxu1 %v6385_v19 }
 0x34a   :  { %5638 = vpow2.f32 %v4228_v55  ;;  %4724 = vmatprep.subr.bf16.mxu0 %v6389_v27  ;;  %4756 = vmatprep.subr.bf16.mxu1 %v6391_v28  ;;  %v4230_v44 = vmul.f32 -1.442695, %v5484_v39 }
 0x34b   :  { %5640 = vpow2.f32 %v4229_v63  ;;  %1979 = vmatprep.mubr.f32.mxu0 %v7338_v60  ;;  %2054 = vmatprep.mubr.f32.mxu1 %v7338_v60 }
 0x34c   :  { %5642 = vpow2.f32 %v4230_v44 }
 0x34d   :  { %4726 = vmatpush1.bf16.msra.mxu0 %v6399_v46  ;;  %4758 = vmatpush1.bf16.msra.mxu1 %v6401_v24  ;;  %5644 = vtanh.f32 %v5483_v7 }
 0x34e   :  { %4728 = vmatprep.subr.bf16.mxu0 %v6405_v56  ;;  %4760 = vmatprep.subr.bf16.mxu1 %v6407_v58 }
 0x351   :  { %4730 = vmatpush1.bf16.msra.mxu0 %v7345_v33  ;;  %4762 = vmatpush1.bf16.msra.mxu1 %v7346_v20 }
 0x352   :  { %4732 = vmatprep.subr.bf16.mxu0 %v7371_v43  ;;  %4764 = vmatprep.subr.bf16.mxu1 %v7348_v0 }
 0x354   :  { %v5639_v6 = vpop.eup %5638 }
 0x355   :  { %v5641_v49 = vpop.eup %5640  ;;  %v1872_v48 = vadd.f32 1.0, %v5639_v6  ;;  %4734 = vmatpush1.bf16.msra.mxu0 %v7372_v11  ;;  %4766 = vmatpush1.bf16.msra.mxu1 %v7373_v47 }
 0x356   :  { %v1873_v21 = vadd.f32 1.0, %v5641_v49  ;;  %4736 = vmatprep.subr.bf16.mxu0 %v7351_v14  ;;  %4768 = vmatprep.subr.bf16.mxu1 %v7352_v36  ;;  %v5643_v62 = vpop.eup %5642  ;;  %v7376_v49 = vld [vmem:[#allocation16_spill] sm:$0xff] }
 0x357   :  { %5646 = vrcp.f32 %v1872_v48  ;;  %v5645_v32 = vpop.eup %5644  ;;  %v1874_v55 = vadd.f32 1.0, %v5643_v62  ;;  %v7377_v48 = vld [vmem:[#allocation17_spill] sm:$0xff]  ;;  %v7379_v62 = vld [vmem:[#allocation19_spill] sm:$0xff] }
 0x358   :  { %5648 = vrcp.f32 %v1873_v21  ;;  %v7378_v21 = vld [vmem:[#allocation18_spill] sm:$0xff] }
 0x359   :  { %4738 = vmatpush1.bf16.msra.mxu0 %v7353_v53  ;;  %4770 = vmatpush1.bf16.msra.mxu1 %v7354_v54  ;;  %5650 = vrcp.f32 %v1874_v55  ;;  %v7384_v55 = vld [vmem:[#allocation24_spill] sm:$0xff] }
 0x35a   :  { %4740 = vmatprep.subr.bf16.mxu0 %v6447_v34  ;;  %4772 = vmatprep.subr.bf16.mxu1 %v6449_v35 }
 0x35d   :  { %4742 = vmatpush1.bf16.msra.mxu0 %v6453_v51  ;;  %4774 = vmatpush1.bf16.msra.mxu1 %v6455_v59 }
 0x35e   :  { %4744 = vmatprep.subr.bf16.mxu0 %v6459_v57  ;;  %4776 = vmatprep.subr.bf16.mxu1 %v6461_v5 }
 0x361   :  { %v5647_v8 = vpop.eup %5646  ;;  %4746 = vmatpush1.bf16.msra.mxu0 %v6465_v26  ;;  %4778 = vmatpush1.bf16.msra.mxu1 %v6467_v29 }
 0x362   :  { %v5649_v42 = vpop.eup %5648  ;;  %v1883_v37 = vmul.f32 %v5647_v8, %v5645_v32  ;;  %4748 = vmatprep.subr.bf16.mxu0 %v6471_v16  ;;  %4780 = vmatprep.subr.bf16.mxu1 %v6473_v25  ;;  %v7380_v32 = vld [vmem:[#allocation20_spill] sm:$0xff]  ;;  %v7381_v8 = vld [vmem:[#allocation21_spill] sm:$0xff] }
 0x363   :  { %v1882_v63 = vmul.f32 %v5649_v42, %v6593_v15  ;;  %v5651_v44 = vpop.eup %5650  ;;  %v7374_v15 = vld [vmem:[#allocation14_spill] sm:$0xff] }
 0x364   :  { %v7382_v42 = vld [vmem:[#allocation22_spill] sm:$0xff] }
 0x365   :  { %v6696_v39 = vadd.f32 %v1883_v37, %v1882_v63  ;;  %4750 = vmatpush1.bf16.msra.mxu0 %v6477_v2  ;;  %4782 = vmatpush1.bf16.msra.mxu1 %v6479_v3  ;;  %v7383_v37 = vld [vmem:[#allocation23_spill] sm:$0xff]  ;;  %v7385_v63 = vld [vmem:[#allocation25_spill] sm:$0xff] }
 0x366   :  { %4784 = vmatprep.subr.bf16.mxu0 %v6201_v45  ;;  %4816 = vmatprep.subr.bf16.mxu1 %v6208_v50 }
 0x367   :  { %5652 = vtanh.f32 %v6696_v39 }
 0x371   :  { %v5653_v7 = vpop.eup %5652 }
 0x372   :  { %v1886_v6 = vmul.f32 %v5653_v7, %v5651_v44  ;;  %v7386_v44 = vld [vmem:[#allocation26_spill] sm:$0xff]  ;;  %v7387_v7 = vld [vmem:[#allocation27_spill] sm:$0xff] }
 0x374   :  { %1894 = vst [vmem:[#allocation7 + $0x68] sm:$0xff] %v1886_v6  ;;  %1980 = vmatmul.mubr.f32.gmra.mrb[48].mxu0 %v1886_v6  ;;  %2055 = vmatmul.mubr.f32.gmra.mrb[48].mxu1 %v1886_v6 }
 0x375   :  { %2123 = vmatprep.mubr.f32.mxu0 %v7338_v60  ;;  %2198 = vmatprep.mubr.f32.mxu1 %v7338_v60 }
 0x378   :  { %2124 = vmatmul.mubr.f32.vlgmr.msra.gmra.mrb[50].mxu0 %v6657_v4  ;;  %2199 = vmatmul.mubr.f32.vlgmr.msra.gmra.mrb[50].mxu1 %v6657_v4  ;;  %v7375_v4 = vld [vmem:[#allocation15_spill] sm:$0xff] }
 0x379   :  { %2127 = vmatprep.mubr.f32.mxu0 %v7338_v60  ;;  %2202 = vmatprep.mubr.f32.mxu1 %v7338_v60 }
 0x37a   :  { %4786 = vmatpush1.bf16.msra.mxu0 %v6251_v9  ;;  %4818 = vmatpush1.bf16.msra.mxu1 %v6253_v10 }
 0x37b   :  { %4788 = vmatprep.subr.bf16.mxu0 %v6257_v17  ;;  %4820 = vmatprep.subr.bf16.mxu1 %v6259_v18 }
 0x37c   :  { %2128 = vmatmul.mubr.f32.gmra.mrb[34].mxu0 %v1886_v6  ;;  %2203 = vmatmul.mubr.f32.gmra.mrb[34].mxu1 %v1886_v6  ;;  %v7388_v6 = vld [vmem:[#allocation28_spill] sm:$0xff] }
 0x37d   :  { %2351 = vmatprep.mubr.f32.mxu0 %v7338_v60  ;;  %2426 = vmatprep.mubr.f32.mxu1 %v7338_v60 }
 0x37e   :  { %4790 = vmatpush1.bf16.msra.mxu0 %v6265_v22  ;;  %4822 = vmatpush1.bf16.msra.mxu1 %v6267_v23 }
 0x37f   :  { %4792 = vmatprep.subr.bf16.mxu0 %v6273_v30  ;;  %4824 = vmatprep.subr.bf16.mxu1 %v6275_v31 }
 0x382   :  { %4794 = vmatpush1.bf16.msra.mxu0 %v6283_v38  ;;  %4826 = vmatpush1.bf16.msra.mxu1 %v6285_v40 }
 0x383   :  { %4796 = vmatprep.subr.bf16.mxu0 %v7374_v15  ;;  %4828 = vmatprep.subr.bf16.mxu1 %v7375_v4  ;;  %v7397_v4 = vld [vmem:[#allocation47_spill] sm:$0xff] }
 0x386   :  { %4798 = vmatpush1.bf16.msra.mxu0 %v7376_v49  ;;  %4830 = vmatpush1.bf16.msra.mxu1 %v7377_v48  ;;  %v7396_v48 = vld [vmem:[#allocation46_spill] sm:$0xff] }
 0x387   :  { %4800 = vmatprep.subr.bf16.mxu0 %v7378_v21  ;;  %4832 = vmatprep.subr.bf16.mxu1 %v7379_v62  ;;  %v7389_v21 = vld [vmem:[#allocation29_spill] sm:$0xff]  ;;  %v7390_v62 = vld [vmem:[#allocation30_spill] sm:$0xff] }
 0x38a   :  { %4802 = vmatpush1.bf16.msra.mxu0 %v7380_v32  ;;  %4834 = vmatpush1.bf16.msra.mxu1 %v7381_v8  ;;  %v7391_v32 = vld [vmem:[#allocation31_spill] sm:$0xff]  ;;  %v7392_v8 = vld [vmem:[#allocation32_spill] sm:$0xff] }
 0x38b   :  { %4804 = vmatprep.subr.bf16.mxu0 %v7382_v42  ;;  %4836 = vmatprep.subr.bf16.mxu1 %v7383_v37  ;;  %v7393_v42 = vld [vmem:[#allocation33_spill] sm:$0xff]  ;;  %v7394_v37 = vld [vmem:[#allocation34_spill] sm:$0xff] }
 0x38e   :  { %4806 = vmatpush1.bf16.msra.mxu0 %v7384_v55  ;;  %4838 = vmatpush1.bf16.msra.mxu1 %v7385_v63  ;;  %v7395_v55 = vld [vmem:[#allocation35_spill] sm:$0xff] }
 0x38f   :  { %4808 = vmatprep.subr.bf16.mxu0 %v7386_v44  ;;  %4840 = vmatprep.subr.bf16.mxu1 %v7387_v7 }
 0x392   :  { %4810 = vmatpush1.bf16.msra.mxu0 %v7388_v6  ;;  %4842 = vmatpush1.bf16.msra.mxu1 %v7389_v21 }
 0x393   :  { %4812 = vmatprep.subr.bf16.mxu0 %v7390_v62  ;;  %4844 = vmatprep.subr.bf16.mxu1 %v7391_v32  ;;  %v7398_v32 = vld [vmem:[#allocation48_spill] sm:$0xff] }
 0x396   :  { %4814 = vmatpush1.bf16.msra.mxu0 %v7392_v8  ;;  %4846 = vmatpush1.bf16.msra.mxu1 %v7393_v42  ;;  %v7399_v42 = vld [vmem:[#allocation49_spill] sm:$0xff] }
 0x397   :  { %4848 = vmatprep.subr.bf16.mxu0 %v7394_v37  ;;  %4880 = vmatprep.subr.bf16.mxu1 %v7395_v55 }
 0x41b   :  { %v1975_v63 = vpop.f32.mrb[12].mxu0  ;;  %v2050_v44 = vpop.f32.mrb[12].mxu1 }
 0x41c   :  { %v5427_v7 = vadd.f32 %v1975_v63, %v7396_v48  ;;  %v1977_v49 = vpop.f32.mrb[13].mxu0  ;;  %v2052_v6 = vpop.f32.mrb[13].mxu1  ;;  %v5443_v38 = vadd.f32 %v2050_v44, %v7399_v42 }
 0x41d   :  { %v5428_v21 = vadd.f32 %v1977_v49, %v7397_v4  ;;  %v5444_v8 = vadd.f32 %v2052_v6, %v7398_v32 }
 0x41e   :  { %v4231_v15 = vmul.f32 -1.442695, %v5427_v7 }
 0x41f   :  { %v4232_v62 = vmul.f32 -1.442695, %v5428_v21  ;;  %v4233_v40 = vmul.f32 -1.442695, %v5444_v8 }
 0x420   :  { %5654 = vpow2.f32 %v4231_v15 }
 0x421   :  { %5656 = vpow2.f32 %v4232_v62 }
 0x422   :  { %5658 = vpow2.f32 %v4233_v40 }
 0x423   :  { %5660 = vtanh.f32 %v5443_v38 }
 0x42a   :  { %v5655_v37 = vpop.eup %5654 }
 0x42b   :  { %v5657_v31 = vpop.eup %5656  ;;  %v2226_v55 = vadd.f32 1.0, %v5655_v37 }
 0x42c   :  { %v2227_v30 = vadd.f32 1.0, %v5657_v31  ;;  %v5659_v63 = vpop.eup %5658 }
 0x42d   :  { %5662 = vrcp.f32 %v2226_v55  ;;  %v5661_v48 = vpop.eup %5660  ;;  %v2228_v15 = vadd.f32 1.0, %v5659_v63 }
 0x42e   :  { %5664 = vrcp.f32 %v2227_v30 }
 0x42f   :  { %5666 = vrcp.f32 %v2228_v15 }
 0x437   :  { %v5663_v49 = vpop.eup %5662 }
 0x438   :  { %v5665_v7 = vpop.eup %5664  ;;  %v2237_v21 = vmul.f32 %v5663_v49, %v5661_v48 }
 0x439   :  { %v2236_v62 = vmul.f32 %v5665_v7, %v6653_v52  ;;  %v5667_v8 = vpop.eup %5666 }
 0x43b   :  { %v6748_v6 = vadd.f32 %v2237_v21, %v2236_v62 }
 0x43d   :  { %5668 = vtanh.f32 %v6748_v6 }
 0x447   :  { %v5669_v37 = vpop.eup %5668  ;;  %v1981_v40 = vpop.f32.mrb[48].mxu0 }
 0x448   :  { %v2056_v38 = vpop.f32.mrb[48].mxu1  ;;  %v1982_v31 = vpop.f32.mrb[49].mxu0  ;;  %v6751_v30 = vmul.f32 %v5669_v37, %v5667_v8 }
 0x449   :  { %v2057_v55 = vpop.f32.mrb[49].mxu1 }
 0x44a   :  { %2268 = vst [vmem:[#allocation7 + $0x20] sm:$0xff] %v6751_v30  ;;  %2352 = vmatmul.mubr.f32.vlgmr.msra.gmra.mrb[14].mxu0 %v6751_v30  ;;  %2427 = vmatmul.mubr.f32.vlgmr.msra.gmra.mrb[14].mxu1 %v6751_v30 }
 0x44b   :  { %v2125_v52 = vpop.f32.mrb[50].mxu0  ;;  %v2200_v48 = vpop.f32.mrb[50].mxu1  ;;  %4850 = vmatpush1.bf16.msra.mxu0 %v6383_v12  ;;  %4882 = vmatpush1.bf16.msra.mxu1 %v6385_v19 }
 0x44c   :  { %v2126_v44 = vpop.f32.mrb[51].mxu0  ;;  %v2201_v63 = vpop.f32.mrb[51].mxu1  ;;  %4852 = vmatprep.subr.bf16.mxu0 %v6389_v27  ;;  %4884 = vmatprep.subr.bf16.mxu1 %v6391_v28 }
 0x44d   :  { %2357 = vmatprep.mubr.f32.mxu0 %v7338_v60  ;;  %2432 = vmatprep.mubr.f32.mxu1 %v7338_v60 }
 0x44f   :  { %v2129_v49 = vpop.f32.mrb[34].mxu0  ;;  %v2204_v7 = vpop.f32.mrb[34].mxu1  ;;  %4854 = vmatpush1.bf16.msra.mxu0 %v6399_v46  ;;  %4886 = vmatpush1.bf16.msra.mxu1 %v6401_v24 }
 0x450   :  { %v5465_v21 = vadd.f32 %v2129_v49, %v6553_v13  ;;  %v2131_v15 = vpop.f32.mrb[35].mxu0  ;;  %v2206_v62 = vpop.f32.mrb[35].mxu1  ;;  %4856 = vmatprep.subr.bf16.mxu0 %v6405_v56  ;;  %4888 = vmatprep.subr.bf16.mxu1 %v6407_v58  ;;  %v5481_v55 = vadd.f32 %v2204_v7, %v7370_v41 }
 0x451   :  { %v5466_v8 = vadd.f32 %v2131_v15, %v6556_v61  ;;  %v5482_v38 = vadd.f32 %v2206_v62, %v6560_v1 }
 0x452   :  { %v4234_v37 = vmul.f32 -1.442695, %v5465_v21 }
 0x453   :  { %v4235_v40 = vmul.f32 -1.442695, %v5466_v8  ;;  %4858 = vmatpush1.bf16.msra.mxu0 %v7345_v33  ;;  %4890 = vmatpush1.bf16.msra.mxu1 %v7346_v20  ;;  %v4236_v31 = vmul.f32 -1.442695, %v5482_v38 }
 0x454   :  { %5670 = vpow2.f32 %v4234_v37  ;;  %4860 = vmatprep.subr.bf16.mxu0 %v7371_v43  ;;  %4892 = vmatprep.subr.bf16.mxu1 %v7348_v0 }
 0x455   :  { %5672 = vpow2.f32 %v4235_v40 }
 0x456   :  { %5674 = vpow2.f32 %v4236_v31 }
 0x457   :  { %4862 = vmatpush1.bf16.msra.mxu0 %v7372_v11  ;;  %4894 = vmatpush1.bf16.msra.mxu1 %v7373_v47  ;;  %5676 = vtanh.f32 %v5481_v55 }
 0x458   :  { %4864 = vmatprep.subr.bf16.mxu0 %v7351_v14  ;;  %4896 = vmatprep.subr.bf16.mxu1 %v7352_v36 }
 0x45b   :  { %4866 = vmatpush1.bf16.msra.mxu0 %v7353_v53  ;;  %4898 = vmatpush1.bf16.msra.mxu1 %v7354_v54 }
 0x45c   :  { %4868 = vmatprep.subr.bf16.mxu0 %v6447_v34  ;;  %4900 = vmatprep.subr.bf16.mxu1 %v6449_v35 }
 0x45e   :  { %v5671_v52 = vpop.eup %5670 }
 0x45f   :  { %v5673_v48 = vpop.eup %5672  ;;  %v2250_v44 = vadd.f32 1.0, %v5671_v52  ;;  %4870 = vmatpush1.bf16.msra.mxu0 %v6453_v51  ;;  %4902 = vmatpush1.bf16.msra.mxu1 %v6455_v59  ;;  %v7402_v52 = vld [vmem:[#allocation12_spill] sm:$0xff] }
 0x460   :  { %v2251_v63 = vadd.f32 1.0, %v5673_v48  ;;  %4872 = vmatprep.subr.bf16.mxu0 %v6459_v57  ;;  %4904 = vmatprep.subr.bf16.mxu1 %v6461_v5  ;;  %v5675_v49 = vpop.eup %5674  ;;  %v7403_v48 = vld [vmem:[#allocation13_spill] sm:$0xff] }
 0x461   :  { %5678 = vrcp.f32 %v2250_v44  ;;  %v5677_v7 = vpop.eup %5676  ;;  %v2252_v8 = vadd.f32 1.0, %v5675_v49  ;;  %v7404_v44 = vld [vmem:[#allocation14_spill] sm:$0xff]  ;;  %v7406_v49 = vld [vmem:[#allocation16_spill] sm:$0xff] }
 0x462   :  { %5680 = vrcp.f32 %v2251_v63  ;;  %v7405_v63 = vld [vmem:[#allocation15_spill] sm:$0xff] }
 0x463   :  { %4874 = vmatpush1.bf16.msra.mxu0 %v6465_v26  ;;  %4906 = vmatpush1.bf16.msra.mxu1 %v6467_v29  ;;  %5682 = vrcp.f32 %v2252_v8  ;;  %v7411_v8 = vld [vmem:[#allocation21_spill] sm:$0xff] }
 0x464   :  { %4876 = vmatprep.subr.bf16.mxu0 %v6471_v16  ;;  %4908 = vmatprep.subr.bf16.mxu1 %v6473_v25 }
 0x467   :  { %4878 = vmatpush1.bf16.msra.mxu0 %v6477_v2  ;;  %4910 = vmatpush1.bf16.msra.mxu1 %v6479_v3 }
 0x468   :  { %4912 = vmatprep.subr.bf16.mxu0 %v6201_v45  ;;  %4944 = vmatprep.subr.bf16.mxu1 %v6208_v50 }
 0x46b   :  { %v5679_v21 = vpop.eup %5678 }
 0x46c   :  { %v5681_v15 = vpop.eup %5680  ;;  %v2261_v62 = vmul.f32 %v5679_v21, %v5677_v7  ;;  %v7407_v7 = vld [vmem:[#allocation17_spill] sm:$0xff]  ;;  %v7408_v21 = vld [vmem:[#allocation18_spill] sm:$0xff] }
 0x46d   :  { %v2260_v37 = vmul.f32 %v5681_v15, %v6696_v39  ;;  %v5683_v38 = vpop.eup %5682  ;;  %v7400_v39 = vld [vmem:[#allocation10_spill] sm:$0xff]  ;;  %v7409_v15 = vld [vmem:[#allocation19_spill] sm:$0xff] }
 0x46f   :  { %v6795_v40 = vadd.f32 %v2261_v62, %v2260_v37  ;;  %v7410_v62 = vld [vmem:[#allocation20_spill] sm:$0xff]  ;;  %v7412_v37 = vld [vmem:[#allocation22_spill] sm:$0xff] }
 0x471   :  { %5684 = vtanh.f32 %v6795_v40 }
 0x47b   :  { %v5685_v31 = vpop.eup %5684 }
 0x47c   :  { %v2264_v55 = vmul.f32 %v5685_v31, %v5683_v38  ;;  %v7413_v38 = vld [vmem:[#allocation23_spill] sm:$0xff]  ;;  %v7414_v31 = vld [vmem:[#allocation24_spill] sm:$0xff] }
 0x47e   :  { %2272 = vst [vmem:[#allocation7 + $0x58] sm:$0xff] %v2264_v55  ;;  %2358 = vmatmul.mubr.f32.gmra.mrb[52].mxu0 %v2264_v55  ;;  %2433 = vmatmul.mubr.f32.gmra.mrb[52].mxu1 %v2264_v55 }
 0x47f   :  { %2501 = vmatprep.mubr.f32.mxu0 %v7338_v60  ;;  %2576 = vmatprep.mubr.f32.mxu1 %v7338_v60 }
 0x482   :  { %2502 = vmatmul.mubr.f32.vlgmr.msra.gmra.mrb[54].mxu0 %v6751_v30  ;;  %2577 = vmatmul.mubr.f32.vlgmr.msra.gmra.mrb[54].mxu1 %v6751_v30  ;;  %v7401_v30 = vld [vmem:[#allocation11_spill] sm:$0xff] }
 0x483   :  { %2505 = vmatprep.mubr.f32.mxu0 %v7338_v60  ;;  %2580 = vmatprep.mubr.f32.mxu1 %v7338_v60 }
 0x484   :  { %4914 = vmatpush1.bf16.msra.mxu0 %v6251_v9  ;;  %4946 = vmatpush1.bf16.msra.mxu1 %v6253_v10 }
 0x485   :  { %4916 = vmatprep.subr.bf16.mxu0 %v6257_v17  ;;  %4948 = vmatprep.subr.bf16.mxu1 %v6259_v18 }
 0x486   :  { %2506 = vmatmul.mubr.f32.gmra.mrb[32].mxu0 %v2264_v55  ;;  %2581 = vmatmul.mubr.f32.gmra.mrb[32].mxu1 %v2264_v55  ;;  %v7415_v55 = vld [vmem:[#allocation25_spill] sm:$0xff] }
 0x487   :  { %2727 = vmatprep.mubr.f32.mxu0 %v7338_v60  ;;  %2802 = vmatprep.mubr.f32.mxu1 %v7338_v60 }
 0x488   :  { %4918 = vmatpush1.bf16.msra.mxu0 %v6265_v22  ;;  %4950 = vmatpush1.bf16.msra.mxu1 %v6267_v23 }
 0x489   :  { %4920 = vmatprep.subr.bf16.mxu0 %v7400_v39  ;;  %4952 = vmatprep.subr.bf16.mxu1 %v7401_v30 }
 0x48c   :  { %4922 = vmatpush1.bf16.msra.mxu0 %v7402_v52  ;;  %4954 = vmatpush1.bf16.msra.mxu1 %v7403_v48 }
 0x48d   :  { %4924 = vmatprep.subr.bf16.mxu0 %v7404_v44  ;;  %4956 = vmatprep.subr.bf16.mxu1 %v7405_v63  ;;  %v7416_v63 = vld [vmem:[#allocation26_spill] sm:$0xff] }
 0x48e   :  { %v7426_v44 = vld [vmem:[#allocation46_spill] sm:$0xff] }
 0x490   :  { %4926 = vmatpush1.bf16.msra.mxu0 %v7406_v49  ;;  %4958 = vmatpush1.bf16.msra.mxu1 %v7407_v7  ;;  %v7417_v49 = vld [vmem:[#allocation27_spill] sm:$0xff]  ;;  %v7418_v7 = vld [vmem:[#allocation28_spill] sm:$0xff] }
 0x491   :  { %4928 = vmatprep.subr.bf16.mxu0 %v7408_v21  ;;  %4960 = vmatprep.subr.bf16.mxu1 %v7409_v15  ;;  %v7419_v21 = vld [vmem:[#allocation29_spill] sm:$0xff]  ;;  %v7420_v15 = vld [vmem:[#allocation30_spill] sm:$0xff] }
 0x494   :  { %4930 = vmatpush1.bf16.msra.mxu0 %v7410_v62  ;;  %4962 = vmatpush1.bf16.msra.mxu1 %v7411_v8  ;;  %v7421_v62 = vld [vmem:[#allocation31_spill] sm:$0xff]  ;;  %v7422_v8 = vld [vmem:[#allocation32_spill] sm:$0xff] }
 0x495   :  { %4932 = vmatprep.subr.bf16.mxu0 %v7412_v37  ;;  %4964 = vmatprep.subr.bf16.mxu1 %v7413_v38  ;;  %v7423_v37 = vld [vmem:[#allocation33_spill] sm:$0xff]  ;;  %v7424_v38 = vld [vmem:[#allocation34_spill] sm:$0xff] }
 0x498   :  { %4934 = vmatpush1.bf16.msra.mxu0 %v7414_v31  ;;  %4966 = vmatpush1.bf16.msra.mxu1 %v7415_v55  ;;  %v7425_v31 = vld [vmem:[#allocation35_spill] sm:$0xff] }
 0x499   :  { %4936 = vmatprep.subr.bf16.mxu0 %v7416_v63  ;;  %4968 = vmatprep.subr.bf16.mxu1 %v7417_v49 }
 0x49c   :  { %4938 = vmatpush1.bf16.msra.mxu0 %v7418_v7  ;;  %4970 = vmatpush1.bf16.msra.mxu1 %v7419_v21 }
 0x49d   :  { %4940 = vmatprep.subr.bf16.mxu0 %v7420_v15  ;;  %4972 = vmatprep.subr.bf16.mxu1 %v7421_v62 }
 0x4a0   :  { %4942 = vmatpush1.bf16.msra.mxu0 %v7422_v8  ;;  %4974 = vmatpush1.bf16.msra.mxu1 %v7423_v37 }
 0x4a1   :  { %4976 = vmatprep.subr.bf16.mxu0 %v7424_v38  ;;  %5008 = vmatprep.subr.bf16.mxu1 %v7425_v31 }
 0x51d   :  { %v2353_v55 = vpop.f32.mrb[14].mxu0  ;;  %v2428_v63 = vpop.f32.mrb[14].mxu1 }
 0x51e   :  { %v5429_v49 = vadd.f32 %v2353_v55, %v7426_v44  ;;  %v2355_v48 = vpop.f32.mrb[15].mxu0  ;;  %v2430_v7 = vpop.f32.mrb[15].mxu1  ;;  %v5445_v37 = vadd.f32 %v2428_v63, %v7399_v42 }
 0x51f   :  { %v5430_v21 = vadd.f32 %v2355_v48, %v7397_v4  ;;  %v5446_v8 = vadd.f32 %v2430_v7, %v7398_v32 }
 0x520   :  { %v4237_v52 = vmul.f32 -1.442695, %v5429_v49 }
 0x521   :  { %v4238_v15 = vmul.f32 -1.442695, %v5430_v21  ;;  %v4239_v62 = vmul.f32 -1.442695, %v5446_v8 }
 0x522   :  { %5686 = vpow2.f32 %v4237_v52 }
 0x523   :  { %5688 = vpow2.f32 %v4238_v15 }
 0x524   :  { %5690 = vpow2.f32 %v4239_v62 }
 0x525   :  { %5692 = vtanh.f32 %v5445_v37 }
 0x52c   :  { %v5687_v38 = vpop.eup %5686 }
 0x52d   :  { %v5689_v30 = vpop.eup %5688  ;;  %v2604_v31 = vadd.f32 1.0, %v5687_v38 }
 0x52e   :  { %v2605_v39 = vadd.f32 1.0, %v5689_v30  ;;  %v5691_v55 = vpop.eup %5690 }
 0x52f   :  { %5694 = vrcp.f32 %v2604_v31  ;;  %v5693_v44 = vpop.eup %5692  ;;  %v2606_v52 = vadd.f32 1.0, %v5691_v55 }
 0x530   :  { %5696 = vrcp.f32 %v2605_v39 }
 0x531   :  { %5698 = vrcp.f32 %v2606_v52 }
 0x539   :  { %v5695_v48 = vpop.eup %5694 }
 0x53a   :  { %v5697_v49 = vpop.eup %5696  ;;  %v2615_v21 = vmul.f32 %v5695_v48, %v5693_v44 }
 0x53b   :  { %v2614_v15 = vmul.f32 %v5697_v49, %v6748_v6  ;;  %v5699_v63 = vpop.eup %5698 }
 0x53d   :  { %v6843_v7 = vadd.f32 %v2615_v21, %v2614_v15 }
 0x53f   :  { %5700 = vtanh.f32 %v6843_v7 }
 0x549   :  { %v5701_v8 = vpop.eup %5700 }
 0x54a   :  { %v6846_v62 = vmul.f32 %v5701_v8, %v5699_v63 }
 0x54c   :  { %2646 = vst [vmem:[#allocation7 + $0x30] sm:$0xff] %v6846_v62  ;;  %2728 = vmatmul.mubr.f32.vlgmr.msra.gmra.mrb[16].mxu0 %v6846_v62  ;;  %2803 = vmatmul.mubr.f32.vlgmr.msra.gmra.mrb[16].mxu1 %v6846_v62 }
 0x54d   :  { %4978 = vmatpush1.bf16.msra.mxu0 %v6383_v12  ;;  %5010 = vmatpush1.bf16.msra.mxu1 %v6385_v19 }
 0x54e   :  { %4980 = vmatprep.subr.bf16.mxu0 %v6389_v27  ;;  %5012 = vmatprep.subr.bf16.mxu1 %v6391_v28 }
 0x54f   :  { %2733 = vmatprep.mubr.f32.mxu0 %v7338_v60  ;;  %2808 = vmatprep.mubr.f32.mxu1 %v7338_v60 }
 0x551   :  { %v2359_v6 = vpop.f32.mrb[52].mxu0  ;;  %v2434_v39 = vpop.f32.mrb[52].mxu1  ;;  %4982 = vmatpush1.bf16.msra.mxu0 %v6399_v46  ;;  %5014 = vmatpush1.bf16.msra.mxu1 %v6401_v24 }
 0x552   :  { %v2360_v30 = vpop.f32.mrb[53].mxu0  ;;  %v2435_v44 = vpop.f32.mrb[53].mxu1  ;;  %4984 = vmatprep.subr.bf16.mxu0 %v6405_v56  ;;  %5016 = vmatprep.subr.bf16.mxu1 %v6407_v58 }
 0x555   :  { %v2503_v37 = vpop.f32.mrb[54].mxu0  ;;  %v2578_v38 = vpop.f32.mrb[54].mxu1  ;;  %4986 = vmatpush1.bf16.msra.mxu0 %v7345_v33  ;;  %5018 = vmatpush1.bf16.msra.mxu1 %v7346_v20 }
 0x556   :  { %v2504_v31 = vpop.f32.mrb[55].mxu0  ;;  %v2579_v55 = vpop.f32.mrb[55].mxu1  ;;  %4988 = vmatprep.subr.bf16.mxu0 %v7371_v43  ;;  %5020 = vmatprep.subr.bf16.mxu1 %v7348_v0 }
 0x559   :  { %v2507_v48 = vpop.f32.mrb[32].mxu0  ;;  %v2582_v49 = vpop.f32.mrb[32].mxu1  ;;  %4990 = vmatpush1.bf16.msra.mxu0 %v7372_v11  ;;  %5022 = vmatpush1.bf16.msra.mxu1 %v7373_v47 }
 0x55a   :  { %v5463_v21 = vadd.f32 %v2507_v48, %v6553_v13  ;;  %v2509_v52 = vpop.f32.mrb[33].mxu0  ;;  %v2584_v15 = vpop.f32.mrb[33].mxu1  ;;  %4992 = vmatprep.subr.bf16.mxu0 %v7351_v14  ;;  %5024 = vmatprep.subr.bf16.mxu1 %v7352_v36  ;;  %v5479_v44 = vadd.f32 %v2582_v49, %v7370_v41 }
 0x55b   :  { %v5464_v63 = vadd.f32 %v2509_v52, %v6556_v61  ;;  %v5480_v39 = vadd.f32 %v2584_v15, %v6560_v1 }
 0x55c   :  { %v4240_v8 = vmul.f32 -1.442695, %v5463_v21 }
 0x55d   :  { %v4241_v6 = vmul.f32 -1.442695, %v5464_v63  ;;  %4994 = vmatpush1.bf16.msra.mxu0 %v7353_v53  ;;  %5026 = vmatpush1.bf16.msra.mxu1 %v7354_v54  ;;  %v4242_v30 = vmul.f32 -1.442695, %v5480_v39 }
 0x55e   :  { %5702 = vpow2.f32 %v4240_v8  ;;  %4996 = vmatprep.subr.bf16.mxu0 %v6447_v34  ;;  %5028 = vmatprep.subr.bf16.mxu1 %v6449_v35 }
 0x55f   :  { %5704 = vpow2.f32 %v4241_v6 }
 0x560   :  { %5706 = vpow2.f32 %v4242_v30 }
 0x561   :  { %4998 = vmatpush1.bf16.msra.mxu0 %v6453_v51  ;;  %5030 = vmatpush1.bf16.msra.mxu1 %v6455_v59  ;;  %5708 = vtanh.f32 %v5479_v44 }
 0x562   :  { %5000 = vmatprep.subr.bf16.mxu0 %v6459_v57  ;;  %5032 = vmatprep.subr.bf16.mxu1 %v6461_v5 }
 0x565   :  { %5002 = vmatpush1.bf16.msra.mxu0 %v6465_v26  ;;  %5034 = vmatpush1.bf16.msra.mxu1 %v6467_v29 }
 0x566   :  { %5004 = vmatprep.subr.bf16.mxu0 %v6471_v16  ;;  %5036 = vmatprep.subr.bf16.mxu1 %v6473_v25 }
 0x568   :  { %v5703_v37 = vpop.eup %5702 }
 0x569   :  { %v5705_v38 = vpop.eup %5704  ;;  %v2628_v31 = vadd.f32 1.0, %v5703_v37  ;;  %5006 = vmatpush1.bf16.msra.mxu0 %v6477_v2  ;;  %5038 = vmatpush1.bf16.msra.mxu1 %v6479_v3  ;;  %v7429_v37 = vld [vmem:[#allocation12_spill] sm:$0xff] }
 0x56a   :  { %v2629_v55 = vadd.f32 1.0, %v5705_v38  ;;  %5040 = vmatprep.subr.bf16.mxu0 %v6201_v45  ;;  %5072 = vmatprep.subr.bf16.mxu1 %v6208_v50  ;;  %v5707_v48 = vpop.eup %5706  ;;  %v7430_v38 = vld [vmem:[#allocation13_spill] sm:$0xff] }
 0x56b   :  { %5710 = vrcp.f32 %v2628_v31  ;;  %v5709_v49 = vpop.eup %5708  ;;  %v2630_v63 = vadd.f32 1.0, %v5707_v48  ;;  %v7431_v31 = vld [vmem:[#allocation14_spill] sm:$0xff]  ;;  %v7433_v48 = vld [vmem:[#allocation16_spill] sm:$0xff] }
 0x56c   :  { %5712 = vrcp.f32 %v2629_v55  ;;  %v7432_v55 = vld [vmem:[#allocation15_spill] sm:$0xff] }
 0x56d   :  { %5714 = vrcp.f32 %v2630_v63  ;;  %v7438_v63 = vld [vmem:[#allocation21_spill] sm:$0xff] }
 0x575   :  { %v5711_v21 = vpop.eup %5710 }
 0x576   :  { %v5713_v52 = vpop.eup %5712  ;;  %v2639_v15 = vmul.f32 %v5711_v21, %v5709_v49  ;;  %v7434_v49 = vld [vmem:[#allocation17_spill] sm:$0xff]  ;;  %v7435_v21 = vld [vmem:[#allocation18_spill] sm:$0xff] }
 0x577   :  { %v2638_v8 = vmul.f32 %v5713_v52, %v6795_v40  ;;  %v5715_v39 = vpop.eup %5714  ;;  %v7427_v40 = vld [vmem:[#allocation10_spill] sm:$0xff]  ;;  %v7436_v52 = vld [vmem:[#allocation19_spill] sm:$0xff] }
 0x579   :  { %v6890_v6 = vadd.f32 %v2639_v15, %v2638_v8  ;;  %v7437_v15 = vld [vmem:[#allocation20_spill] sm:$0xff]  ;;  %v7439_v8 = vld [vmem:[#allocation22_spill] sm:$0xff] }
 0x57b   :  { %5716 = vtanh.f32 %v6890_v6 }
 0x585   :  { %v5717_v30 = vpop.eup %5716 }
 0x586   :  { %v2642_v44 = vmul.f32 %v5717_v30, %v5715_v39  ;;  %v7440_v39 = vld [vmem:[#allocation23_spill] sm:$0xff]  ;;  %v7441_v30 = vld [vmem:[#allocation24_spill] sm:$0xff] }
 0x588   :  { %2650 = vst [vmem:[#allocation7 + $0x48] sm:$0xff] %v2642_v44  ;;  %2734 = vmatmul.mubr.f32.gmra.mrb[56].mxu0 %v2642_v44  ;;  %2809 = vmatmul.mubr.f32.gmra.mrb[56].mxu1 %v2642_v44 }
 0x589   :  { %2877 = vmatprep.mubr.f32.mxu0 %v7338_v60  ;;  %2952 = vmatprep.mubr.f32.mxu1 %v7338_v60 }
 0x58c   :  { %2878 = vmatmul.mubr.f32.vlgmr.msra.gmra.mrb[58].mxu0 %v6846_v62  ;;  %2953 = vmatmul.mubr.f32.vlgmr.msra.gmra.mrb[58].mxu1 %v6846_v62  ;;  %v7428_v62 = vld [vmem:[#allocation11_spill] sm:$0xff] }
 0x58d   :  { %2881 = vmatprep.mubr.f32.mxu0 %v7338_v60  ;;  %2956 = vmatprep.mubr.f32.mxu1 %v7338_v60 }
 0x58e   :  { %5042 = vmatpush1.bf16.msra.mxu0 %v6251_v9  ;;  %5074 = vmatpush1.bf16.msra.mxu1 %v6253_v10 }
 0x58f   :  { %5044 = vmatprep.subr.bf16.mxu0 %v6257_v17  ;;  %5076 = vmatprep.subr.bf16.mxu1 %v6259_v18 }
 0x590   :  { %2882 = vmatmul.mubr.f32.gmra.mrb[30].mxu0 %v2642_v44  ;;  %2957 = vmatmul.mubr.f32.gmra.mrb[30].mxu1 %v2642_v44  ;;  %v7442_v44 = vld [vmem:[#allocation25_spill] sm:$0xff] }
 0x591   :  { %3097 = vmatprep.mubr.f32.mxu0 %v7338_v60  ;;  %3172 = vmatprep.mubr.f32.mxu1 %v7338_v60 }
 0x592   :  { %5046 = vmatpush1.bf16.msra.mxu0 %v6265_v22  ;;  %5078 = vmatpush1.bf16.msra.mxu1 %v6267_v23 }
 0x593   :  { %5048 = vmatprep.subr.bf16.mxu0 %v7427_v40  ;;  %5080 = vmatprep.subr.bf16.mxu1 %v7428_v62 }
 0x596   :  { %5050 = vmatpush1.bf16.msra.mxu0 %v7429_v37  ;;  %5082 = vmatpush1.bf16.msra.mxu1 %v7430_v38 }
 0x597   :  { %5052 = vmatprep.subr.bf16.mxu0 %v7431_v31  ;;  %5084 = vmatprep.subr.bf16.mxu1 %v7432_v55  ;;  %v7443_v55 = vld [vmem:[#allocation26_spill] sm:$0xff] }
 0x598   :  { %v7453_v31 = vld [vmem:[#allocation46_spill] sm:$0xff] }
 0x59a   :  { %5054 = vmatpush1.bf16.msra.mxu0 %v7433_v48  ;;  %5086 = vmatpush1.bf16.msra.mxu1 %v7434_v49  ;;  %v7444_v48 = vld [vmem:[#allocation27_spill] sm:$0xff]  ;;  %v7445_v49 = vld [vmem:[#allocation28_spill] sm:$0xff] }
 0x59b   :  { %5056 = vmatprep.subr.bf16.mxu0 %v7435_v21  ;;  %5088 = vmatprep.subr.bf16.mxu1 %v7436_v52  ;;  %v7446_v21 = vld [vmem:[#allocation29_spill] sm:$0xff]  ;;  %v7447_v52 = vld [vmem:[#allocation30_spill] sm:$0xff] }
 0x59e   :  { %5058 = vmatpush1.bf16.msra.mxu0 %v7437_v15  ;;  %5090 = vmatpush1.bf16.msra.mxu1 %v7438_v63  ;;  %v7448_v15 = vld [vmem:[#allocation31_spill] sm:$0xff]  ;;  %v7449_v63 = vld [vmem:[#allocation32_spill] sm:$0xff] }
 0x59f   :  { %5060 = vmatprep.subr.bf16.mxu0 %v7439_v8  ;;  %5092 = vmatprep.subr.bf16.mxu1 %v7440_v39  ;;  %v7450_v8 = vld [vmem:[#allocation33_spill] sm:$0xff]  ;;  %v7451_v39 = vld [vmem:[#allocation34_spill] sm:$0xff] }
 0x5a2   :  { %5062 = vmatpush1.bf16.msra.mxu0 %v7441_v30  ;;  %5094 = vmatpush1.bf16.msra.mxu1 %v7442_v44  ;;  %v7452_v30 = vld [vmem:[#allocation35_spill] sm:$0xff] }
 0x5a3   :  { %5064 = vmatprep.subr.bf16.mxu0 %v7443_v55  ;;  %5096 = vmatprep.subr.bf16.mxu1 %v7444_v48 }
 0x5a6   :  { %5066 = vmatpush1.bf16.msra.mxu0 %v7445_v49  ;;  %5098 = vmatpush1.bf16.msra.mxu1 %v7446_v21 }
 0x5a7   :  { %5068 = vmatprep.subr.bf16.mxu0 %v7447_v52  ;;  %5100 = vmatprep.subr.bf16.mxu1 %v7448_v15 }
 0x5aa   :  { %5070 = vmatpush1.bf16.msra.mxu0 %v7449_v63  ;;  %5102 = vmatpush1.bf16.msra.mxu1 %v7450_v8 }
 0x5ab   :  { %5104 = vmatprep.subr.bf16.mxu0 %v7451_v39  ;;  %5136 = vmatprep.subr.bf16.mxu1 %v7452_v30 }
 0x61f   :  { %v2729_v44 = vpop.f32.mrb[16].mxu0  ;;  %v2804_v55 = vpop.f32.mrb[16].mxu1 }
 0x620   :  { %v5431_v48 = vadd.f32 %v2729_v44, %v7453_v31  ;;  %v2731_v38 = vpop.f32.mrb[17].mxu0  ;;  %v2806_v49 = vpop.f32.mrb[17].mxu1  ;;  %v5447_v8 = vadd.f32 %v2804_v55, %v7399_v42 }
 0x621   :  { %v5432_v21 = vadd.f32 %v2731_v38, %v7397_v4  ;;  %v5448_v63 = vadd.f32 %v2806_v49, %v7398_v32 }
 0x622   :  { %v4243_v37 = vmul.f32 -1.442695, %v5431_v48 }
 0x623   :  { %v4244_v52 = vmul.f32 -1.442695, %v5432_v21  ;;  %v4245_v15 = vmul.f32 -1.442695, %v5448_v63 }
 0x624   :  { %5718 = vpow2.f32 %v4243_v37 }
 0x625   :  { %5720 = vpow2.f32 %v4244_v52 }
 0x626   :  { %5722 = vpow2.f32 %v4245_v15 }
 0x627   :  { %5724 = vtanh.f32 %v5447_v8 }
 0x62e   :  { %v5719_v39 = vpop.eup %5718 }
 0x62f   :  { %v5721_v62 = vpop.eup %5720  ;;  %v2980_v30 = vadd.f32 1.0, %v5719_v39 }
 0x630   :  { %v2981_v40 = vadd.f32 1.0, %v5721_v62  ;;  %v5723_v44 = vpop.eup %5722 }
 0x631   :  { %5726 = vrcp.f32 %v2980_v30  ;;  %v5725_v31 = vpop.eup %5724  ;;  %v2982_v37 = vadd.f32 1.0, %v5723_v44 }
 0x632   :  { %5728 = vrcp.f32 %v2981_v40 }
 0x633   :  { %5730 = vrcp.f32 %v2982_v37 }
 0x63b   :  { %v5727_v38 = vpop.eup %5726 }
 0x63c   :  { %v5729_v48 = vpop.eup %5728  ;;  %v2991_v21 = vmul.f32 %v5727_v38, %v5725_v31 }
 0x63d   :  { %v2990_v52 = vmul.f32 %v5729_v48, %v6843_v7  ;;  %v5731_v55 = vpop.eup %5730 }
 0x63f   :  { %v6938_v49 = vadd.f32 %v2991_v21, %v2990_v52 }
 0x641   :  { %5732 = vtanh.f32 %v6938_v49 }
 0x64b   :  { %v5733_v63 = vpop.eup %5732 }
 0x64c   :  { %v6941_v15 = vmul.f32 %v5733_v63, %v5731_v55 }
 0x64e   :  { %3019 = vst [vmem:[#allocation7 + $0x40] sm:$0xff] %v6941_v15  ;;  %3098 = vmatmul.mubr.f32.vlgmr.msra.gmra.mrb[18].mxu0 %v6941_v15  ;;  %3173 = vmatmul.mubr.f32.vlgmr.msra.gmra.mrb[18].mxu1 %v6941_v15 }
 0x64f   :  { %5106 = vmatpush1.bf16.msra.mxu0 %v6383_v12  ;;  %5138 = vmatpush1.bf16.msra.mxu1 %v6385_v19 }
 0x650   :  { %5108 = vmatprep.subr.bf16.mxu0 %v6389_v27  ;;  %5140 = vmatprep.subr.bf16.mxu1 %v6391_v28 }
 0x651   :  { %3103 = vmatprep.mubr.f32.mxu0 %v7338_v60  ;;  %3178 = vmatprep.mubr.f32.mxu1 %v7338_v60 }
 0x653   :  { %5110 = vmatpush1.bf16.msra.mxu0 %v6399_v46  ;;  %5142 = vmatpush1.bf16.msra.mxu1 %v6401_v24 }
 0x654   :  { %5112 = vmatprep.subr.bf16.mxu0 %v6405_v56  ;;  %5144 = vmatprep.subr.bf16.mxu1 %v6407_v58 }
 0x657   :  { %5114 = vmatpush1.bf16.msra.mxu0 %v7345_v33  ;;  %5146 = vmatpush1.bf16.msra.mxu1 %v7346_v20 }
 0x658   :  { %5116 = vmatprep.subr.bf16.mxu0 %v7371_v43  ;;  %5148 = vmatprep.subr.bf16.mxu1 %v7348_v0 }
 0x65b   :  { %v2735_v7 = vpop.f32.mrb[56].mxu0  ;;  %v2810_v40 = vpop.f32.mrb[56].mxu1  ;;  %5118 = vmatpush1.bf16.msra.mxu0 %v7372_v11  ;;  %5150 = vmatpush1.bf16.msra.mxu1 %v7373_v47 }
 0x65c   :  { %v2736_v62 = vpop.f32.mrb[57].mxu0  ;;  %v2811_v31 = vpop.f32.mrb[57].mxu1  ;;  %5120 = vmatprep.subr.bf16.mxu0 %v7351_v14  ;;  %5152 = vmatprep.subr.bf16.mxu1 %v7352_v36 }
 0x65f   :  { %v2879_v8 = vpop.f32.mrb[58].mxu0  ;;  %v2954_v39 = vpop.f32.mrb[58].mxu1  ;;  %5122 = vmatpush1.bf16.msra.mxu0 %v7353_v53  ;;  %5154 = vmatpush1.bf16.msra.mxu1 %v7354_v54 }
 0x660   :  { %v2880_v30 = vpop.f32.mrb[59].mxu0  ;;  %v2955_v44 = vpop.f32.mrb[59].mxu1  ;;  %5124 = vmatprep.subr.bf16.mxu0 %v6447_v34  ;;  %5156 = vmatprep.subr.bf16.mxu1 %v6449_v35 }
 0x663   :  { %v2883_v38 = vpop.f32.mrb[30].mxu0  ;;  %v2958_v48 = vpop.f32.mrb[30].mxu1  ;;  %5126 = vmatpush1.bf16.msra.mxu0 %v6453_v51  ;;  %5158 = vmatpush1.bf16.msra.mxu1 %v6455_v59 }
 0x664   :  { %v5461_v21 = vadd.f32 %v2883_v38, %v6553_v13  ;;  %v2885_v37 = vpop.f32.mrb[31].mxu0  ;;  %v2960_v52 = vpop.f32.mrb[31].mxu1  ;;  %5128 = vmatprep.subr.bf16.mxu0 %v6459_v57  ;;  %5160 = vmatprep.subr.bf16.mxu1 %v6461_v5  ;;  %v5477_v31 = vadd.f32 %v2958_v48, %v7370_v41 }
 0x665   :  { %v5462_v55 = vadd.f32 %v2885_v37, %v6556_v61  ;;  %v5478_v40 = vadd.f32 %v2960_v52, %v6560_v1 }
 0x666   :  { %v4246_v63 = vmul.f32 -1.442695, %v5461_v21 }
 0x667   :  { %v4247_v7 = vmul.f32 -1.442695, %v5462_v55  ;;  %5130 = vmatpush1.bf16.msra.mxu0 %v6465_v26  ;;  %5162 = vmatpush1.bf16.msra.mxu1 %v6467_v29  ;;  %v4248_v62 = vmul.f32 -1.442695, %v5478_v40 }
 0x668   :  { %5734 = vpow2.f32 %v4246_v63  ;;  %5132 = vmatprep.subr.bf16.mxu0 %v6471_v16  ;;  %5164 = vmatprep.subr.bf16.mxu1 %v6473_v25 }
 0x669   :  { %5736 = vpow2.f32 %v4247_v7 }
 0x66a   :  { %5738 = vpow2.f32 %v4248_v62 }
 0x66b   :  { %5134 = vmatpush1.bf16.msra.mxu0 %v6477_v2  ;;  %5166 = vmatpush1.bf16.msra.mxu1 %v6479_v3  ;;  %5740 = vtanh.f32 %v5477_v31  ;;  %v7456_v31 = vld [vmem:[#allocation12_spill] sm:$0xff] }
 0x66c   :  { %5168 = vmatprep.subr.bf16.mxu0 %v6201_v45  ;;  %5200 = vmatprep.subr.bf16.mxu1 %v6208_v50 }
 0x672   :  { %v5735_v8 = vpop.eup %5734 }
 0x673   :  { %v5737_v39 = vpop.eup %5736  ;;  %v3004_v30 = vadd.f32 1.0, %v5735_v8  ;;  %v7457_v8 = vld [vmem:[#allocation13_spill] sm:$0xff] }
 0x674   :  { %v3005_v44 = vadd.f32 1.0, %v5737_v39  ;;  %v5739_v38 = vpop.eup %5738  ;;  %v7458_v39 = vld [vmem:[#allocation14_spill] sm:$0xff] }
 0x675   :  { %5742 = vrcp.f32 %v3004_v30  ;;  %v5741_v21 = vpop.eup %5740  ;;  %v3006_v63 = vadd.f32 1.0, %v5739_v38  ;;  %v7459_v30 = vld [vmem:[#allocation15_spill] sm:$0xff]  ;;  %v7461_v38 = vld [vmem:[#allocation17_spill] sm:$0xff] }
 0x676   :  { %5744 = vrcp.f32 %v3005_v44  ;;  %v7460_v44 = vld [vmem:[#allocation16_spill] sm:$0xff] }
 0x677   :  { %5746 = vrcp.f32 %v3006_v63  ;;  %v7466_v63 = vld [vmem:[#allocation22_spill] sm:$0xff] }
 0x67f   :  { %v5743_v37 = vpop.eup %5742 }
 0x680   :  { %v5745_v52 = vpop.eup %5744  ;;  %v3015_v55 = vmul.f32 %v5743_v37, %v5741_v21  ;;  %v7462_v21 = vld [vmem:[#allocation18_spill] sm:$0xff]  ;;  %v7463_v37 = vld [vmem:[#allocation19_spill] sm:$0xff] }
 0x681   :  { %v3014_v7 = vmul.f32 %v5745_v52, %v6890_v6  ;;  %v5747_v48 = vpop.eup %5746  ;;  %v7454_v6 = vld [vmem:[#allocation10_spill] sm:$0xff]  ;;  %v7464_v52 = vld [vmem:[#allocation20_spill] sm:$0xff] }
 0x683   :  { %v6985_v1 = vadd.f32 %v3015_v55, %v3014_v7  ;;  %v7465_v55 = vld [vmem:[#allocation21_spill] sm:$0xff]  ;;  %v7467_v7 = vld [vmem:[#allocation23_spill] sm:$0xff] }
 0x685   :  { %5748 = vtanh.f32 %v6985_v1 }
 0x68f   :  { %v5749_v40 = vpop.eup %5748 }
 0x690   :  { %v3018_v62 = vmul.f32 %v5749_v40, %v5747_v48  ;;  %v7468_v48 = vld [vmem:[#allocation24_spill] sm:$0xff]  ;;  %v7469_v40 = vld [vmem:[#allocation25_spill] sm:$0xff] }
 0x692   :  { %3020 = vst [vmem:[#allocation7 + $0x38] sm:$0xff] %v3018_v62  ;;  %3104 = vmatmul.mubr.f32.gmra.mrb[60].mxu0 %v3018_v62  ;;  %3179 = vmatmul.mubr.f32.gmra.mrb[60].mxu1 %v3018_v62 }
 0x693   :  { %3247 = vmatprep.mubr.f32.mxu0 %v7338_v60  ;;  %3322 = vmatprep.mubr.f32.mxu1 %v7338_v60 }
 0x696   :  { %3248 = vmatmul.mubr.f32.vlgmr.msra.gmra.mrb[62].mxu0 %v6941_v15  ;;  %3323 = vmatmul.mubr.f32.vlgmr.msra.gmra.mrb[62].mxu1 %v6941_v15  ;;  %v7455_v15 = vld [vmem:[#allocation11_spill] sm:$0xff] }
 0x697   :  { %3251 = vmatprep.mubr.f32.mxu0 %v7338_v60  ;;  %3326 = vmatprep.mubr.f32.mxu1 %v7338_v60 }
 0x698   :  { %5170 = vmatpush1.bf16.msra.mxu0 %v6251_v9  ;;  %5202 = vmatpush1.bf16.msra.mxu1 %v6253_v10 }
 0x699   :  { %5172 = vmatprep.subr.bf16.mxu0 %v6257_v17  ;;  %5204 = vmatprep.subr.bf16.mxu1 %v6259_v18 }
 0x69a   :  { %3252 = vmatmul.mubr.f32.gmra.mrb[28].mxu0 %v3018_v62  ;;  %3327 = vmatmul.mubr.f32.gmra.mrb[28].mxu1 %v3018_v62  ;;  %v7470_v62 = vld [vmem:[#allocation26_spill] sm:$0xff] }
 0x69b   :  { %3467 = vmatprep.mubr.f32.mxu0 %v7338_v60  ;;  %3542 = vmatprep.mubr.f32.mxu1 %v7338_v60 }
 0x69c   :  { %5174 = vmatpush1.bf16.msra.mxu0 %v6265_v22  ;;  %5206 = vmatpush1.bf16.msra.mxu1 %v6267_v23 }
 0x69d   :  { %5176 = vmatprep.subr.bf16.mxu0 %v7454_v6  ;;  %5208 = vmatprep.subr.bf16.mxu1 %v7455_v15 }
 0x6a0   :  { %5178 = vmatpush1.bf16.msra.mxu0 %v7456_v31  ;;  %5210 = vmatpush1.bf16.msra.mxu1 %v7457_v8 }
 0x6a1   :  { %5180 = vmatprep.subr.bf16.mxu0 %v7458_v39  ;;  %5212 = vmatprep.subr.bf16.mxu1 %v7459_v30  ;;  %v7480_v30 = vld [vmem:[#allocation46_spill] sm:$0xff] }
 0x6a4   :  { %5182 = vmatpush1.bf16.msra.mxu0 %v7460_v44  ;;  %5214 = vmatpush1.bf16.msra.mxu1 %v7461_v38  ;;  %v7471_v44 = vld [vmem:[#allocation27_spill] sm:$0xff]  ;;  %v7472_v38 = vld [vmem:[#allocation28_spill] sm:$0xff] }
 0x6a5   :  { %5184 = vmatprep.subr.bf16.mxu0 %v7462_v21  ;;  %5216 = vmatprep.subr.bf16.mxu1 %v7463_v37  ;;  %v7473_v21 = vld [vmem:[#allocation29_spill] sm:$0xff]  ;;  %v7474_v37 = vld [vmem:[#allocation30_spill] sm:$0xff] }
 0x6a8   :  { %5186 = vmatpush1.bf16.msra.mxu0 %v7464_v52  ;;  %5218 = vmatpush1.bf16.msra.mxu1 %v7465_v55  ;;  %v7475_v52 = vld [vmem:[#allocation31_spill] sm:$0xff]  ;;  %v7476_v55 = vld [vmem:[#allocation32_spill] sm:$0xff] }
 0x6a9   :  { %5188 = vmatprep.subr.bf16.mxu0 %v7466_v63  ;;  %5220 = vmatprep.subr.bf16.mxu1 %v7467_v7  ;;  %v7477_v63 = vld [vmem:[#allocation33_spill] sm:$0xff]  ;;  %v7478_v7 = vld [vmem:[#allocation34_spill] sm:$0xff] }
 0x6ac   :  { %5190 = vmatpush1.bf16.msra.mxu0 %v7468_v48  ;;  %5222 = vmatpush1.bf16.msra.mxu1 %v7469_v40  ;;  %v7479_v48 = vld [vmem:[#allocation35_spill] sm:$0xff] }
 0x6ad   :  { %5192 = vmatprep.subr.bf16.mxu0 %v7470_v62  ;;  %5224 = vmatprep.subr.bf16.mxu1 %v7471_v44 }
 0x6b0   :  { %5194 = vmatpush1.bf16.msra.mxu0 %v7472_v38  ;;  %5226 = vmatpush1.bf16.msra.mxu1 %v7473_v21 }
 0x6b1   :  { %5196 = vmatprep.subr.bf16.mxu0 %v7474_v37  ;;  %5228 = vmatprep.subr.bf16.mxu1 %v7475_v52 }
 0x6b4   :  { %5198 = vmatpush1.bf16.msra.mxu0 %v7476_v55  ;;  %5230 = vmatpush1.bf16.msra.mxu1 %v7477_v63 }
 0x6b5   :  { %5232 = vmatprep.subr.bf16.mxu0 %v7478_v7  ;;  %5264 = vmatprep.subr.bf16.mxu1 %v7479_v48 }
 0x721   :  { %v3099_v40 = vpop.f32.mrb[18].mxu0  ;;  %v3174_v62 = vpop.f32.mrb[18].mxu1 }
 0x722   :  { %v5433_v44 = vadd.f32 %v3099_v40, %v7480_v30  ;;  %v3101_v39 = vpop.f32.mrb[19].mxu0  ;;  %v3176_v38 = vpop.f32.mrb[19].mxu1  ;;  %v5449_v63 = vadd.f32 %v3174_v62, %v7399_v42 }
 0x723   :  { %v5434_v21 = vadd.f32 %v3101_v39, %v7397_v4  ;;  %v5450_v55 = vadd.f32 %v3176_v38, %v7398_v32 }
 0x724   :  { %v4249_v8 = vmul.f32 -1.442695, %v5433_v44 }
 0x725   :  { %v4250_v37 = vmul.f32 -1.442695, %v5434_v21  ;;  %v4251_v52 = vmul.f32 -1.442695, %v5450_v55 }
 0x726   :  { %5750 = vpow2.f32 %v4249_v8 }
 0x727   :  { %5752 = vpow2.f32 %v4250_v37 }
 0x728   :  { %5754 = vpow2.f32 %v4251_v52 }
 0x729   :  { %5756 = vtanh.f32 %v5449_v63 }
 0x730   :  { %v5751_v7 = vpop.eup %5750 }
 0x731   :  { %v5753_v31 = vpop.eup %5752  ;;  %v3350_v48 = vadd.f32 1.0, %v5751_v7 }
 0x732   :  { %v3351_v15 = vadd.f32 1.0, %v5753_v31  ;;  %v5755_v40 = vpop.eup %5754 }
 0x733   :  { %5758 = vrcp.f32 %v3350_v48  ;;  %v5757_v30 = vpop.eup %5756  ;;  %v3352_v8 = vadd.f32 1.0, %v5755_v40 }
 0x734   :  { %5760 = vrcp.f32 %v3351_v15 }
 0x735   :  { %5762 = vrcp.f32 %v3352_v8 }
 0x73d   :  { %v5759_v39 = vpop.eup %5758 }
 0x73e   :  { %v5761_v44 = vpop.eup %5760  ;;  %v3361_v21 = vmul.f32 %v5759_v39, %v5757_v30 }
 0x73f   :  { %v3360_v37 = vmul.f32 %v5761_v44, %v6938_v49  ;;  %v5763_v55 = vpop.eup %5762 }
 0x741   :  { %v7033_v38 = vadd.f32 %v3361_v21, %v3360_v37 }
 0x743   :  { %5764 = vtanh.f32 %v7033_v38 }
 0x74d   :  { %v5765_v7 = vpop.eup %5764 }
 0x74e   :  { %v7036_v52 = vmul.f32 %v5765_v7, %v5763_v55 }
 0x750   :  { %3389 = vst [vmem:[#allocation7 + $0x50] sm:$0xff] %v7036_v52  ;;  %3468 = vmatmul.mubr.f32.vlgmr.msra.gmra.mrb[20].mxu0 %v7036_v52  ;;  %3543 = vmatmul.mubr.f32.vlgmr.msra.gmra.mrb[20].mxu1 %v7036_v52 }
 0x751   :  { %5234 = vmatpush1.bf16.msra.mxu0 %v6383_v12  ;;  %5266 = vmatpush1.bf16.msra.mxu1 %v6385_v19 }
 0x752   :  { %5236 = vmatprep.subr.bf16.mxu0 %v6389_v27  ;;  %5268 = vmatprep.subr.bf16.mxu1 %v6391_v28 }
 0x753   :  { %3473 = vmatprep.mubr.f32.mxu0 %v7338_v60  ;;  %3548 = vmatprep.mubr.f32.mxu1 %v7338_v60 }
 0x755   :  { %5238 = vmatpush1.bf16.msra.mxu0 %v6399_v46  ;;  %5270 = vmatpush1.bf16.msra.mxu1 %v6401_v24 }
 0x756   :  { %5240 = vmatprep.subr.bf16.mxu0 %v6405_v56  ;;  %5272 = vmatprep.subr.bf16.mxu1 %v6407_v58 }
 0x759   :  { %5242 = vmatpush1.bf16.msra.mxu0 %v7345_v33  ;;  %5274 = vmatpush1.bf16.msra.mxu1 %v7346_v20 }
 0x75a   :  { %5244 = vmatprep.subr.bf16.mxu0 %v7371_v43  ;;  %5276 = vmatprep.subr.bf16.mxu1 %v7348_v0 }
 0x75d   :  { %5246 = vmatpush1.bf16.msra.mxu0 %v7372_v11  ;;  %5278 = vmatpush1.bf16.msra.mxu1 %v7373_v47 }
 0x75e   :  { %5248 = vmatprep.subr.bf16.mxu0 %v7351_v14  ;;  %5280 = vmatprep.subr.bf16.mxu1 %v7352_v36 }
 0x761   :  { %5250 = vmatpush1.bf16.msra.mxu0 %v7353_v53  ;;  %5282 = vmatpush1.bf16.msra.mxu1 %v7354_v54 }
 0x762   :  { %5252 = vmatprep.subr.bf16.mxu0 %v6447_v34  ;;  %5284 = vmatprep.subr.bf16.mxu1 %v6449_v35 }
 0x765   :  { %v3105_v49 = vpop.f32.mrb[60].mxu0  ;;  %v3180_v15 = vpop.f32.mrb[60].mxu1  ;;  %5254 = vmatpush1.bf16.msra.mxu0 %v6453_v51  ;;  %5286 = vmatpush1.bf16.msra.mxu1 %v6455_v59 }
 0x766   :  { %v3106_v31 = vpop.f32.mrb[61].mxu0  ;;  %v3181_v30 = vpop.f32.mrb[61].mxu1  ;;  %5256 = vmatprep.subr.bf16.mxu0 %v6459_v57  ;;  %5288 = vmatprep.subr.bf16.mxu1 %v6461_v5  ;;  %v7481_v15 = vld [vmem:[#allocation50_spill] sm:$0xff] }
 0x769   :  { %v3249_v63 = vpop.f32.mrb[62].mxu0  ;;  %v3324_v48 = vpop.f32.mrb[62].mxu1  ;;  %5258 = vmatpush1.bf16.msra.mxu0 %v6465_v26  ;;  %5290 = vmatpush1.bf16.msra.mxu1 %v6467_v29 }
 0x76a   :  { %v3250_v62 = vpop.f32.mrb[63].mxu0  ;;  %v3325_v40 = vpop.f32.mrb[63].mxu1  ;;  %5260 = vmatprep.subr.bf16.mxu0 %v6471_v16  ;;  %5292 = vmatprep.subr.bf16.mxu1 %v6473_v25 }
 0x76d   :  { %v3253_v39 = vpop.f32.mrb[28].mxu0  ;;  %v3328_v44 = vpop.f32.mrb[28].mxu1  ;;  %5262 = vmatpush1.bf16.msra.mxu0 %v6477_v2  ;;  %5294 = vmatpush1.bf16.msra.mxu1 %v6479_v3 }
 0x76e   :  { %v5459_v21 = vadd.f32 %v3253_v39, %v6553_v13  ;;  %v3255_v8 = vpop.f32.mrb[29].mxu0  ;;  %v3330_v37 = vpop.f32.mrb[29].mxu1  ;;  %5296 = vmatprep.subr.bf16.mxu0 %v6201_v45  ;;  %5328 = vmatprep.subr.bf16.mxu1 %v6208_v50  ;;  %v5475_v63 = vadd.f32 %v3328_v44, %v7370_v41 }
 0x76f   :  { %v5460_v55 = vadd.f32 %v3255_v8, %v6556_v61  ;;  %v5476_v31 = vadd.f32 %v3330_v37, %v7481_v15 }
 0x770   :  { %v4252_v7 = vmul.f32 -1.442695, %v5459_v21 }
 0x771   :  { %v4253_v49 = vmul.f32 -1.442695, %v5460_v55  ;;  %v4254_v30 = vmul.f32 -1.442695, %v5476_v31 }
 0x772   :  { %5766 = vpow2.f32 %v4252_v7 }
 0x773   :  { %5768 = vpow2.f32 %v4253_v49 }
 0x774   :  { %5770 = vpow2.f32 %v4254_v30 }
 0x775   :  { %5772 = vtanh.f32 %v5475_v63  ;;  %v7488_v63 = vld [vmem:[#allocation17_spill] sm:$0xff] }
 0x77c   :  { %v5767_v48 = vpop.eup %5766 }
 0x77d   :  { %v5769_v62 = vpop.eup %5768  ;;  %v3374_v40 = vadd.f32 1.0, %v5767_v48  ;;  %v7489_v48 = vld [vmem:[#allocation18_spill] sm:$0xff] }
 0x77e   :  { %v3375_v39 = vadd.f32 1.0, %v5769_v62  ;;  %v5771_v45 = vpop.eup %5770  ;;  %v7493_v62 = vld [vmem:[#allocation22_spill] sm:$0xff] }
 0x77f   :  { %5774 = vrcp.f32 %v3374_v40  ;;  %v5773_v50 = vpop.eup %5772  ;;  %v3376_v7 = vadd.f32 1.0, %v5771_v45  ;;  %v7494_v40 = vld [vmem:[#allocation23_spill] sm:$0xff]  ;;  %v7496_v45 = vld [vmem:[#allocation25_spill] sm:$0xff] }
 0x780   :  { %5776 = vrcp.f32 %v3375_v39  ;;  %v7495_v39 = vld [vmem:[#allocation24_spill] sm:$0xff] }
 0x781   :  { %5778 = vrcp.f32 %v3376_v7  ;;  %v7501_v7 = vld [vmem:[#allocation30_spill] sm:$0xff] }
 0x789   :  { %v5775_v8 = vpop.eup %5774 }
 0x78a   :  { %v5777_v21 = vpop.eup %5776  ;;  %v3385_v55 = vmul.f32 %v5775_v8, %v5773_v50  ;;  %v7497_v50 = vld [vmem:[#allocation26_spill] sm:$0xff]  ;;  %v7498_v8 = vld [vmem:[#allocation27_spill] sm:$0xff] }
 0x78b   :  { %v3384_v49 = vmul.f32 %v5777_v21, %v6985_v1  ;;  %v5779_v44 = vpop.eup %5778  ;;  %v7482_v1 = vld [vmem:[#allocation11_spill] sm:$0xff]  ;;  %v7499_v21 = vld [vmem:[#allocation28_spill] sm:$0xff] }
 0x78d   :  { %v7080_v37 = vadd.f32 %v3385_v55, %v3384_v49  ;;  %v7500_v55 = vld [vmem:[#allocation29_spill] sm:$0xff]  ;;  %v7502_v49 = vld [vmem:[#allocation31_spill] sm:$0xff] }
 0x78f   :  { %5780 = vtanh.f32 %v7080_v37 }
 0x799   :  { %v5781_v31 = vpop.eup %5780 }
 0x79a   :  { %v3388_v30 = vmul.f32 %v5781_v31, %v5779_v44  ;;  %v7503_v44 = vld [vmem:[#allocation32_spill] sm:$0xff]  ;;  %v7504_v31 = vld [vmem:[#allocation33_spill] sm:$0xff] }
 0x79c   :  { %3390 = vst [vmem:[#allocation7 + $0x28] sm:$0xff] %v3388_v30  ;;  %3474 = vmatmul.mubr.f32.gmra.mrb[64].mxu0 %v3388_v30  ;;  %3549 = vmatmul.mubr.f32.gmra.mrb[64].mxu1 %v3388_v30 }
 0x79d   :  { %3617 = vmatprep.mubr.f32.mxu0 %v7338_v60  ;;  %3692 = vmatprep.mubr.f32.mxu1 %v7338_v60 }
 0x7a0   :  { %3618 = vmatmul.mubr.f32.vlgmr.msra.gmra.mrb[66].mxu0 %v7036_v52  ;;  %3693 = vmatmul.mubr.f32.vlgmr.msra.gmra.mrb[66].mxu1 %v7036_v52  ;;  %v7487_v52 = vld [vmem:[#allocation16_spill] sm:$0xff] }
 0x7a1   :  { %3621 = vmatprep.mubr.f32.mxu0 %v7338_v60  ;;  %3696 = vmatprep.mubr.f32.mxu1 %v7338_v60 }
 0x7a2   :  { %5298 = vmatpush1.bf16.msra.mxu0 %v6251_v9  ;;  %5330 = vmatpush1.bf16.msra.mxu1 %v6253_v10  ;;  %v7483_v9 = vld [vmem:[#allocation12_spill] sm:$0xff]  ;;  %v7484_v10 = vld [vmem:[#allocation13_spill] sm:$0xff] }
 0x7a3   :  { %5300 = vmatprep.subr.bf16.mxu0 %v6257_v17  ;;  %5332 = vmatprep.subr.bf16.mxu1 %v6259_v18  ;;  %v7485_v17 = vld [vmem:[#allocation14_spill] sm:$0xff]  ;;  %v7486_v18 = vld [vmem:[#allocation15_spill] sm:$0xff] }
 0x7a4   :  { %3622 = vmatmul.mubr.f32.gmra.mrb[26].mxu0 %v3388_v30  ;;  %3697 = vmatmul.mubr.f32.gmra.mrb[26].mxu1 %v3388_v30  ;;  %v7505_v30 = vld [vmem:[#allocation34_spill] sm:$0xff] }
 0x7a5   :  { %3837 = vmatprep.mubr.f32.mxu0 %v7338_v60  ;;  %3912 = vmatprep.mubr.f32.mxu1 %v7338_v60 }
 0x7a6   :  { %5302 = vmatpush1.bf16.msra.mxu0 %v6265_v22  ;;  %5334 = vmatpush1.bf16.msra.mxu1 %v6267_v23  ;;  %v7490_v22 = vld [vmem:[#allocation19_spill] sm:$0xff]  ;;  %v7491_v23 = vld [vmem:[#allocation20_spill] sm:$0xff] }
 0x7a7   :  { %5304 = vmatprep.subr.bf16.mxu0 %v7454_v6  ;;  %5336 = vmatprep.subr.bf16.mxu1 %v7482_v1  ;;  %v7492_v6 = vld [vmem:[#allocation21_spill] sm:$0xff]  ;;  %v7506_v1 = vld [vmem:[#allocation35_spill] sm:$0xff] }
 0x7aa   :  { %5306 = vmatpush1.bf16.msra.mxu0 %v7483_v9  ;;  %5338 = vmatpush1.bf16.msra.mxu1 %v7484_v10 }
 0x7ab   :  { %5308 = vmatprep.subr.bf16.mxu0 %v7485_v17  ;;  %5340 = vmatprep.subr.bf16.mxu1 %v7486_v18  ;;  %v7507_v17 = vld [vmem:[#allocation46_spill] sm:$0xff] }
 0x7ae   :  { %5310 = vmatpush1.bf16.msra.mxu0 %v7487_v52  ;;  %5342 = vmatpush1.bf16.msra.mxu1 %v7488_v63 }
 0x7af   :  { %5312 = vmatprep.subr.bf16.mxu0 %v7489_v48  ;;  %5344 = vmatprep.subr.bf16.mxu1 %v7490_v22 }
 0x7b2   :  { %5314 = vmatpush1.bf16.msra.mxu0 %v7491_v23  ;;  %5346 = vmatpush1.bf16.msra.mxu1 %v7492_v6 }
 0x7b3   :  { %5316 = vmatprep.subr.bf16.mxu0 %v7493_v62  ;;  %5348 = vmatprep.subr.bf16.mxu1 %v7494_v40 }
 0x7b6   :  { %5318 = vmatpush1.bf16.msra.mxu0 %v7495_v39  ;;  %5350 = vmatpush1.bf16.msra.mxu1 %v7496_v45 }
 0x7b7   :  { %5320 = vmatprep.subr.bf16.mxu0 %v7497_v50  ;;  %5352 = vmatprep.subr.bf16.mxu1 %v7498_v8 }
 0x7ba   :  { %5322 = vmatpush1.bf16.msra.mxu0 %v7499_v21  ;;  %5354 = vmatpush1.bf16.msra.mxu1 %v7500_v55 }
 0x7bb   :  { %5324 = vmatprep.subr.bf16.mxu0 %v7501_v7  ;;  %5356 = vmatprep.subr.bf16.mxu1 %v7502_v49 }
 0x7be   :  { %5326 = vmatpush1.bf16.msra.mxu0 %v7503_v44  ;;  %5358 = vmatpush1.bf16.msra.mxu1 %v7504_v31 }
 0x7bf   :  { %5360 = vmatprep.subr.bf16.mxu0 %v7505_v30  ;;  %5392 = vmatprep.subr.bf16.mxu1 %v7506_v1 }
 0x823   :  { %v3469_v9 = vpop.f32.mrb[20].mxu0  ;;  %v3544_v10 = vpop.f32.mrb[20].mxu1 }
 0x824   :  { %v5435_v18 = vadd.f32 %v3469_v9, %v7507_v17  ;;  %v3471_v52 = vpop.f32.mrb[21].mxu0  ;;  %v3546_v63 = vpop.f32.mrb[21].mxu1  ;;  %v5451_v40 = vadd.f32 %v3544_v10, %v7399_v42 }
 0x825   :  { %v5436_v48 = vadd.f32 %v3471_v52, %v7397_v4  ;;  %v5452_v6 = vadd.f32 %v3546_v63, %v7398_v32 }
 0x826   :  { %v4255_v22 = vmul.f32 -1.442695, %v5435_v18 }
 0x827   :  { %v4256_v23 = vmul.f32 -1.442695, %v5436_v48  ;;  %v4257_v62 = vmul.f32 -1.442695, %v5452_v6 }
 0x828   :  { %5782 = vpow2.f32 %v4255_v22 }
 0x829   :  { %5784 = vpow2.f32 %v4256_v23 }
 0x82a   :  { %5786 = vpow2.f32 %v4257_v62 }
 0x82b   :  { %5788 = vtanh.f32 %v5451_v40 }
 0x832   :  { %v5783_v39 = vpop.eup %5782 }
 0x833   :  { %v5785_v45 = vpop.eup %5784  ;;  %v3720_v50 = vadd.f32 1.0, %v5783_v39 }
 0x834   :  { %v3721_v8 = vadd.f32 1.0, %v5785_v45  ;;  %v5787_v21 = vpop.eup %5786 }
 0x835   :  { %5790 = vrcp.f32 %v3720_v50  ;;  %v5789_v55 = vpop.eup %5788  ;;  %v3722_v31 = vadd.f32 1.0, %v5787_v21 }
 0x836   :  { %5792 = vrcp.f32 %v3721_v8 }
 0x837   :  { %5794 = vrcp.f32 %v3722_v31 }
 0x83f   :  { %v5791_v7 = vpop.eup %5790 }
 0x840   :  { %v5793_v49 = vpop.eup %5792  ;;  %v3731_v44 = vmul.f32 %v5791_v7, %v5789_v55 }
 0x841   :  { %v3730_v30 = vmul.f32 %v5793_v49, %v7033_v38  ;;  %v5795_v9 = vpop.eup %5794 }
 0x843   :  { %v7128_v1 = vadd.f32 %v3731_v44, %v3730_v30 }
 0x845   :  { %5796 = vtanh.f32 %v7128_v1 }
 0x84f   :  { %v5797_v10 = vpop.eup %5796 }
 0x850   :  { %v7131_v18 = vmul.f32 %v5797_v10, %v5795_v9 }
 0x852   :  { %3759 = vst [vmem:[#allocation7 + $0x60] sm:$0xff] %v7131_v18  ;;  %3838 = vmatmul.mubr.f32.vlgmr.msra.gmra.mrb[22].mxu0 %v7131_v18  ;;  %3913 = vmatmul.mubr.f32.vlgmr.msra.gmra.mrb[22].mxu1 %v7131_v18 }
 0x853   :  { %5362 = vmatpush1.bf16.msra.mxu0 %v6383_v12  ;;  %5394 = vmatpush1.bf16.msra.mxu1 %v6385_v19 }
 0x854   :  { %5364 = vmatprep.subr.bf16.mxu0 %v6389_v27  ;;  %5396 = vmatprep.subr.bf16.mxu1 %v6391_v28 }
 0x855   :  { %3843 = vmatprep.mubr.f32.mxu0 %v7338_v60  ;;  %3918 = vmatprep.mubr.f32.mxu1 %v7338_v60 }
 0x857   :  { %5366 = vmatpush1.bf16.msra.mxu0 %v6399_v46  ;;  %5398 = vmatpush1.bf16.msra.mxu1 %v6401_v24 }
 0x858   :  { %5368 = vmatprep.subr.bf16.mxu0 %v6405_v56  ;;  %5400 = vmatprep.subr.bf16.mxu1 %v6407_v58 }
 0x85b   :  { %5370 = vmatpush1.bf16.msra.mxu0 %v7345_v33  ;;  %5402 = vmatpush1.bf16.msra.mxu1 %v7346_v20 }
 0x85c   :  { %5372 = vmatprep.subr.bf16.mxu0 %v7371_v43  ;;  %5404 = vmatprep.subr.bf16.mxu1 %v7348_v0 }
 0x85f   :  { %5374 = vmatpush1.bf16.msra.mxu0 %v7372_v11  ;;  %5406 = vmatpush1.bf16.msra.mxu1 %v7373_v47 }
 0x860   :  { %5376 = vmatprep.subr.bf16.mxu0 %v7351_v14  ;;  %5408 = vmatprep.subr.bf16.mxu1 %v7352_v36 }
 0x863   :  { %5378 = vmatpush1.bf16.msra.mxu0 %v7353_v53  ;;  %5410 = vmatpush1.bf16.msra.mxu1 %v7354_v54 }
 0x864   :  { %5380 = vmatprep.subr.bf16.mxu0 %v6447_v34  ;;  %5412 = vmatprep.subr.bf16.mxu1 %v6449_v35 }
 0x867   :  { %5382 = vmatpush1.bf16.msra.mxu0 %v6453_v51  ;;  %5414 = vmatpush1.bf16.msra.mxu1 %v6455_v59 }
 0x868   :  { %5384 = vmatprep.subr.bf16.mxu0 %v6459_v57  ;;  %5416 = vmatprep.subr.bf16.mxu1 %v6461_v5 }
 0x86b   :  { %5386 = vmatpush1.bf16.msra.mxu0 %v6465_v26  ;;  %5418 = vmatpush1.bf16.msra.mxu1 %v6467_v29 }
 0x86c   :  { %5388 = vmatprep.subr.bf16.mxu0 %v6471_v16  ;;  %5420 = vmatprep.subr.bf16.mxu1 %v6473_v25 }
 0x86f   :  { %v3475_v12 = vpop.f32.mrb[64].mxu0  ;;  %v3550_v19 = vpop.f32.mrb[64].mxu1  ;;  %5390 = vmatpush1.bf16.msra.mxu0 %v6477_v2  ;;  %5422 = vmatpush1.bf16.msra.mxu1 %v6479_v3 }
 0x870   :  { %v3476_v27 = vpop.f32.mrb[65].mxu0  ;;  %v3551_v28 = vpop.f32.mrb[65].mxu1 }
 0x873   :  { %v3619_v46 = vpop.f32.mrb[66].mxu0  ;;  %v3694_v24 = vpop.f32.mrb[66].mxu1 }
 0x874   :  { %v3620_v56 = vpop.f32.mrb[67].mxu0  ;;  %v3695_v58 = vpop.f32.mrb[67].mxu1 }
 0x877   :  { %v3623_v34 = vpop.f32.mrb[26].mxu0  ;;  %v3698_v35 = vpop.f32.mrb[26].mxu1 }
 0x878   :  { %v5457_v51 = vadd.f32 %v3623_v34, %v6553_v13  ;;  %v3625_v59 = vpop.f32.mrb[27].mxu0  ;;  %v3700_v57 = vpop.f32.mrb[27].mxu1  ;;  %v5473_v2 = vadd.f32 %v3698_v35, %v7370_v41 }
 0x879   :  { %v5458_v5 = vadd.f32 %v3625_v59, %v6556_v61  ;;  %v5474_v16 = vadd.f32 %v3700_v57, %v7481_v15 }
 0x87a   :  { %v4258_v26 = vmul.f32 -1.442695, %v5457_v51 }
 0x87b   :  { %v4259_v29 = vmul.f32 -1.442695, %v5458_v5  ;;  %v4260_v25 = vmul.f32 -1.442695, %v5474_v16 }
 0x87c   :  { %5798 = vpow2.f32 %v4258_v26 }
 0x87d   :  { %5800 = vpow2.f32 %v4259_v29 }
 0x87e   :  { %5802 = vpow2.f32 %v4260_v25 }
 0x87f   :  { %5804 = vtanh.f32 %v5473_v2 }
 0x886   :  { %v5799_v3 = vpop.eup %5798 }
 0x887   :  { %v5801_v33 = vpop.eup %5800  ;;  %v3744_v20 = vadd.f32 1.0, %v5799_v3 }
 0x888   :  { %v3745_v0 = vadd.f32 1.0, %v5801_v33  ;;  %v5803_v14 = vpop.eup %5802 }
 0x889   :  { %5806 = vrcp.f32 %v3744_v20  ;;  %v5805_v36 = vpop.eup %5804  ;;  %v3746_v11 = vadd.f32 1.0, %v5803_v14 }
 0x88a   :  { %5808 = vrcp.f32 %v3745_v0 }
 0x88b   :  { %5810 = vrcp.f32 %v3746_v11 }
 0x893   :  { %v5807_v53 = vpop.eup %5806 }
 0x894   :  { %v5809_v54 = vpop.eup %5808  ;;  %v3755_v43 = vmul.f32 %v5807_v53, %v5805_v36 }
 0x895   :  { %v3754_v47 = vmul.f32 %v5809_v54, %v7080_v37  ;;  %v5811_v52 = vpop.eup %5810 }
 0x897   :  { %v7173_v38 = vadd.f32 %v3755_v43, %v3754_v47 }
 0x899   :  { %5812 = vtanh.f32 %v7173_v38 }
 0x8a3   :  { %v5813_v63 = vpop.eup %5812 }
 0x8a4   :  { %v3758_v48 = vmul.f32 %v5813_v63, %v5811_v52 }
 0x8a6   :  { %3760 = vst [vmem:[#allocation7 + $0x18] sm:$0xff] %v3758_v48  ;;  %3844 = vmatmul.mubr.f32.gmra.mrb[68].mxu0 %v3758_v48  ;;  %3919 = vmatmul.mubr.f32.gmra.mrb[68].mxu1 %v3758_v48 }
 0x8a7   :  { %3987 = vmatprep.mubr.f32.mxu0 %v7338_v60  ;;  %4062 = vmatprep.mubr.f32.mxu1 %v7338_v60 }
 0x8aa   :  { %3988 = vmatmul.mubr.f32.vlgmr.msra.gmra.mrb[70].mxu0 %v7131_v18  ;;  %4063 = vmatmul.mubr.f32.vlgmr.msra.gmra.mrb[70].mxu1 %v7131_v18 }
 0x8ab   :  { %3991 = vmatprep.mubr.f32.mxu0 %v7338_v60  ;;  %4066 = vmatprep.mubr.f32.mxu1 %v7338_v60 }
 0x8ae   :  { %3992 = vmatmul.mubr.f32.gmra.mrb[24].mxu0 %v3758_v48  ;;  %4067 = vmatmul.mubr.f32.gmra.mrb[24].mxu1 %v3758_v48 }
 0x925   :  { %v3839_v37 = vpop.f32.mrb[22].mxu0  ;;  %v3914_v22 = vpop.f32.mrb[22].mxu1 }
 0x926   :  { %v5437_v23 = vadd.f32 %v3839_v37, %v7507_v17  ;;  %v3841_v6 = vpop.f32.mrb[23].mxu0  ;;  %v3916_v62 = vpop.f32.mrb[23].mxu1  ;;  %v5453_v21 = vadd.f32 %v3914_v22, %v7399_v42 }
 0x927   :  { %v5438_v40 = vadd.f32 %v3841_v6, %v7397_v4  ;;  %v5454_v50 = vadd.f32 %v3916_v62, %v7398_v32 }
 0x928   :  { %v4261_v39 = vmul.f32 -1.442695, %v5437_v23 }
 0x929   :  { %v4262_v45 = vmul.f32 -1.442695, %v5438_v40  ;;  %v4263_v8 = vmul.f32 -1.442695, %v5454_v50 }
 0x92a   :  { %5814 = vpow2.f32 %v4261_v39 }
 0x92b   :  { %5816 = vpow2.f32 %v4262_v45 }
 0x92c   :  { %5818 = vpow2.f32 %v4263_v8 }
 0x92d   :  { %5820 = vtanh.f32 %v5453_v21 }
 0x934   :  { %v5815_v60 = vpop.eup %5814 }
 0x935   :  { %v5817_v55 = vpop.eup %5816  ;;  %v4090_v7 = vadd.f32 1.0, %v5815_v60 }
 0x936   :  { %v4091_v49 = vadd.f32 1.0, %v5817_v55  ;;  %v5819_v17 = vpop.eup %5818 }
 0x937   :  { %5822 = vrcp.f32 %v4090_v7  ;;  %v5821_v44 = vpop.eup %5820  ;;  %v4092_v9 = vadd.f32 1.0, %v5819_v17 }
 0x938   :  { %5824 = vrcp.f32 %v4091_v49 }
 0x939   :  { %5826 = vrcp.f32 %v4092_v9 }
 0x941   :  { %v5823_v4 = vpop.eup %5822 }
 0x942   :  { %v5825_v31 = vpop.eup %5824  ;;  %v4101_v30 = vmul.f32 %v5823_v4, %v5821_v44 }
 0x943   :  { %v4100_v10 = vmul.f32 %v5825_v31, %v7128_v1  ;;  %v5827_v42 = vpop.eup %5826 }
 0x945   :  { %v4102_v32 = vadd.f32 %v4101_v30, %v4100_v10 }
 0x947   :  { %5828 = vtanh.f32 %v4102_v32 }
 0x951   :  { %v5829_v18 = vpop.eup %5828 }
 0x952   :  { %v4104_v12 = vmul.f32 %v5829_v18, %v5827_v42 }
 0x954   :  { %4129 = vst [vmem:[#allocation7 + $0x70] sm:$0xff] %v4104_v12 }
 0x979   :  { %v3845_v19 = vpop.f32.mrb[68].mxu0  ;;  %v3920_v27 = vpop.f32.mrb[68].mxu1 }
 0x97a   :  { %v3846_v28 = vpop.f32.mrb[69].mxu0  ;;  %v3921_v46 = vpop.f32.mrb[69].mxu1 }
 0x97d   :  { %v3989_v24 = vpop.f32.mrb[70].mxu0  ;;  %v4064_v56 = vpop.f32.mrb[70].mxu1 }
 0x97e   :  { %v3990_v58 = vpop.f32.mrb[71].mxu0  ;;  %v4065_v34 = vpop.f32.mrb[71].mxu1 }
 0x981   :  { %v3993_v35 = vpop.f32.mrb[24].mxu0  ;;  %v4068_v51 = vpop.f32.mrb[24].mxu1 }
 0x982   :  { %v5455_v59 = vadd.f32 %v3993_v35, %v6553_v13  ;;  %v3995_v1 = vpop.f32.mrb[25].mxu0  ;;  %v4070_v57 = vpop.f32.mrb[25].mxu1  ;;  %v5471_v2 = vadd.f32 %v4068_v51, %v7370_v41 }
 0x983   :  { %v5456_v5 = vadd.f32 %v3995_v1, %v6556_v61  ;;  %v5472_v16 = vadd.f32 %v4070_v57, %v7481_v15 }
 0x984   :  { %v4264_v26 = vmul.f32 -1.442695, %v5455_v59 }
 0x985   :  { %v4265_v29 = vmul.f32 -1.442695, %v5456_v5  ;;  %v4266_v25 = vmul.f32 -1.442695, %v5472_v16 }
 0x986   :  { %5830 = vpow2.f32 %v4264_v26 }
 0x987   :  { %5832 = vpow2.f32 %v4265_v29 }
 0x988   :  { %5834 = vpow2.f32 %v4266_v25 }
 0x989   :  { %5836 = vtanh.f32 %v5471_v2 }
 0x990   :  { %v5831_v3 = vpop.eup %5830 }
 0x991   :  { %v5833_v33 = vpop.eup %5832  ;;  %v4114_v20 = vadd.f32 1.0, %v5831_v3 }
 0x992   :  { %v4115_v0 = vadd.f32 1.0, %v5833_v33  ;;  %v5835_v13 = vpop.eup %5834 }
 0x993   :  { %5838 = vrcp.f32 %v4114_v20  ;;  %v5837_v14 = vpop.eup %5836  ;;  %v4116_v54 = vadd.f32 1.0, %v5835_v13 }
 0x994   :  { %5840 = vrcp.f32 %v4115_v0 }
 0x995   :  { %5842 = vrcp.f32 %v4116_v54 }
 0x99d   :  { %v5839_v61 = vpop.eup %5838 }
 0x99e   :  { %v5841_v36 = vpop.eup %5840  ;;  %v4125_v53 = vmul.f32 %v5839_v61, %v5837_v14 }
 0x99f   :  { %v4124_v43 = vmul.f32 %v5841_v36, %v7173_v38  ;;  %v5843_v41 = vpop.eup %5842 }
 0x9a1   :  { %v4126_v15 = vadd.f32 %v4125_v53, %v4124_v43 }
 0x9a3   :  { %5844 = vtanh.f32 %v4126_v15 }
 0x9ad   :  { %v5845_v11 = vpop.eup %5844 }
 0x9ae   :  { %v4128_v47 = vmul.f32 %v5845_v11, %v5843_v41 }
 0x9b0   :  { %4130 = vst [vmem:[#allocation7 + $0x8] sm:$0xff] %v4128_v47 }
 0x9b1   :  { %5879 = shalt.err (!%p5876_p12)
}
 0x9b2   :  { %s5880_s21 = scalar_lea.hbm %s7215_s11, 2048 }
 0x9b3   :  { %p5881_p13 = scmp.ne.s32.totalorder %s7215_s11, %s5880_s21  ;;  %p5884_p0 = scmp.lt.u32.totalorder %s5880_s21, %s7215_s11 }
 0x9b5   :  { %p5886_p1 = pnand %p5884_p0, %p5881_p13 }
 0x9b7   :  { %5889 = shalt.err (!%p5886_p1)
}
 0x9b8   :  { %s5899_s25 = smov 256   ;;  %s5900_s26 = smov 16  }
 0x9b9   :  { %4142 = dma.vmem_to_hbm [thread:$0]  %s4137_s19, 2048, %s7215_s11, [#allocation6], %s5899_s25, %s5899_s25, %s5900_s26  }
 0x9ba   :  { %5892 = dma.done.wait [#allocation6], 2048  }
 0x9bb   :  { %5893 = vsyncadd [#allocation6], 4294965248 }
 0x9bc   :  { %4146 = vsyncpa [#allocation5], 1 }
 0x9bd   :  { %4147 = vsyncpa [#allocation6], 1 }

</bundles_post_ra>
